<compile_context>
chip_gen: v7x
topology: tpu7x:2x2x1
jax: 0.10.0
libtpu: 0.0.40
codegen_flags: <defaults>
</compile_context>

<pallas_src>
import math
import functools

import jax
import jax.numpy as jnp
from jax.experimental import pallas as pl
from jax.experimental.pallas import tpu as pltpu


def _layernorm(x, gamma, beta, eps=1e-5):
    # Single-pass statistics: var = E[x^2] - mean^2 (one last-dim reduction
    # fewer than the (x - mean)^2 form).  x: (R, D) f32, gamma/beta: (1, D).
    mean = jnp.mean(x, axis=-1, keepdims=True)
    mean_sq = jnp.mean(x * x, axis=-1, keepdims=True)
    var = jnp.maximum(mean_sq - mean * mean, 0.0)
    inv = jax.lax.rsqrt(var + eps)
    return (x - mean) * inv * gamma + beta


def encoder_block_kernel(
    x_ref,                       # (Bb, N, D)  f32
    wqkv_ref, bqkv_ref,          # (D, 3D) bf16 (Q cols pre-scaled), (1, 3D) f32
    wo_ref, bo_ref,              # (D, D)  bf16, (1, D) f32
    w1_ref, b1_ref,              # (D, F)  bf16, (1, F) f32
    w2_ref, b2_ref,              # (F, D)  bf16, (1, D) f32
    g1_ref, beta1_ref,           # (1, D) f32
    g2_ref, beta2_ref,           # (1, D) f32
    o_ref,                       # (Bb, N, D)
    *, num_heads: int,
):
    Bb, N, D = x_ref.shape
    H = num_heads
    hd = D // H
    R = Bb * N                   # batch folded into the GEMM M dimension
    G = Bb * H                   # batched attention "groups"

    x = x_ref[...].astype(jnp.float32).reshape(R, D)   # residual / stats in f32
    x_bf = x.astype(jnp.bfloat16)                       # single cast for MXU uses

    # ---- QKV: one lane-dense GEMM (R, D) @ (D, 3D), bf16 in / f32 acc ----
    # 1/sqrt(hd) is already folded into the Q columns of wqkv/bqkv.
    qkv = jnp.dot(x_bf, wqkv_ref[...],
                  preferred_element_type=jnp.float32) + bqkv_ref[...]   # (R, 3D)

    def to_heads(t):             # (R, H*hd) -> (H*Bb, N, hd)
        t = jnp.transpose(t.reshape(R, H, hd), (1, 0, 2))   # (H, R, hd)
        return t.reshape(G, N, hd)

    qh = to_heads(qkv[:, :D])            # lane-aligned slices (multiples of 128)
    kh = to_heads(qkv[:, D:2 * D])
    vh = to_heads(qkv[:, 2 * D:])

    # ---- batched scaled dot-product attention over (batch*heads) ----
    s = jnp.einsum('gqd,gkd->gqk',
                   qh.astype(jnp.bfloat16), kh.astype(jnp.bfloat16),
                   preferred_element_type=jnp.float32)                  # (G, N, N)
    s = s - jnp.max(s, axis=-1, keepdims=True)
    p = jnp.exp(s)
    p = p * pl.reciprocal(jnp.sum(p, axis=-1, keepdims=True), approx=True)
    oh = jnp.einsum('gqk,gkd->gqd',
                    p.astype(jnp.bfloat16), vh.astype(jnp.bfloat16),
                    preferred_element_type=jnp.float32)                 # (G, N, hd)

    # ---- merge heads back to (R, D) and do ONE (R, D) @ (D, D) projection ----
    attn = jnp.transpose(oh.reshape(H, R, hd), (1, 0, 2)).reshape(R, D)
    attn_out = jnp.dot(attn.astype(jnp.bfloat16), wo_ref[...],
                       preferred_element_type=jnp.float32) + bo_ref[...]

    # ---- residual + LayerNorm 1 (f32 statistics) ----
    x1 = _layernorm(x + attn_out, g1_ref[...], beta1_ref[...])

    # ---- FFN: Linear -> ReLU -> Linear (dropout = identity, eval mode) ----
    h1 = jnp.dot(x1.astype(jnp.bfloat16), w1_ref[...],
                 preferred_element_type=jnp.float32) + b1_ref[...]
    h1 = jnp.maximum(h1, 0.0)
    ffn = jnp.dot(h1.astype(jnp.bfloat16), w2_ref[...],
                  preferred_element_type=jnp.float32) + b2_ref[...]

    # ---- residual + LayerNorm 2 ----
    out = _layernorm(x1 + ffn, g2_ref[...], beta2_ref[...])
    o_ref[...] = out.reshape(Bb, N, D).astype(o_ref.dtype)


def prepare_params(params, *, num_heads):
    """One-time weight prep (hoist out of the per-step path when jitted):
    fold the 1/sqrt(head_dim) attention scale into the Q projection and cast
    all matmul weights to bf16.  Biases / LN params stay f32."""
    (wqkv, bqkv, wo, bo, w1, b1, w2, b2, g1, beta1, g2, beta2) = params
    D = wqkv.shape[0]
    hd = D // num_heads
    scale = 1.0 / math.sqrt(hd)
    col_scale = jnp.concatenate(
        [jnp.full((D,), scale, jnp.float32), jnp.ones((2 * D,), jnp.float32)])
    wqkv_s = (wqkv.astype(jnp.float32) * col_scale[None, :]).astype(jnp.bfloat16)
    bqkv_s = (bqkv.astype(jnp.float32) * col_scale[None, :])
    return (wqkv_s, bqkv_s,
            wo.astype(jnp.bfloat16), bo.astype(jnp.float32),
            w1.astype(jnp.bfloat16), b1.astype(jnp.float32),
            w2.astype(jnp.bfloat16), b2.astype(jnp.float32),
            g1.astype(jnp.float32), beta1.astype(jnp.float32),
            g2.astype(jnp.float32), beta2.astype(jnp.float32))


def encoder_block(x, prepared_params, *, num_heads, batch_block=None,
                  out_dtype=None):
    """Fused EncoderBlock forward.

    batch_block: how many batch items per grid step.  Default = B (fold the
    whole batch into one lane-dense GEMM -> best for single-TensorCore
    v5e/v6e and small shapes).  On v7x pass B // 2 so both TensorCores get a
    "parallel" grid step.
    out_dtype: set to jnp.bfloat16 if the consumer accepts bf16 to halve the
    activation write traffic (default: x.dtype).
    """
    B, N, D = x.shape
    (wqkv, bqkv, wo, bo, w1, b1, w2, b2, g1, beta1, g2, beta2) = prepared_params
    F = w1.shape[1]
    if batch_block is None:
        batch_block = B
    assert B % batch_block == 0
    num_steps = B // batch_block
    out_dtype = out_dtype or x.dtype

    full = lambda arr: pl.BlockSpec(arr.shape, lambda b: (0,) * arr.ndim)

    # Advisory cost estimate for XLA scheduling around the fused call.
    flops_per_item = 8 * N * D * D + 4 * N * N * D + 4 * N * D * F
    trans_per_item = num_heads * N * N + num_heads * N + 2 * N
    bytes_accessed = (2 * B * N * D * 4                        # x in + out (f32)
                      + 2 * (3 * D * D + D * D + 2 * D * F)    # bf16 weights
                      + 4 * (4 * D + F + 5 * D))               # f32 biases + LN
    cost = pl.CostEstimate(flops=B * flops_per_item,
                           transcendentals=B * trans_per_item,
                           bytes_accessed=bytes_accessed)

    kernel = functools.partial(encoder_block_kernel, num_heads=num_heads)
    return pl.pallas_call(
        kernel,
        out_shape=jax.ShapeDtypeStruct((B, N, D), out_dtype),
        grid_spec=pltpu.PrefetchScalarGridSpec(
            num_scalar_prefetch=0,
            grid=(num_steps,),
            in_specs=[
                pl.BlockSpec((batch_block, N, D), lambda b: (b, 0, 0)),
                full(wqkv), full(bqkv),
                full(wo), full(bo),
                full(w1), full(b1),
                full(w2), full(b2),
                full(g1), full(beta1),
                full(g2), full(beta2),
            ],
            out_specs=pl.BlockSpec((batch_block, N, D), lambda b: (b, 0, 0)),
        ),
        compiler_params=pltpu.CompilerParams(
            dimension_semantics=("parallel",),
            vmem_limit_bytes=32 * 1024 * 1024,
        ),
        cost_estimate=cost,
    )(x, wqkv, bqkv, wo, bo, w1, b1, w2, b2, g1, beta1, g2, beta2)


def reference_encoder_block(x, params, *, num_heads):
    """Pure-JAX reference mirroring the PyTorch forward (dropout = identity).

    Matmul operands are rounded to bf16 (with f32 accumulation) exactly like
    the kernel, so the comparison isolates kernel bugs rather than bf16 noise.
    """
    (wqkv, bqkv, wo, bo, w1, b1, w2, b2, g1, beta1, g2, beta2) = params
    B, N, D = x.shape
    H = num_heads
    hd = D // H
    bf = lambda a: a.astype(jnp.bfloat16)
    f32 = jnp.float32

    def ln(v, g, b, eps=1e-5):
        m = jnp.mean(v, axis=-1, keepdims=True)
        var = jnp.mean((v - m) ** 2, axis=-1, keepdims=True)
        return (v - m) * jax.lax.rsqrt(var + eps) * g + b

    qkv = jnp.einsum('bnd,df->bnf', bf(x), bf(wqkv),
                     preferred_element_type=f32) + bqkv[0]
    qkv = qkv.reshape(B, N, 3, H, hd).transpose(2, 0, 3, 1, 4)
    q, k, v = qkv[0], qkv[1], qkv[2]                               # (B, H, N, hd)
    s = jnp.einsum('bhnd,bhmd->bhnm', bf(q), bf(k),
                   preferred_element_type=f32) / math.sqrt(hd)
    p = jax.nn.softmax(s, axis=-1)
    o = jnp.einsum('bhnm,bhmd->bhnd', bf(p), bf(v), preferred_element_type=f32)
    o = o.transpose(0, 2, 1, 3).reshape(B, N, D)
    attn_out = jnp.einsum('bnd,de->bne', bf(o), bf(wo),
                          preferred_element_type=f32) + bo[0]
    x1 = ln(x + attn_out, g1[0], beta1[0])
    h1 = jnp.maximum(jnp.einsum('bnd,df->bnf', bf(x1), bf(w1),
                                preferred_element_type=f32) + b1[0], 0.0)
    ffn = jnp.einsum('bnf,fd->bnd', bf(h1), bf(w2),
                     preferred_element_type=f32) + b2[0]
    return ln(x1 + ffn, g2[0], beta2[0])


def init_params(key, d_model, ff_hidden):
    ks = jax.random.split(key, 4)

    def lin(k, fan_in, fan_out):
        bound = 1.0 / math.sqrt(fan_in)
        kw, kb = jax.random.split(k)
        w = jax.random.uniform(kw, (fan_in, fan_out), jnp.float32, -bound, bound)
        b = jax.random.uniform(kb, (1, fan_out), jnp.float32, -bound, bound)
        return w, b

    wqkv, bqkv = lin(ks[0], d_model, 3 * d_model)
    wo, bo = lin(ks[1], d_model, d_model)
    w1, b1 = lin(ks[2], d_model, ff_hidden)
    w2, b2 = lin(ks[3], ff_hidden, d_model)
    g1 = jnp.ones((1, d_model), jnp.float32)
    beta1 = jnp.zeros((1, d_model), jnp.float32)
    g2 = jnp.ones((1, d_model), jnp.float32)
    beta2 = jnp.zeros((1, d_model), jnp.float32)
    return (wqkv, bqkv, wo, bo, w1, b1, w2, b2, g1, beta1, g2, beta2)


if __name__ == "__main__":
    # Small, lane-dense shapes consistent with the module (d_model / ff_hidden
    # are constructor parameters): B=2, seq N=16, d_model=256 (=2*128 lanes),
    # num_heads=8 (head_dim=32), ff_hidden=512.
    B, N, D, H, F = 2, 16, 256, 8, 512

    key = jax.random.PRNGKey(0)
    kx, kp = jax.random.split(key)
    x = jax.random.normal(kx, (B, N, D), jnp.float32)
    params = init_params(kp, D, F)

    # One-time weight prep (scale fold + bf16 cast), hoisted out of the call.
    prepared = prepare_params(params, num_heads=H)

    out = encoder_block(x, prepared, num_heads=H)   # batch_block=B: single step
    out = jax.block_until_ready(out)

    ref = reference_encoder_block(x, params, num_heads=H)
    assert out.shape == (B, N, D)
    # bf16-operand matmuls + approx reciprocal in the softmax => bf16-level tolerance.
    assert jnp.allclose(out, ref, rtol=2e-2, atol=2e-2), "mismatch vs reference"

    print("KERNEL_OK")
</pallas_src>

<mosaic_0001>
module attributes {stable_mosaic.version = 11 : i64} {
  func.func @encoder_block_kernel(%arg0: i32, %arg1: memref<2x16x256xf32, #tpu.memory_space<vmem>>, %arg2: memref<256x768xbf16, #tpu.memory_space<vmem>>, %arg3: memref<1x768xf32, #tpu.memory_space<vmem>>, %arg4: memref<256x256xbf16, #tpu.memory_space<vmem>>, %arg5: memref<1x256xf32, #tpu.memory_space<vmem>>, %arg6: memref<256x512xbf16, #tpu.memory_space<vmem>>, %arg7: memref<1x512xf32, #tpu.memory_space<vmem>>, %arg8: memref<512x256xbf16, #tpu.memory_space<vmem>>, %arg9: memref<1x256xf32, #tpu.memory_space<vmem>>, %arg10: memref<1x256xf32, #tpu.memory_space<vmem>>, %arg11: memref<1x256xf32, #tpu.memory_space<vmem>>, %arg12: memref<1x256xf32, #tpu.memory_space<vmem>>, %arg13: memref<1x256xf32, #tpu.memory_space<vmem>>, %arg14: memref<2x16x256xf32, #tpu.memory_space<vmem>>) attributes {dimension_semantics = [#tpu.dimension_semantics<parallel>], iteration_bounds = array<i64: 1>, scalar_prefetch = 0 : i64, scratch_operands = 0 : i64, tpu.core_type = #tpu.core_type<tc>, window_params = [{transform_indices = @transform_0, window_bounds = array<i64: 2, 16, 256>}, {pipeline_mode = #tpu.pipeline_mode<synchronous>, transform_indices = @transform_1, window_bounds = array<i64: 256, 768>}, {pipeline_mode = #tpu.pipeline_mode<synchronous>, transform_indices = @transform_2, window_bounds = array<i64: 1, 768>}, {pipeline_mode = #tpu.pipeline_mode<synchronous>, transform_indices = @transform_3, window_bounds = array<i64: 256, 256>}, {pipeline_mode = #tpu.pipeline_mode<synchronous>, transform_indices = @transform_4, window_bounds = array<i64: 1, 256>}, {pipeline_mode = #tpu.pipeline_mode<synchronous>, transform_indices = @transform_5, window_bounds = array<i64: 256, 512>}, {pipeline_mode = #tpu.pipeline_mode<synchronous>, transform_indices = @transform_6, window_bounds = array<i64: 1, 512>}, {pipeline_mode = #tpu.pipeline_mode<synchronous>, transform_indices = @transform_7, window_bounds = array<i64: 512, 256>}, {pipeline_mode = #tpu.pipeline_mode<synchronous>, transform_indices = @transform_8, window_bounds = array<i64: 1, 256>}, {pipeline_mode = #tpu.pipeline_mode<synchronous>, transform_indices = @transform_9, window_bounds = array<i64: 1, 256>}, {pipeline_mode = #tpu.pipeline_mode<synchronous>, transform_indices = @transform_10, window_bounds = array<i64: 1, 256>}, {pipeline_mode = #tpu.pipeline_mode<synchronous>, transform_indices = @transform_11, window_bounds = array<i64: 1, 256>}, {pipeline_mode = #tpu.pipeline_mode<synchronous>, transform_indices = @transform_12, window_bounds = array<i64: 1, 256>}, {transform_indices = @transform_13, window_bounds = array<i64: 2, 16, 256>}]} {
    %c0 = arith.constant 0 : index
    %c0_0 = arith.constant 0 : index
    %c0_1 = arith.constant 0 : index
    %0 = vector.load %arg1[%c0, %c0_0, %c0_1] : memref<2x16x256xf32, #tpu.memory_space<vmem>>, vector<2x16x256xf32>
    %1 = vector.shape_cast %0 : vector<2x16x256xf32> to vector<32x256xf32>
    %2 = arith.truncf %1 : vector<32x256xf32> to vector<32x256xbf16>
    %c0_2 = arith.constant 0 : index
    %c0_3 = arith.constant 0 : index
    %3 = vector.load %arg2[%c0_2, %c0_3] : memref<256x768xbf16, #tpu.memory_space<vmem>>, vector<256x768xbf16>
    %cst = arith.constant dense<0.000000e+00> : vector<32x768xf32>
    %4 = tpu.matmul %2, %3, %cst {dimension_numbers = #tpu.dot_dimension_numbers<[1], [0], [0], [1], [0, 0, 1, 1], [], []>} : vector<32x256xbf16>, vector<256x768xbf16>, vector<32x768xf32> -> vector<32x768xf32>
    %c0_4 = arith.constant 0 : index
    %c0_5 = arith.constant 0 : index
    %5 = vector.load %arg3[%c0_4, %c0_5] : memref<1x768xf32, #tpu.memory_space<vmem>>, vector<1x768xf32>
    %6 = vector.broadcast %5 : vector<1x768xf32> to vector<32x768xf32>
    %7 = arith.addf %4, %6 : vector<32x768xf32>
    %8 = vector.extract_strided_slice %7 {offsets = [0, 0], sizes = [32, 256], strides = [1, 1]} : vector<32x768xf32> to vector<32x256xf32>
    %9 = vector.shape_cast %8 : vector<32x256xf32> to vector<32x8x32xf32>
    %10 = tpu.transpose %9, [1, 0, 2] : vector<32x8x32xf32> -> vector<8x32x32xf32>
    %11 = vector.shape_cast %10 : vector<8x32x32xf32> to vector<16x16x32xf32>
    %12 = vector.extract_strided_slice %7 {offsets = [0, 256], sizes = [32, 256], strides = [1, 1]} : vector<32x768xf32> to vector<32x256xf32>
    %13 = vector.shape_cast %12 : vector<32x256xf32> to vector<32x8x32xf32>
    %14 = tpu.transpose %13, [1, 0, 2] : vector<32x8x32xf32> -> vector<8x32x32xf32>
    %15 = vector.shape_cast %14 : vector<8x32x32xf32> to vector<16x16x32xf32>
    %16 = vector.extract_strided_slice %7 {offsets = [0, 512], sizes = [32, 256], strides = [1, 1]} : vector<32x768xf32> to vector<32x256xf32>
    %17 = vector.shape_cast %16 : vector<32x256xf32> to vector<32x8x32xf32>
    %18 = tpu.transpose %17, [1, 0, 2] : vector<32x8x32xf32> -> vector<8x32x32xf32>
    %19 = vector.shape_cast %18 : vector<8x32x32xf32> to vector<16x16x32xf32>
    %20 = arith.truncf %11 : vector<16x16x32xf32> to vector<16x16x32xbf16>
    %21 = arith.truncf %15 : vector<16x16x32xf32> to vector<16x16x32xbf16>
    "tpu.trace_start"() <{level = 10 : i32, message = "gqd,gkd->gqk"}> : () -> ()
    %cst_6 = arith.constant dense<0.000000e+00> : vector<16x16x16xf32>
    %22 = tpu.matmul %20, %21, %cst_6 {dimension_numbers = #tpu.dot_dimension_numbers<[2], [2], [1], [1], [0, 0, 0, 1, 1, 1], [0], [0]>} : vector<16x16x32xbf16>, vector<16x16x32xbf16>, vector<16x16x16xf32> -> vector<16x16x16xf32>
    "tpu.trace_stop"() : () -> ()
    %cst_7 = arith.constant dense<0xFF800000> : vector<16x16xf32>
    %23 = vector.multi_reduction <maximumf>, %22, %cst_7 [2] : vector<16x16x16xf32> to vector<16x16xf32>
    %24 = vector.shape_cast %23 : vector<16x16xf32> to vector<16x16x1xf32>
    %25 = vector.broadcast %24 : vector<16x16x1xf32> to vector<16x16x16xf32>
    %26 = arith.subf %22, %25 : vector<16x16x16xf32>
    %27 = math.exp %26 : vector<16x16x16xf32>
    %cst_8 = arith.constant dense<0.000000e+00> : vector<16x16xf32>
    %28 = vector.multi_reduction <add>, %27, %cst_8 [2] : vector<16x16x16xf32> to vector<16x16xf32>
    %29 = vector.shape_cast %28 : vector<16x16xf32> to vector<16x16x1xf32>
    %30 = tpu.reciprocal %29 {approx = true} : vector<16x16x1xf32> -> vector<16x16x1xf32>
    %31 = vector.broadcast %30 : vector<16x16x1xf32> to vector<16x16x16xf32>
    %32 = arith.mulf %27, %31 : vector<16x16x16xf32>
    %33 = arith.truncf %32 : vector<16x16x16xf32> to vector<16x16x16xbf16>
    %34 = arith.truncf %19 : vector<16x16x32xf32> to vector<16x16x32xbf16>
    "tpu.trace_start"() <{level = 10 : i32, message = "gqk,gkd->gqd"}> : () -> ()
    %cst_9 = arith.constant dense<0.000000e+00> : vector<16x16x32xf32>
    %35 = tpu.matmul %33, %34, %cst_9 {dimension_numbers = #tpu.dot_dimension_numbers<[2], [1], [1], [2], [0, 0, 0, 1, 1, 2], [0], [0]>} : vector<16x16x16xbf16>, vector<16x16x32xbf16>, vector<16x16x32xf32> -> vector<16x16x32xf32>
    "tpu.trace_stop"() : () -> ()
    %36 = vector.shape_cast %35 : vector<16x16x32xf32> to vector<8x32x32xf32>
    %37 = tpu.transpose %36, [1, 0, 2] : vector<8x32x32xf32> -> vector<32x8x32xf32>
    %38 = vector.shape_cast %37 : vector<32x8x32xf32> to vector<32x256xf32>
    %39 = arith.truncf %38 : vector<32x256xf32> to vector<32x256xbf16>
    %c0_10 = arith.constant 0 : index
    %c0_11 = arith.constant 0 : index
    %40 = vector.load %arg4[%c0_10, %c0_11] : memref<256x256xbf16, #tpu.memory_space<vmem>>, vector<256x256xbf16>
    %cst_12 = arith.constant dense<0.000000e+00> : vector<32x256xf32>
    %41 = tpu.matmul %39, %40, %cst_12 {dimension_numbers = #tpu.dot_dimension_numbers<[1], [0], [0], [1], [0, 0, 1, 1], [], []>} : vector<32x256xbf16>, vector<256x256xbf16>, vector<32x256xf32> -> vector<32x256xf32>
    %c0_13 = arith.constant 0 : index
    %c0_14 = arith.constant 0 : index
    %42 = vector.load %arg5[%c0_13, %c0_14] : memref<1x256xf32, #tpu.memory_space<vmem>>, vector<1x256xf32>
    %43 = vector.broadcast %42 : vector<1x256xf32> to vector<32x256xf32>
    %44 = arith.addf %41, %43 : vector<32x256xf32>
    %45 = arith.addf %1, %44 : vector<32x256xf32>
    %c0_15 = arith.constant 0 : index
    %c0_16 = arith.constant 0 : index
    %46 = vector.load %arg10[%c0_15, %c0_16] : memref<1x256xf32, #tpu.memory_space<vmem>>, vector<1x256xf32>
    %c0_17 = arith.constant 0 : index
    %c0_18 = arith.constant 0 : index
    %47 = vector.load %arg11[%c0_17, %c0_18] : memref<1x256xf32, #tpu.memory_space<vmem>>, vector<1x256xf32>
    %cst_19 = arith.constant dense<0.000000e+00> : vector<32xf32>
    %48 = vector.multi_reduction <add>, %45, %cst_19 [1] : vector<32x256xf32> to vector<32xf32>
    %49 = vector.shape_cast %48 : vector<32xf32> to vector<32x1xf32>
    %cst_20 = arith.constant 2.560000e+02 : f32
    %50 = vector.broadcast %cst_20 : f32 to vector<32x1xf32>
    %51 = arith.divf %49, %50 : vector<32x1xf32>
    %52 = arith.mulf %45, %45 : vector<32x256xf32>
    %cst_21 = arith.constant dense<0.000000e+00> : vector<32xf32>
    %53 = vector.multi_reduction <add>, %52, %cst_21 [1] : vector<32x256xf32> to vector<32xf32>
    %54 = vector.shape_cast %53 : vector<32xf32> to vector<32x1xf32>
    %cst_22 = arith.constant 2.560000e+02 : f32
    %55 = vector.broadcast %cst_22 : f32 to vector<32x1xf32>
    %56 = arith.divf %54, %55 : vector<32x1xf32>
    %57 = arith.mulf %51, %51 : vector<32x1xf32>
    %58 = arith.subf %56, %57 : vector<32x1xf32>
    %cst_23 = arith.constant 0.000000e+00 : f32
    %59 = vector.broadcast %cst_23 : f32 to vector<32x1xf32>
    %60 = arith.maximumf %58, %59 : vector<32x1xf32>
    %cst_24 = arith.constant 9.99999974E-6 : f32
    %61 = vector.broadcast %cst_24 : f32 to vector<32x1xf32>
    %62 = arith.addf %60, %61 : vector<32x1xf32>
    %63 = math.rsqrt %62 : vector<32x1xf32>
    %64 = vector.broadcast %51 : vector<32x1xf32> to vector<32x256xf32>
    %65 = arith.subf %45, %64 : vector<32x256xf32>
    %66 = vector.broadcast %63 : vector<32x1xf32> to vector<32x256xf32>
    %67 = arith.mulf %65, %66 : vector<32x256xf32>
    %68 = vector.broadcast %46 : vector<1x256xf32> to vector<32x256xf32>
    %69 = arith.mulf %67, %68 : vector<32x256xf32>
    %70 = vector.broadcast %47 : vector<1x256xf32> to vector<32x256xf32>
    %71 = arith.addf %69, %70 : vector<32x256xf32>
    %72 = arith.truncf %71 : vector<32x256xf32> to vector<32x256xbf16>
    %c0_25 = arith.constant 0 : index
    %c0_26 = arith.constant 0 : index
    %73 = vector.load %arg6[%c0_25, %c0_26] : memref<256x512xbf16, #tpu.memory_space<vmem>>, vector<256x512xbf16>
    %cst_27 = arith.constant dense<0.000000e+00> : vector<32x512xf32>
    %74 = tpu.matmul %72, %73, %cst_27 {dimension_numbers = #tpu.dot_dimension_numbers<[1], [0], [0], [1], [0, 0, 1, 1], [], []>} : vector<32x256xbf16>, vector<256x512xbf16>, vector<32x512xf32> -> vector<32x512xf32>
    %c0_28 = arith.constant 0 : index
    %c0_29 = arith.constant 0 : index
    %75 = vector.load %arg7[%c0_28, %c0_29] : memref<1x512xf32, #tpu.memory_space<vmem>>, vector<1x512xf32>
    %76 = vector.broadcast %75 : vector<1x512xf32> to vector<32x512xf32>
    %77 = arith.addf %74, %76 : vector<32x512xf32>
    %cst_30 = arith.constant 0.000000e+00 : f32
    %78 = vector.broadcast %cst_30 : f32 to vector<32x512xf32>
    %79 = arith.maximumf %77, %78 : vector<32x512xf32>
    %80 = arith.truncf %79 : vector<32x512xf32> to vector<32x512xbf16>
    %c0_31 = arith.constant 0 : index
    %c0_32 = arith.constant 0 : index
    %81 = vector.load %arg8[%c0_31, %c0_32] : memref<512x256xbf16, #tpu.memory_space<vmem>>, vector<512x256xbf16>
    %cst_33 = arith.constant dense<0.000000e+00> : vector<32x256xf32>
    %82 = tpu.matmul %80, %81, %cst_33 {dimension_numbers = #tpu.dot_dimension_numbers<[1], [0], [0], [1], [0, 0, 1, 1], [], []>} : vector<32x512xbf16>, vector<512x256xbf16>, vector<32x256xf32> -> vector<32x256xf32>
    %c0_34 = arith.constant 0 : index
    %c0_35 = arith.constant 0 : index
    %83 = vector.load %arg9[%c0_34, %c0_35] : memref<1x256xf32, #tpu.memory_space<vmem>>, vector<1x256xf32>
    %84 = vector.broadcast %83 : vector<1x256xf32> to vector<32x256xf32>
    %85 = arith.addf %82, %84 : vector<32x256xf32>
    %86 = arith.addf %71, %85 : vector<32x256xf32>
    %c0_36 = arith.constant 0 : index
    %c0_37 = arith.constant 0 : index
    %87 = vector.load %arg12[%c0_36, %c0_37] : memref<1x256xf32, #tpu.memory_space<vmem>>, vector<1x256xf32>
    %c0_38 = arith.constant 0 : index
    %c0_39 = arith.constant 0 : index
    %88 = vector.load %arg13[%c0_38, %c0_39] : memref<1x256xf32, #tpu.memory_space<vmem>>, vector<1x256xf32>
    %cst_40 = arith.constant dense<0.000000e+00> : vector<32xf32>
    %89 = vector.multi_reduction <add>, %86, %cst_40 [1] : vector<32x256xf32> to vector<32xf32>
    %90 = vector.shape_cast %89 : vector<32xf32> to vector<32x1xf32>
    %cst_41 = arith.constant 2.560000e+02 : f32
    %91 = vector.broadcast %cst_41 : f32 to vector<32x1xf32>
    %92 = arith.divf %90, %91 : vector<32x1xf32>
    %93 = arith.mulf %86, %86 : vector<32x256xf32>
    %cst_42 = arith.constant dense<0.000000e+00> : vector<32xf32>
    %94 = vector.multi_reduction <add>, %93, %cst_42 [1] : vector<32x256xf32> to vector<32xf32>
    %95 = vector.shape_cast %94 : vector<32xf32> to vector<32x1xf32>
    %cst_43 = arith.constant 2.560000e+02 : f32
    %96 = vector.broadcast %cst_43 : f32 to vector<32x1xf32>
    %97 = arith.divf %95, %96 : vector<32x1xf32>
    %98 = arith.mulf %92, %92 : vector<32x1xf32>
    %99 = arith.subf %97, %98 : vector<32x1xf32>
    %cst_44 = arith.constant 0.000000e+00 : f32
    %100 = vector.broadcast %cst_44 : f32 to vector<32x1xf32>
    %101 = arith.maximumf %99, %100 : vector<32x1xf32>
    %cst_45 = arith.constant 9.99999974E-6 : f32
    %102 = vector.broadcast %cst_45 : f32 to vector<32x1xf32>
    %103 = arith.addf %101, %102 : vector<32x1xf32>
    %104 = math.rsqrt %103 : vector<32x1xf32>
    %105 = vector.broadcast %92 : vector<32x1xf32> to vector<32x256xf32>
    %106 = arith.subf %86, %105 : vector<32x256xf32>
    %107 = vector.broadcast %104 : vector<32x1xf32> to vector<32x256xf32>
    %108 = arith.mulf %106, %107 : vector<32x256xf32>
    %109 = vector.broadcast %87 : vector<1x256xf32> to vector<32x256xf32>
    %110 = arith.mulf %108, %109 : vector<32x256xf32>
    %111 = vector.broadcast %88 : vector<1x256xf32> to vector<32x256xf32>
    %112 = arith.addf %110, %111 : vector<32x256xf32>
    %113 = vector.shape_cast %112 : vector<32x256xf32> to vector<2x16x256xf32>
    %c0_46 = arith.constant 0 : index
    %c0_47 = arith.constant 0 : index
    %c0_48 = arith.constant 0 : index
    %114 = vector.load %arg14[%c0_46, %c0_47, %c0_48] : memref<2x16x256xf32, #tpu.memory_space<vmem>>, vector<2x16x256xf32>
    tpu.vector_store %arg14[%c0_46, %c0_47, %c0_48], %113 {strides = array<i32>} : memref<2x16x256xf32, #tpu.memory_space<vmem>>, vector<2x16x256xf32>,
    return
  }
  func.func @transform_0(%arg0: i32) -> (i32, i32, i32) {
    %c0_i32 = arith.constant 0 : i32
    %c0_i32_0 = arith.constant 0 : i32
    %c0_i32_1 = arith.constant 0 : i32
    return %arg0, %c0_i32, %c0_i32_0 : i32, i32, i32
  }
  func.func @transform_1(%arg0: i32) -> (i32, i32) {
    %c0_i32 = arith.constant 0 : i32
    %c0_i32_0 = arith.constant 0 : i32
    %c0_i32_1 = arith.constant 0 : i32
    return %c0_i32, %c0_i32_0 : i32, i32
  }
  func.func @transform_2(%arg0: i32) -> (i32, i32) {
    %c0_i32 = arith.constant 0 : i32
    %c0_i32_0 = arith.constant 0 : i32
    %c0_i32_1 = arith.constant 0 : i32
    return %c0_i32, %c0_i32_0 : i32, i32
  }
  func.func @transform_3(%arg0: i32) -> (i32, i32) {
    %c0_i32 = arith.constant 0 : i32
    %c0_i32_0 = arith.constant 0 : i32
    %c0_i32_1 = arith.constant 0 : i32
    return %c0_i32, %c0_i32_0 : i32, i32
  }
  func.func @transform_4(%arg0: i32) -> (i32, i32) {
    %c0_i32 = arith.constant 0 : i32
    %c0_i32_0 = arith.constant 0 : i32
    %c0_i32_1 = arith.constant 0 : i32
    return %c0_i32, %c0_i32_0 : i32, i32
  }
  func.func @transform_5(%arg0: i32) -> (i32, i32) {
    %c0_i32 = arith.constant 0 : i32
    %c0_i32_0 = arith.constant 0 : i32
    %c0_i32_1 = arith.constant 0 : i32
    return %c0_i32, %c0_i32_0 : i32, i32
  }
  func.func @transform_6(%arg0: i32) -> (i32, i32) {
    %c0_i32 = arith.constant 0 : i32
    %c0_i32_0 = arith.constant 0 : i32
    %c0_i32_1 = arith.constant 0 : i32
    return %c0_i32, %c0_i32_0 : i32, i32
  }
  func.func @transform_7(%arg0: i32) -> (i32, i32) {
    %c0_i32 = arith.constant 0 : i32
    %c0_i32_0 = arith.constant 0 : i32
    %c0_i32_1 = arith.constant 0 : i32
    return %c0_i32, %c0_i32_0 : i32, i32
  }
  func.func @transform_8(%arg0: i32) -> (i32, i32) {
    %c0_i32 = arith.constant 0 : i32
    %c0_i32_0 = arith.constant 0 : i32
    %c0_i32_1 = arith.constant 0 : i32
    return %c0_i32, %c0_i32_0 : i32, i32
  }
  func.func @transform_9(%arg0: i32) -> (i32, i32) {
    %c0_i32 = arith.constant 0 : i32
    %c0_i32_0 = arith.constant 0 : i32
    %c0_i32_1 = arith.constant 0 : i32
    return %c0_i32, %c0_i32_0 : i32, i32
  }
  func.func @transform_10(%arg0: i32) -> (i32, i32) {
    %c0_i32 = arith.constant 0 : i32
    %c0_i32_0 = arith.constant 0 : i32
    %c0_i32_1 = arith.constant 0 : i32
    return %c0_i32, %c0_i32_0 : i32, i32
  }
  func.func @transform_11(%arg0: i32) -> (i32, i32) {
    %c0_i32 = arith.constant 0 : i32
    %c0_i32_0 = arith.constant 0 : i32
    %c0_i32_1 = arith.constant 0 : i32
    return %c0_i32, %c0_i32_0 : i32, i32
  }
  func.func @transform_12(%arg0: i32) -> (i32, i32) {
    %c0_i32 = arith.constant 0 : i32
    %c0_i32_0 = arith.constant 0 : i32
    %c0_i32_1 = arith.constant 0 : i32
    return %c0_i32, %c0_i32_0 : i32, i32
  }
  func.func @transform_13(%arg0: i32) -> (i32, i32, i32) {
    %c0_i32 = arith.constant 0 : i32
    %c0_i32_0 = arith.constant 0 : i32
    %c0_i32_1 = arith.constant 0 : i32
    return %arg0, %c0_i32, %c0_i32_0 : i32, i32, i32
  }
}

</mosaic_0001>

<bundles_post_ra>
// kernel: tpu_custom_call.1
= control target key start
LH: loop header
LB: loop body
LE: loop exit
PB: predicated region body
PF: predicated region fallthrough
CT: control target
= control target key end

     0   :  { %18 = vsyncpa [#allocation3], 0  ;;  %s13116_s0 = inlined_call_operand.hbm [shape: f32[2,16,256], index: 0, kind: input, shape index: {}]   ;;  %s13117_s1 = inlined_call_operand.hbm [shape: bf16[256,768], index: 1, kind: input, shape index: {}]   ;;  %s13118_s2 = inlined_call_operand.vmem [shape: f32[1,768], index: 2, kind: input, shape index: {}]   ;;  %s13119_s3 = inlined_call_operand.hbm [shape: bf16[256,256], index: 3, kind: input, shape index: {}]   ;;  %s13120_s4 = inlined_call_operand.vmem [shape: f32[1,256], index: 4, kind: input, shape index: {}]   ;;  %s13121_s5 = inlined_call_operand.hbm [shape: bf16[256,512], index: 5, kind: input, shape index: {}]   ;;  %s13122_s6 = inlined_call_operand.vmem [shape: f32[1,512], index: 6, kind: input, shape index: {}]   ;;  %s13123_s7 = inlined_call_operand.hbm [shape: bf16[512,256], index: 7, kind: input, shape index: {}]   ;;  %s13124_s8 = inlined_call_operand.vmem [shape: f32[1,256], index: 8, kind: input, shape index: {}]   ;;  %s13125_s9 = inlined_call_operand.vmem [shape: f32[1,256], index: 9, kind: input, shape index: {}]   ;;  %s13126_s10 = inlined_call_operand.vmem [shape: f32[1,256], index: 10, kind: input, shape index: {}]   ;;  %s13127_s11 = inlined_call_operand.vmem [shape: f32[1,256], index: 11, kind: input, shape index: {}]   ;;  %s13128_s12 = inlined_call_operand.vmem [shape: f32[1,256], index: 12, kind: input, shape index: {}]   ;;  %s13129_s13 = inlined_call_operand.hbm [shape: f32[2,16,256], index: 13, kind: output, shape index: {}]  }
   0x1   :  { %19 = vsyncpa [#allocation6], 0 }
   0x2   :  { %20 = vsyncpa [#allocation9], 0 }
   0x3   :  { %21 = vsyncpa [#allocation4], 0  ;;  %s10503_s25 = smov [#allocation5]   ;;  %s10363_s29 = scalar_lea.hbm %s13117_s1, 12288 }
   0x4   :  { %s39_s26 = sshll.u32 %s10503_s25, 4  ;;  %p10364_p0 = scmp.ne.s32.totalorder %s13117_s1, %s10363_s29  ;;  %s40_s26 = int_to_ptr.vmem [resolvable:$true] %s39_s26 }
   0x5   :  { %p10367_p1 = scmp.lt.u32.totalorder %s10363_s29, %s13117_s1 }
   0x7   :  { %p10369_p2 = pnand %p10367_p1, %p10364_p0 }
   0x9   :  { %10372 = shalt.err (!%p10369_p2)
}
   0xa   :  { %s10373_s17 = scalar_lea.vmem %s40_s26, 12288  ;;  %p10378_p4 = scmp.lt.s32.totalorder %s40_s26, %s40_s26 }
   0xb   :  { %p10374_p3 = scmp.ne.s32.totalorder %s40_s26, %s10373_s17  ;;  %p10379_p5 = scmp.lt.s32.totalorder %s10373_s17, %s10373_s17 }
   0xd   :  { %p10380_p6 = por %p10379_p5, %p10378_p4 }
   0xf   :  { %p10381_p7 = pnand %p10380_p6, %p10374_p3 }
  0x11   :  { %10384 = shalt.err (!%p10381_p7)
}
  0x12   :  { %s10504_s18 = smov 384   ;;  %s10505_s19 = smov 24  }
  0x13   :  { %45 = dma.hbm_to_vmem [thread:$0]  %s13117_s1, 12288, %s40_s26, [#allocation6], %s10504_s18, %s10504_s18, %s10505_s19  }
  0x14   :  { %s10506_s22 = smov [#allocation8]   ;;  %s10507_s24 = smov [#allocation2]  }
  0x15   :  { %s67_s23 = sshll.u32 %s10506_s22, 4  ;;  %s27_s25 = sshll.u32 %s10507_s24, 4  ;;  %s68_s23 = int_to_ptr.vmem [resolvable:$true] %s67_s23  ;;  %s28_s25 = int_to_ptr.vmem [resolvable:$true] %s27_s25 }
  0x16   :  { %s10385_s29 = scalar_lea.hbm %s13121_s5, 8192 }
  0x17   :  { %p10386_p8 = scmp.ne.s32.totalorder %s13121_s5, %s10385_s29  ;;  %p10389_p9 = scmp.lt.u32.totalorder %s10385_s29, %s13121_s5 }
  0x19   :  { %p10391_p10 = pnand %p10389_p9, %p10386_p8 }
  0x1b   :  { %10394 = shalt.err (!%p10391_p10)
}
  0x1c   :  { %s10395_s1 = scalar_lea.vmem %s68_s23, 8192  ;;  %p10400_p12 = scmp.lt.s32.totalorder %s68_s23, %s68_s23 }
  0x1d   :  { %p10396_p11 = scmp.ne.s32.totalorder %s68_s23, %s10395_s1  ;;  %p10401_p13 = scmp.lt.s32.totalorder %s10395_s1, %s10395_s1 }
  0x1f   :  { %p10402_p0 = por %p10401_p13, %p10400_p12 }
  0x21   :  { %p10403_p1 = pnand %p10402_p0, %p10396_p11 }
  0x23   :  { %10406 = shalt.err (!%p10403_p1)
}
  0x24   :  { %s10508_s26 = smov 256   ;;  %s10509_s17 = smov 16  }
  0x25   :  { %73 = dma.hbm_to_vmem [thread:$0]  %s13121_s5, 8192, %s68_s23, [#allocation9], %s10508_s26, %s10508_s26, %s10509_s17  }
  0x26   :  { %s10407_s22 = scalar_lea.hbm %s13116_s0, 1024 }
  0x27   :  { %p10408_p2 = scmp.ne.s32.totalorder %s13116_s0, %s10407_s22  ;;  %p10411_p3 = scmp.lt.u32.totalorder %s10407_s22, %s13116_s0 }
  0x29   :  { %p10413_p4 = pnand %p10411_p3, %p10408_p2 }
  0x2b   :  { %10416 = shalt.err (!%p10413_p4)
}
  0x2c   :  { %s10417_s30 = scalar_lea.vmem %s28_s25, 1024  ;;  %p10422_p6 = scmp.lt.s32.totalorder %s28_s25, %s28_s25 }
  0x2d   :  { %p10418_p5 = scmp.ne.s32.totalorder %s28_s25, %s10417_s30  ;;  %p10423_p7 = scmp.lt.s32.totalorder %s10417_s30, %s10417_s30 }
  0x2f   :  { %p10424_p8 = por %p10423_p7, %p10422_p6 }
  0x31   :  { %p10425_p9 = pnand %p10424_p8, %p10418_p5 }
  0x33   :  { %10428 = shalt.err (!%p10425_p9)
}
  0x34   :  { %33 = dma.hbm_to_vmem [thread:$0]  %s13116_s0, 1024, %s28_s25, [#allocation3], %s10508_s26, %s10508_s26, %s10509_s17  }
  0x35   :  { %s10510_s14 = smov [#allocation7]   ;;  %s10429_s18 = scalar_lea.hbm %s13119_s3, 4096 }
  0x36   :  { %s53_s15 = sshll.u32 %s10510_s14, 4  ;;  %p10430_p10 = scmp.ne.s32.totalorder %s13119_s3, %s10429_s18  ;;  %s54_s15 = int_to_ptr.vmem [resolvable:$true] %s53_s15 }
  0x37   :  { %p10433_p11 = scmp.lt.u32.totalorder %s10429_s18, %s13119_s3 }
  0x39   :  { %p10435_p12 = pnand %p10433_p11, %p10430_p10 }
  0x3b   :  { %10438 = shalt.err (!%p10435_p12)
}
  0x3c   :  { %s10439_s24 = scalar_lea.vmem %s54_s15, 4096  ;;  %p10444_p0 = scmp.lt.s32.totalorder %s54_s15, %s54_s15 }
  0x3d   :  { %p10440_p13 = scmp.ne.s32.totalorder %s54_s15, %s10439_s24  ;;  %p10445_p1 = scmp.lt.s32.totalorder %s10439_s24, %s10439_s24 }
  0x3f   :  { %p10446_p2 = por %p10445_p1, %p10444_p0 }
  0x41   :  { %p10447_p3 = pnand %p10446_p2, %p10440_p13 }
  0x43   :  { %10450 = shalt.err (!%p10447_p3)
}
  0x44   :  { %s10511_s0 = smov 128   ;;  %s10512_s25 = smov 8  }
  0x45   :  { %59 = dma.hbm_to_vmem [thread:$0]  %s13119_s3, 4096, %s54_s15, [#allocation6], %s10511_s0, %s10511_s0, %s10512_s25  }
  0x46   :  { %s10513_s29 = smov [#allocation10]   ;;  %s10451_s14 = scalar_lea.hbm %s13123_s7, 8192 }
  0x47   :  { %s81_s30 = sshll.u32 %s10513_s29, 4  ;;  %p10452_p4 = scmp.ne.s32.totalorder %s13123_s7, %s10451_s14  ;;  %s82_s30 = int_to_ptr.vmem [resolvable:$true] %s81_s30 }
  0x48   :  { %p10455_p5 = scmp.lt.u32.totalorder %s10451_s14, %s13123_s7 }
  0x4a   :  { %p10457_p6 = pnand %p10455_p5, %p10452_p4 }
  0x4c   :  { %10460 = shalt.err (!%p10457_p6)
}
  0x4d   :  { %s10461_s20 = scalar_lea.vmem %s82_s30, 8192  ;;  %p10466_p8 = scmp.lt.s32.totalorder %s82_s30, %s82_s30 }
  0x4e   :  { %p10462_p7 = scmp.ne.s32.totalorder %s82_s30, %s10461_s20  ;;  %p10467_p9 = scmp.lt.s32.totalorder %s10461_s20, %s10461_s20 }
  0x50   :  { %p10468_p10 = por %p10467_p9, %p10466_p8 }
  0x52   :  { %p10469_p11 = pnand %p10468_p10, %p10462_p7 }
  0x54   :  { %10472 = shalt.err (!%p10469_p11)
}
  0x55   :  { %87 = dma.hbm_to_vmem [thread:$0]  %s13123_s7, 8192, %s82_s30, [#allocation9], %s10511_s0, %s10511_s0, %s10512_s25  }
  0x56   :  { %10495 = dma.done.wait [#allocation3], 1024  }
  0x57   :  { %10496 = vsyncadd [#allocation3], 4294966272 }
  0x58   :  { %10497 = dma.done.wait [#allocation6], 16384  }
  0x59   :  { %10498 = vsyncadd [#allocation6], 4294950912 }
  0x5a   :  { %10499 = dma.done.wait [#allocation9], 16384  }
  0x5b   :  { %10500 = vsyncadd [#allocation9], 4294950912  ;;  %v9827_v0 = vld [vmem:[#allocation5 + $0xc] ss:$24 sps:$4 sm:$0xff]   ;;  %v9829_v1 = vld [vmem:[#allocation5 + $0x8] ss:$24 sps:$4 sm:$0xff]  }
  0x5c   :  { %787 = vmatprep.subr.bf16.mxu1 %v9827_v0  ;;  %v9830_v2 = vld [vmem:[#allocation5 + $0x3c] ss:$24 sps:$4 sm:$0xff]   ;;  %v9834_v4 = vld [vmem:[#allocation5 + $0x38] ss:$24 sps:$4 sm:$0xff]   ;;  %v9836_v6 = vld [vmem:[#allocation5 + $0x6c] ss:$24 sps:$4 sm:$0xff]  }
  0x5d   :  { %788 = vmatpush1.bf16.msra.mxu1 %v9829_v1  ;;  %v9832_v3 = vld [vmem:[#allocation5 + $0x4] ss:$24 sps:$4 sm:$0xff]   ;;  %v9835_v5 = vld [vmem:[#allocation5] ss:$24 sps:$4 sm:$0xff]   ;;  %v9838_v7 = vld [vmem:[#allocation5 + $0x34] ss:$24 sps:$4 sm:$0xff]  }
  0x5e   :  { %789 = vmatprep.subr.bf16.mxu1 %v9830_v2  ;;  %734 = vmatprep.subr.bf16.mxu0 %v9832_v3  ;;  %v9841_v8 = vld [vmem:[#allocation5 + $0x30] ss:$24 sps:$4 sm:$0xff]   ;;  %v9842_v10 = vld [vmem:[#allocation5 + $0x9c] ss:$24 sps:$4 sm:$0xff]   ;;  %v9847_v12 = vld [vmem:[#allocation5 + $0x60] ss:$24 sps:$4 sm:$0xff]  }
  0x5f   :  { %735 = vmatpush1.bf16.msra.mxu0 %v9835_v5  ;;  %v9840_v9 = vld [vmem:[#allocation5 + $0x68] ss:$24 sps:$4 sm:$0xff]   ;;  %v9844_v11 = vld [vmem:[#allocation5 + $0x64] ss:$24 sps:$4 sm:$0xff]   ;;  %v9846_v13 = vld [vmem:[#allocation5 + $0x98] ss:$24 sps:$4 sm:$0xff]  }
  0x60   :  { %736 = vmatprep.subr.bf16.mxu0 %v9838_v7  ;;  %v9850_v14 = vld [vmem:[#allocation5 + $0x94] ss:$24 sps:$4 sm:$0xff]   ;;  %v9852_v16 = vld [vmem:[#allocation5 + $0xc8] ss:$24 sps:$4 sm:$0xff]   ;;  %v9856_v18 = vld [vmem:[#allocation5 + $0xc4] ss:$24 sps:$4 sm:$0xff]  }
  0x61   :  { %790 = vmatpush1.bf16.msra.mxu1 %v9834_v4  ;;  %v9848_v15 = vld [vmem:[#allocation5 + $0xcc] ss:$24 sps:$4 sm:$0xff]   ;;  %v9853_v17 = vld [vmem:[#allocation5 + $0x90] ss:$24 sps:$4 sm:$0xff]   ;;  %v9854_v19 = vld [vmem:[#allocation5 + $0xfc] ss:$24 sps:$4 sm:$0xff]  }
  0x62   :  { %791 = vmatprep.subr.bf16.mxu1 %v9836_v6  ;;  %v9859_v20 = vld [vmem:[#allocation5 + $0xc0] ss:$24 sps:$4 sm:$0xff]   ;;  %v9862_v22 = vld [vmem:[#allocation5 + $0xf4] ss:$24 sps:$4 sm:$0xff]   ;;  %v9865_v25 = vld [vmem:[#allocation5 + $0xf0] ss:$24 sps:$4 sm:$0xff]  }
  0x63   :  { %737 = vmatpush1.bf16.msra.mxu0 %v9841_v8  ;;  %v9858_v21 = vld [vmem:[#allocation5 + $0xf8] ss:$24 sps:$4 sm:$0xff]   ;;  %v9860_v23 = vld [vmem:[#allocation5 + $0x12c] ss:$24 sps:$4 sm:$0xff]   ;;  %v9864_v24 = vld [vmem:[#allocation5 + $0x128] ss:$24 sps:$4 sm:$0xff]  }
  0x64   :  { %738 = vmatprep.subr.bf16.mxu0 %v9844_v11  ;;  %v9868_v26 = vld [vmem:[#allocation5 + $0x124] ss:$24 sps:$4 sm:$0xff]   ;;  %v9871_v28 = vld [vmem:[#allocation5 + $0x120] ss:$24 sps:$4 sm:$0xff]   ;;  %v9874_v30 = vld [vmem:[#allocation5 + $0x154] ss:$24 sps:$4 sm:$0xff]  }
  0x65   :  { %792 = vmatpush1.bf16.msra.mxu1 %v9840_v9  ;;  %v9866_v27 = vld [vmem:[#allocation5 + $0x15c] ss:$24 sps:$4 sm:$0xff]   ;;  %v9870_v29 = vld [vmem:[#allocation5 + $0x158] ss:$24 sps:$4 sm:$0xff]   ;;  %v9872_v31 = vld [vmem:[#allocation5 + $0x18c] ss:$24 sps:$4 sm:$0xff]  }
  0x66   :  { %793 = vmatprep.subr.bf16.mxu1 %v9842_v10  ;;  %v9876_v32 = vld [vmem:[#allocation5 + $0x188] ss:$24 sps:$4 sm:$0xff]   ;;  %v9880_v34 = vld [vmem:[#allocation5 + $0x184] ss:$24 sps:$4 sm:$0xff]   ;;  %v9882_v37 = vld [vmem:[#allocation5 + $0x1b8] ss:$24 sps:$4 sm:$0xff]  }
  0x67   :  { %739 = vmatpush1.bf16.msra.mxu0 %v9847_v12  ;;  %v9877_v33 = vld [vmem:[#allocation5 + $0x150] ss:$24 sps:$4 sm:$0xff]   ;;  %v9878_v35 = vld [vmem:[#allocation5 + $0x1bc] ss:$24 sps:$4 sm:$0xff]   ;;  %v9883_v36 = vld [vmem:[#allocation5 + $0x180] ss:$24 sps:$4 sm:$0xff]  }
  0x68   :  { %740 = vmatprep.subr.bf16.mxu0 %v9850_v14  ;;  %v9886_v38 = vld [vmem:[#allocation5 + $0x1b4] ss:$24 sps:$4 sm:$0xff]   ;;  %v9888_v40 = vld [vmem:[#allocation5 + $0x1e8] ss:$24 sps:$4 sm:$0xff]   ;;  %v9892_v42 = vld [vmem:[#allocation5 + $0x1e4] ss:$24 sps:$4 sm:$0xff]  }
  0x69   :  { %794 = vmatpush1.bf16.msra.mxu1 %v9846_v13  ;;  %v9884_v39 = vld [vmem:[#allocation5 + $0x1ec] ss:$24 sps:$4 sm:$0xff]   ;;  %v9889_v41 = vld [vmem:[#allocation5 + $0x1b0] ss:$24 sps:$4 sm:$0xff]   ;;  %v9890_v43 = vld [vmem:[#allocation5 + $0x21c] ss:$24 sps:$4 sm:$0xff]  }
  0x6a   :  { %795 = vmatprep.subr.bf16.mxu1 %v9848_v15  ;;  %v115_v44 = vld [vmem:[#allocation2 + $0x8] sm:$0xff]  ;;  %v117_v45 = vld [vmem:[#allocation2 + $0x18] sm:$0xff]  ;;  %v114_v1 = vld [vmem:[#allocation2] sm:$0xff]  ;;  %s10514_s22 = smov 64   ;;  %s10515_s24 = smov 96   ;;  %vm10518_vm0 = vmmov 0  }
  0x6b   :  { %741 = vmatpush1.bf16.msra.mxu0 %v9853_v17  ;;  %v9895_v46 = vld [vmem:[#allocation5 + $0x1e0] ss:$24 sps:$4 sm:$0xff]   ;;  %v10658_v47 = vpack.c.bf16 %v117_v45, %v115_v44  ;;  %v9898_v49 = vld [vmem:[#allocation5 + $0x214] ss:$24 sps:$4 sm:$0xff]   ;;  %v9901_v51 = vld [vmem:[#allocation5 + $0x210] ss:$24 sps:$4 sm:$0xff]   ;;  %v224_v44 = vlaneseq }
  0x6c   :  { %742 = vmatprep.subr.bf16.mxu0 %v9856_v18  ;;  %v9894_v48 = vld [vmem:[#allocation5 + $0x218] ss:$24 sps:$4 sm:$0xff]   ;;  %v9896_v50 = vld [vmem:[#allocation5 + $0x24c] ss:$24 sps:$4 sm:$0xff]   ;;  %v9900_v52 = vld [vmem:[#allocation5 + $0x248] ss:$24 sps:$4 sm:$0xff]  }
  0x6d   :  { %796 = vmatpush1.bf16.msra.mxu1 %v9852_v16  ;;  %819 = vmatprep.mubr.bf16.mxu1 %v10658_v47  ;;  %v9904_v53 = vld [vmem:[#allocation5 + $0x244] ss:$24 sps:$4 sm:$0xff]   ;;  %v9907_v55 = vld [vmem:[#allocation5 + $0x240] ss:$24 sps:$4 sm:$0xff]   ;;  %v9910_v57 = vld [vmem:[#allocation5 + $0x274] ss:$24 sps:$4 sm:$0xff]  }
  0x6e   :  { %797 = vmatprep.subr.bf16.mxu1 %v9854_v19  ;;  %766 = vmatprep.mubr.bf16.mxu0 %v10658_v47  ;;  %v9902_v54 = vld [vmem:[#allocation5 + $0x27c] ss:$24 sps:$4 sm:$0xff]   ;;  %v9906_v56 = vld [vmem:[#allocation5 + $0x278] ss:$24 sps:$4 sm:$0xff]   ;;  %v9908_v58 = vld [vmem:[#allocation5 + $0x2ac] ss:$24 sps:$4 sm:$0xff]  }
  0x6f   :  { %743 = vmatpush1.bf16.msra.mxu0 %v9859_v20  ;;  %v9913_v59 = vld [vmem:[#allocation5 + $0x270] ss:$24 sps:$4 sm:$0xff]   ;;  %v9916_v61 = vld [vmem:[#allocation5 + $0x2a4] ss:$24 sps:$4 sm:$0xff]   ;;  %v9919_v0 = vld [vmem:[#allocation5 + $0x2a0] ss:$24 sps:$4 sm:$0xff]  }
  0x70   :  { %744 = vmatprep.subr.bf16.mxu0 %v9862_v22  ;;  %v9912_v60 = vld [vmem:[#allocation5 + $0x2a8] ss:$24 sps:$4 sm:$0xff]   ;;  %v9914_v62 = vld [vmem:[#allocation5 + $0x2dc] ss:$24 sps:$4 sm:$0xff]   ;;  %v9918_v63 = vld [vmem:[#allocation5 + $0x2d8] ss:$24 sps:$4 sm:$0xff]  }
  0x71   :  { %798 = vmatpush1.bf16.msra.mxu1 %v9858_v21  ;;  %v116_v2 = vld [vmem:[#allocation2 + $0x10] sm:$0xff]  ;;  %v119_v4 = vld [vmem:[#allocation2 + $0x28] sm:$0xff]  ;;  %v121_v5 = vld [vmem:[#allocation2 + $0x38] sm:$0xff]  ;;  %v10678_v45 = vshrl.u32 %v224_v44, 7  ;;  %vm4429_vm1 = vcmask 261120   ;;  %vm5182_vm2 = vcmask 130048  }
  0x72   :  { %799 = vmatprep.subr.bf16.mxu1 %v9860_v23  ;;  %v9920_v3 = vld [vmem:[#allocation5 + $0x2d4] ss:$24 sps:$4 sm:$0xff]   ;;  %v10662_v6 = vpack.c.bf16 %v116_v2, %v114_v1  ;;  %v9922_v7 = vld [vmem:[#allocation5 + $0x2d0] ss:$24 sps:$4 sm:$0xff]   ;;  %v10664_v8 = vpack.c.bf16 %v121_v5, %v119_v4  ;;  %v118_v10 = vld [vmem:[#allocation2 + $0x20] sm:$0xff]  ;;  %vm7459_vm3 = vcmask 523264  }
  0x73   :  { %745 = vmatpush1.bf16.msra.mxu0 %v9865_v25  ;;  %v9925_v9 = vld [vmem:[#allocation5 + $0x14] ss:$24 sps:$4 sm:$0xff]   ;;  %v9923_v12 = vld [vmem:[#allocation5 + $0x10] ss:$24 sps:$4 sm:$0xff]   ;;  %v9928_v13 = vld [vmem:[#allocation5 + $0x44] ss:$24 sps:$4 sm:$0xff]  }
  0x74   :  { %746 = vmatprep.subr.bf16.mxu0 %v9868_v26  ;;  %v120_v11 = vld [vmem:[#allocation2 + $0x30] sm:$0xff]  ;;  %v9926_v14 = vld [vmem:[#allocation5 + $0x40] ss:$24 sps:$4 sm:$0xff]   ;;  %v9934_v18 = vld [vmem:[#allocation5 + $0xa4] ss:$24 sps:$4 sm:$0xff]   ;;  %13169 = vst [vmem:[#allocation16_spill] sm:$0xff] %v10678_v45 }
  0x75   :  { %800 = vmatpush1.bf16.msra.mxu1 %v9864_v24  ;;  %v9931_v15 = vld [vmem:[#allocation5 + $0x74] ss:$24 sps:$4 sm:$0xff]   ;;  %v10669_v16 = vpack.c.bf16 %v120_v11, %v118_v10  ;;  %v9929_v17 = vld [vmem:[#allocation5 + $0x70] ss:$24 sps:$4 sm:$0xff]   ;;  %v9932_v19 = vld [vmem:[#allocation5 + $0xa0] ss:$24 sps:$4 sm:$0xff]  }
  0x76   :  { %801 = vmatprep.subr.bf16.mxu1 %v9866_v27  ;;  %v9937_v20 = vld [vmem:[#allocation5 + $0xd4] ss:$24 sps:$4 sm:$0xff]   ;;  %v9935_v21 = vld [vmem:[#allocation5 + $0xd0] ss:$24 sps:$4 sm:$0xff]   ;;  %v9940_v22 = vld [vmem:[#allocation5 + $0x104] ss:$24 sps:$4 sm:$0xff]  }
  0x77   :  { %747 = vmatpush1.bf16.msra.mxu0 %v9871_v28  ;;  %v9938_v23 = vld [vmem:[#allocation5 + $0x100] ss:$24 sps:$4 sm:$0xff]   ;;  %v9943_v24 = vld [vmem:[#allocation5 + $0x134] ss:$24 sps:$4 sm:$0xff]   ;;  %v9941_v25 = vld [vmem:[#allocation5 + $0x130] ss:$24 sps:$4 sm:$0xff]  }
  0x78   :  { %748 = vmatprep.subr.bf16.mxu0 %v9874_v30  ;;  %v9946_v26 = vld [vmem:[#allocation5 + $0x164] ss:$24 sps:$4 sm:$0xff]   ;;  %v9944_v27 = vld [vmem:[#allocation5 + $0x160] ss:$24 sps:$4 sm:$0xff]   ;;  %v9949_v28 = vld [vmem:[#allocation5 + $0x194] ss:$24 sps:$4 sm:$0xff]  }
  0x79   :  { %802 = vmatpush1.bf16.msra.mxu1 %v9870_v29  ;;  %v9947_v29 = vld [vmem:[#allocation5 + $0x190] ss:$24 sps:$4 sm:$0xff]   ;;  %v9952_v30 = vld [vmem:[#allocation5 + $0x1c4] ss:$24 sps:$4 sm:$0xff]   ;;  %v13132_v11 = vmov 0.0   ;;  %vm7464_vm4 = vcmask 785408  }
  0x7a   :  { %803 = vmatprep.subr.bf16.mxu1 %v9872_v31  ;;  %v9950_v31 = vld [vmem:[#allocation5 + $0x1c0] ss:$24 sps:$4 sm:$0xff]  }
  0x7b   :  { %749 = vmatpush1.bf16.msra.mxu0 %v9877_v33  ;;  %v9953_v33 = vld [vmem:[#allocation5 + $0x1f0] ss:$24 sps:$4 sm:$0xff]  }
  0x7c   :  { %750 = vmatprep.subr.bf16.mxu0 %v9880_v34  ;;  %v9958_v34 = vld [vmem:[#allocation5 + $0x224] ss:$24 sps:$4 sm:$0xff]  }
  0x7d   :  { %804 = vmatpush1.bf16.msra.mxu1 %v9876_v32  ;;  %v9955_v32 = vld [vmem:[#allocation5 + $0x1f4] ss:$24 sps:$4 sm:$0xff]  }
  0x7e   :  { %805 = vmatprep.subr.bf16.mxu1 %v9878_v35  ;;  %v9956_v35 = vld [vmem:[#allocation5 + $0x220] ss:$24 sps:$4 sm:$0xff]  }
  0x7f   :  { %751 = vmatpush1.bf16.msra.mxu0 %v9883_v36  ;;  %v9961_v36 = vld [vmem:[#allocation5 + $0x254] ss:$24 sps:$4 sm:$0xff]  }
  0x80   :  { %752 = vmatprep.subr.bf16.mxu0 %v9886_v38  ;;  %v9964_v38 = vld [vmem:[#allocation5 + $0x284] ss:$24 sps:$4 sm:$0xff]  }
  0x81   :  { %806 = vmatpush1.bf16.msra.mxu1 %v9882_v37  ;;  %v9959_v37 = vld [vmem:[#allocation5 + $0x250] ss:$24 sps:$4 sm:$0xff]  }
  0x82   :  { %807 = vmatprep.subr.bf16.mxu1 %v9884_v39  ;;  %v9962_v39 = vld [vmem:[#allocation5 + $0x280] ss:$24 sps:$4 sm:$0xff]  }
  0x83   :  { %753 = vmatpush1.bf16.msra.mxu0 %v9889_v41  ;;  %v9965_v41 = vld [vmem:[#allocation5 + $0x2b0] ss:$24 sps:$4 sm:$0xff]  }
  0x84   :  { %754 = vmatprep.subr.bf16.mxu0 %v9892_v42  ;;  %v9970_v42 = vld [vmem:[#allocation5 + $0x2e4] ss:$24 sps:$4 sm:$0xff]  }
  0x85   :  { %808 = vmatpush1.bf16.msra.mxu1 %v9888_v40  ;;  %v9967_v40 = vld [vmem:[#allocation5 + $0x2b4] ss:$24 sps:$4 sm:$0xff]  }
  0x86   :  { %809 = vmatprep.subr.bf16.mxu1 %v9890_v43  ;;  %v9968_v43 = vld [vmem:[#allocation5 + $0x2e0] ss:$24 sps:$4 sm:$0xff]  }
  0x87   :  { %755 = vmatpush1.bf16.msra.mxu0 %v9895_v46  ;;  %v13131_v46 = vsub.s32 2, %v10678_v45 }
  0x88   :  { %756 = vmatprep.subr.bf16.mxu0 %v9898_v49  ;;  %v10690_v49 = vsub.s32 0, %v10678_v45 }
  0x89   :  { %810 = vmatpush1.bf16.msra.mxu1 %v9894_v48 }
  0x8a   :  { %811 = vmatprep.subr.bf16.mxu1 %v9896_v50  ;;  %13170 = vst [vmem:[#allocation17_spill] sm:$0xff] %v10690_v49 }
  0x8b   :  { %757 = vmatpush1.bf16.msra.mxu0 %v9901_v51 }
  0x8c   :  { %758 = vmatprep.subr.bf16.mxu0 %v9904_v53 }
  0x8d   :  { %812 = vmatpush1.bf16.msra.mxu1 %v9900_v52 }
  0x8e   :  { %813 = vmatprep.subr.bf16.mxu1 %v9902_v54 }
  0x8f   :  { %759 = vmatpush1.bf16.msra.mxu0 %v9907_v55 }
  0x90   :  { %760 = vmatprep.subr.bf16.mxu0 %v9910_v57 }
  0x91   :  { %814 = vmatpush1.bf16.msra.mxu1 %v9906_v56 }
  0x92   :  { %815 = vmatprep.subr.bf16.mxu1 %v9908_v58 }
  0x93   :  { %761 = vmatpush1.bf16.msra.mxu0 %v9913_v59 }
  0x94   :  { %762 = vmatprep.subr.bf16.mxu0 %v9916_v61 }
  0x95   :  { %816 = vmatpush1.bf16.msra.mxu1 %v9912_v60 }
  0x96   :  { %817 = vmatprep.subr.bf16.mxu1 %v9914_v62 }
  0x97   :  { %763 = vmatpush1.bf16.msra.mxu0 %v9919_v0 }
  0x98   :  { %764 = vmatprep.subr.bf16.mxu0 %v9920_v3 }
  0x99   :  { %818 = vmatpush1.bf16.msra.mxu1 %v9918_v63 }
  0x9a   :  { %9564 = vmatprep.subr.bf16.mxu1 %v13132_v11 }
  0x9b   :  { %765 = vmatpush1.bf16.msra.mxu0 %v9922_v7 }
  0x9c   :  { %820 = vmatmul.mubr.bf16.vlgmr.msra.gmra.mrb[0].mxu1 %v10662_v6  ;;  %840 = vmatprep.subr.bf16.mxu0 %v9925_v9 }
  0x9d   :  { %829 = vmatprep.mubr.bf16.mxu1 %v10664_v8 }
  0x9e   :  { %767 = vmatmul.mubr.bf16.vlgmr.msra.gmra.mrb[0].mxu0 %v10662_v6 }
  0x9f   :  { %776 = vmatprep.mubr.bf16.mxu0 %v10664_v8  ;;  %841 = vmatpush1.bf16.msra.mxu0 %v9923_v12  ;;  %v13130_v12 = vsub.s32 3, %v10678_v45 }
  0xa0   :  { %842 = vmatprep.subr.bf16.mxu0 %v9928_v13 }
  0xa3   :  { %843 = vmatpush1.bf16.msra.mxu0 %v9926_v14 }
  0xa4   :  { %830 = vmatmul.mubr.bf16.gmra.mrb[4].mxu1 %v10669_v16  ;;  %844 = vmatprep.subr.bf16.mxu0 %v9931_v15 }
  0xa5   :  { %9566 = vmatprep.mubr.msk.bf16.mxu1 %vm10518_vm0, %v13132_v11 }
  0xa6   :  { %777 = vmatmul.mubr.bf16.gmra.mrb[4].mxu0 %v10669_v16 }
  0xa7   :  { %845 = vmatpush1.bf16.msra.mxu0 %v9929_v17  ;;  %872 = vmatprep.mubr.bf16.mxu0 %v10658_v47  ;;  %v10684_v47 = vld [vmem:[%s13118_s2] sm:$0x3f]  ;;  %s10516_s2 = smov 32  }
  0xa8   :  { %846 = vmatprep.subr.bf16.mxu0 %v9934_v18  ;;  %v235_v48 = vrot.slane %v10684_v47, %v13131_v46  ;;  %v227_v55 = vrot.slane %v10684_v47, %v10690_v49  ;;  %v239_v13 = vrot.slane %v10684_v47, %v13130_v12 }
  0xab   :  { %847 = vmatpush1.bf16.msra.mxu0 %v9932_v19 }
  0xac   :  { %848 = vmatprep.subr.bf16.mxu0 %v9937_v20 }
  0xaf   :  { %849 = vmatpush1.bf16.msra.mxu0 %v9935_v21 }
  0xb0   :  { %850 = vmatprep.subr.bf16.mxu0 %v9940_v22 }
  0xb3   :  { %851 = vmatpush1.bf16.msra.mxu0 %v9938_v23 }
  0xb4   :  { %852 = vmatprep.subr.bf16.mxu0 %v9943_v24 }
  0xb7   :  { %853 = vmatpush1.bf16.msra.mxu0 %v9941_v25  ;;  %v242_v25 = vsub.s32 4, %v10678_v45 }
  0xb8   :  { %854 = vmatprep.subr.bf16.mxu0 %v9946_v26 }
  0xb9   :  { %v10835_v26 = vrot.slane %v10684_v47, %v242_v25 }
  0xbb   :  { %855 = vmatpush1.bf16.msra.mxu0 %v9944_v27  ;;  %13176 = vst [vmem:[#allocation23_spill] sm:$0xff] %v10835_v26 }
  0xbc   :  { %856 = vmatprep.subr.bf16.mxu0 %v9949_v28  ;;  %v246_v28 = vsub.s32 5, %v10678_v45 }
  0xbf   :  { %857 = vmatpush1.bf16.msra.mxu0 %v9947_v29 }
  0xc0   :  { %858 = vmatprep.subr.bf16.mxu0 %v9952_v30  ;;  %v10846_v30 = vrot.slane %v10684_v47, %v246_v28 }
  0xc2   :  { %13178 = vst [vmem:[#allocation25_spill] sm:$0xff] %v10846_v30 }
  0xc3   :  { %859 = vmatpush1.bf16.msra.mxu0 %v9950_v31 }
  0xc4   :  { %860 = vmatprep.subr.bf16.mxu0 %v9955_v32 }
  0xc7   :  { %861 = vmatpush1.bf16.msra.mxu0 %v9953_v33 }
  0xc8   :  { %862 = vmatprep.subr.bf16.mxu0 %v9958_v34  ;;  %v10519_v34 = vmov 1983009808  }
  0xcb   :  { %863 = vmatpush1.bf16.msra.mxu0 %v9956_v35  ;;  %v976_v35 = vunpack.c.l.s4 %v10519_v34 }
  0xcc   :  { %864 = vmatprep.subr.bf16.mxu0 %v9961_v36  ;;  %v10520_v36 = vmov 1934713408  }
  0xcf   :  { %865 = vmatpush1.bf16.msra.mxu0 %v9959_v37  ;;  %v1040_v37 = vunpack.c.l.s4 %v10520_v36 }
  0xd0   :  { %866 = vmatprep.subr.bf16.mxu0 %v9964_v38  ;;  %v977_v38 = vunpack.c.0.s8 %v976_v35 }
  0xd3   :  { %867 = vmatpush1.bf16.msra.mxu0 %v9962_v39 }
  0xd4   :  { %868 = vmatprep.subr.bf16.mxu0 %v9967_v40 }
  0xd7   :  { %869 = vmatpush1.bf16.msra.mxu0 %v9965_v41  ;;  %v1041_v41 = vunpack.c.0.s8 %v1040_v37 }
  0xd8   :  { %870 = vmatprep.subr.bf16.mxu0 %v9970_v42  ;;  %v10873_v42 = vsub.s32 %v977_v38, %v10678_v45 }
  0xdb   :  { %871 = vmatpush1.bf16.msra.mxu0 %v9968_v43 }
  0xdc   :  { %9540 = vmatprep.subr.bf16.mxu0 %v13132_v11 }
  0xde   :  { %873 = vmatmul.mubr.bf16.vlgmr.msra.gmra.mrb[8].mxu0 %v10662_v6 }
  0xdf   :  { %882 = vmatprep.mubr.bf16.mxu0 %v10664_v8 }
  0xe6   :  { %883 = vmatmul.mubr.bf16.gmra.mrb[12].mxu0 %v10669_v16  ;;  %v10773_v16 = vsub.s32 1, %v10678_v45 }
  0xe7   :  { %9542 = vmatprep.mubr.msk.bf16.mxu0 %vm10518_vm0, %v13132_v11 }
  0xe8   :  { %13171 = vst [vmem:[#allocation18_spill] sm:$0xff] %v10773_v16  ;;  %v231_v17 = vrot.slane %v10684_v47, %v10773_v16 }
 0x16f   :  { %v821_v50 = vpop.f32.mrb[0].mxu1 }
 0x170   :  { %v10692_v51 = vadd.f32 %v821_v50, %v235_v48  ;;  %v823_v52 = vpop.f32.mrb[1].mxu1 }
 0x171   :  { %v825_v53 = vpop.f32.mrb[2].mxu1  ;;  %v768_v56 = vpop.f32.mrb[0].mxu0  ;;  %v10764_v14 = vadd.f32 %v823_v52, %v239_v13 }
 0x172   :  { %v827_v54 = vpop.f32.mrb[3].mxu1  ;;  %2077 = vrot.lane.b32.xlu1 %v10692_v51, %s10514_s22  ;;  %2065 = vrot.lane.b32.xlu0 %v10692_v51, %s10515_s24  ;;  %v770_v57 = vpop.f32.mrb[1].mxu0  ;;  %v10700_v58 = vadd.f32 %v825_v53, %v235_v48  ;;  %v10702_v61 = vadd.f32 %v768_v56, %v227_v55  ;;  %v10878_v53 = vsub.s32 %v1041_v41, %v10678_v45 }
 0x173   :  { %v772_v59 = vpop.f32.mrb[2].mxu0  ;;  %v10766_v15 = vadd.f32 %v827_v54, %v239_v13  ;;  %v10789_v18 = vadd.f32 %v770_v57, %v231_v17 }
 0x174   :  { %v774_v60 = vpop.f32.mrb[3].mxu0  ;;  %v10712_v4 = vadd.f32 %v772_v59, %v227_v55 }
 0x175   :  { %v10791_v19 = vadd.f32 %v774_v60, %v231_v17 }
 0x176   :  { %2079 = vrot.lane.b32.xlu1 %v10700_v58, %s10514_s22  ;;  %2089 = vrot.lane.b32.xlu0 %v10692_v51, %s10516_s2 }
 0x177   :  { %v831_v62 = vpop.f32.mrb[4].mxu1 }
 0x178   :  { %v833_v63 = vpop.f32.mrb[5].mxu1  ;;  %v10726_v7 = vadd.f32 %v831_v62, %v235_v48 }
 0x179   :  { %v835_v0 = vpop.f32.mrb[6].mxu1  ;;  %v778_v2 = vpop.f32.mrb[4].mxu0  ;;  %v10805_v20 = vadd.f32 %v833_v63, %v239_v13 }
 0x17a   :  { %2091 = vrot.lane.b32.xlu1 %v10700_v58, %s10516_s2  ;;  %897 = vrot.lane.b32.xlu0 %v10702_v61, %s10515_s24  ;;  %v837_v1 = vpop.f32.mrb[7].mxu1  ;;  %v780_v3 = vpop.f32.mrb[5].mxu0  ;;  %v10728_v8 = vadd.f32 %v835_v0, %v235_v48  ;;  %v10742_v9 = vadd.f32 %v778_v2, %v227_v55 }
 0x17b   :  { %v782_v5 = vpop.f32.mrb[6].mxu0  ;;  %13172 = vst [vmem:[#allocation19_spill] sm:$0xff] %v10805_v20  ;;  %v10807_v21 = vadd.f32 %v837_v1, %v239_v13  ;;  %v10821_v23 = vadd.f32 %v780_v3, %v231_v17 }
 0x17c   :  { %v784_v6 = vpop.f32.mrb[7].mxu0  ;;  %v10744_v10 = vadd.f32 %v782_v5, %v227_v55 }
 0x17d   :  { %13173 = vst [vmem:[#allocation20_spill] sm:$0xff] %v10807_v21  ;;  %13174 = vst [vmem:[#allocation21_spill] sm:$0xff] %v10821_v23  ;;  %v10823_v24 = vadd.f32 %v784_v6, %v231_v17 }
 0x17e   :  { %899 = vrot.lane.b32.xlu1 %v10712_v4, %s10515_s24  ;;  %909 = vrot.lane.b32.xlu0 %v10702_v61, %s10514_s22 }
 0x17f   :  { %13175 = vst [vmem:[#allocation22_spill] sm:$0xff] %v10823_v24 }
 0x182   :  { %911 = vrot.lane.b32.xlu1 %v10712_v4, %s10514_s22  ;;  %921 = vrot.lane.b32.xlu0 %v10702_v61, %s10516_s2 }
 0x186   :  { %923 = vrot.lane.b32.xlu1 %v10712_v4, %s10516_s2  ;;  %2067 = vrot.lane.b32.xlu0 %v10700_v58, %s10515_s24 }
 0x18a   :  { %2071 = vrot.lane.b32.xlu1 %v10728_v8, %s10515_s24  ;;  %2069 = vrot.lane.b32.xlu0 %v10726_v7, %s10515_s24 }
 0x18e   :  { %2083 = vrot.lane.b32.xlu1 %v10728_v8, %s10514_s22  ;;  %2081 = vrot.lane.b32.xlu0 %v10726_v7, %s10514_s22 }
 0x192   :  { %2095 = vrot.lane.b32.xlu1 %v10728_v8, %s10516_s2  ;;  %2093 = vrot.lane.b32.xlu0 %v10726_v7, %s10516_s2 }
 0x196   :  { %903 = vrot.lane.b32.xlu1 %v10744_v10, %s10515_s24  ;;  %901 = vrot.lane.b32.xlu0 %v10742_v9, %s10515_s24 }
 0x19a   :  { %915 = vrot.lane.b32.xlu1 %v10744_v10, %s10514_s22  ;;  %913 = vrot.lane.b32.xlu0 %v10742_v9, %s10514_s22 }
 0x19e   :  { %927 = vrot.lane.b32.xlu1 %v10744_v10, %s10516_s2  ;;  %925 = vrot.lane.b32.xlu0 %v10742_v9, %s10516_s2 }
 0x1a2   :  { %2107 = vrot.lane.b32.xlu1 %v10766_v15, %s10515_s24  ;;  %2105 = vrot.lane.b32.xlu0 %v10764_v14, %s10515_s24 }
 0x1a6   :  { %2119 = vrot.lane.b32.xlu1 %v10766_v15, %s10514_s22  ;;  %2117 = vrot.lane.b32.xlu0 %v10764_v14, %s10514_s22 }
 0x1aa   :  { %2131 = vrot.lane.b32.xlu1 %v10766_v15, %s10516_s2  ;;  %2129 = vrot.lane.b32.xlu0 %v10764_v14, %s10516_s2 }
 0x1ae   :  { %939 = vrot.lane.b32.xlu1 %v10791_v19, %s10515_s24  ;;  %937 = vrot.lane.b32.xlu0 %v10789_v18, %s10515_s24 }
 0x1b1   :  { %v874_v22 = vpop.f32.mrb[8].mxu0 }
 0x1b2   :  { %951 = vrot.lane.b32.xlu1 %v10791_v19, %s10514_s22  ;;  %949 = vrot.lane.b32.xlu0 %v10789_v18, %s10514_s22  ;;  %v10842_v27 = vadd.f32 %v874_v22, %v10835_v26  ;;  %v876_v29 = vpop.f32.mrb[9].mxu0 }
 0x1b3   :  { %v10853_v31 = vadd.f32 %v876_v29, %v10846_v30  ;;  %v878_v32 = vpop.f32.mrb[10].mxu0 }
 0x1b4   :  { %13177 = vst [vmem:[#allocation24_spill] sm:$0xff] %v10842_v27  ;;  %v10860_v33 = vadd.f32 %v878_v32, %v10835_v26  ;;  %v880_v59 = vpop.f32.mrb[11].mxu0 }
 0x1b5   :  { %13179 = vst [vmem:[#allocation26_spill] sm:$0xff] %v10853_v31 }
 0x1b6   :  { %963 = vrot.lane.b32.xlu1 %v10791_v19, %s10516_s2  ;;  %961 = vrot.lane.b32.xlu0 %v10789_v18, %s10516_s2  ;;  %13180 = vst [vmem:[#allocation27_spill] sm:$0xff] %v10860_v33 }
 0x1ba   :  { %2111 = vrot.lane.b32.xlu1 %v10807_v21, %s10515_s24  ;;  %2109 = vrot.lane.b32.xlu0 %v10805_v20, %s10515_s24 }
 0x1be   :  { %2123 = vrot.lane.b32.xlu1 %v10807_v21, %s10514_s22  ;;  %2121 = vrot.lane.b32.xlu0 %v10805_v20, %s10514_s22 }
 0x1c2   :  { %2135 = vrot.lane.b32.xlu1 %v10807_v21, %s10516_s2  ;;  %2133 = vrot.lane.b32.xlu0 %v10805_v20, %s10516_s2 }
 0x1c6   :  { %943 = vrot.lane.b32.xlu1 %v10823_v24, %s10515_s24  ;;  %941 = vrot.lane.b32.xlu0 %v10821_v23, %s10515_s24 }
 0x1ca   :  { %955 = vrot.lane.b32.xlu1 %v10823_v24, %s10514_s22  ;;  %953 = vrot.lane.b32.xlu0 %v10821_v23, %s10514_s22 }
 0x1ce   :  { %967 = vrot.lane.b32.xlu1 %v10823_v24, %s10516_s2  ;;  %965 = vrot.lane.b32.xlu0 %v10821_v23, %s10516_s2 }
 0x1d2   :  { %3233 = vrot.lane.b32.xlu1 %v10842_v27, %s10515_s24  ;;  %3257 = vrot.lane.b32.xlu0 %v10842_v27, %s10516_s2 }
 0x1d6   :  { %3245 = vrot.lane.b32.xlu1 %v10842_v27, %s10514_s22  ;;  %3297 = vrot.lane.b32.xlu0 %v10853_v31, %s10516_s2 }
 0x1da   :  { %3273 = vrot.lane.b32.xlu1 %v10853_v31, %s10515_s24  ;;  %3235 = vrot.lane.b32.xlu0 %v10860_v33, %s10515_s24 }
 0x1de   :  { %3285 = vrot.lane.b32.xlu1 %v10853_v31, %s10514_s22 }
 0x1e2   :  { %3247 = vrot.lane.b32.xlu1 %v10860_v33, %s10514_s22 }
 0x1e4   :  { %v2078_v39 = vpop.permute.xlu1 %2077  ;;  %v2066_v40 = vpop.permute.xlu0 %2065 }
 0x1e5   :  { %v2141_v43 = vcombine.low %v10692_v51, %v2078_v39  ;;  %v2142_v44 = vcombine.high %v10692_v51, %v2078_v39  ;;  %v10887_v51 = vadd.f32 %v880_v59, %v10846_v30 }
 0x1e6   :  { %3259 = vrot.lane.b32.xlu1 %v10860_v33, %s10516_s2 }
 0x1e7   :  { %v2149_v54 = vrot.slane %v2141_v43, %v10873_v42  ;;  %v2156_v55 = vrot.slane %v2142_v44, %v10873_v42  ;;  %13181 = vst [vmem:[#allocation28_spill] sm:$0xff] %v10887_v51  ;;  %3275 = vrot.lane.b32.xlu0 %v10887_v51, %s10515_s24 }
 0x1e8   :  { %v2080_v47 = vpop.permute.xlu1 %2079  ;;  %v2090_v48 = vpop.permute.xlu0 %2089 }
 0x1e9   :  { %v2157_v50 = vcombine.low %v2066_v40, %v2090_v48  ;;  %v2158_v52 = vcombine.high %v2066_v40, %v2090_v48  ;;  %v2277_v34 = vcombine.low %v10700_v58, %v2080_v47  ;;  %v2278_v35 = vcombine.high %v10700_v58, %v2080_v47 }
 0x1ea   :  { %3287 = vrot.lane.b32.xlu1 %v10887_v51, %s10514_s22 }
 0x1eb   :  { %v2165_v56 = vrot.slane %v2157_v50, %v10873_v42  ;;  %v2172_v57 = vrot.slane %v2158_v52, %v10873_v42  ;;  %v10920_v50 = vrot.slane %v2278_v35, %v10873_v42 }
 0x1ec   :  { %v10884_v60 = vpop.permute.xlu1 %2091  ;;  %v898_v62 = vpop.permute.xlu0 %897 }
 0x1ed   :  { %v2205_v63 = vcombine.low %v2149_v54, %v2165_v56  ;;  %v2206_v0 = vcombine.high %v2149_v54, %v2165_v56  ;;  %v2221_v1 = vcombine.low %v2156_v55, %v2172_v57  ;;  %v2222_v2 = vcombine.high %v2156_v55, %v2172_v57 }
 0x1ee   :  { %3299 = vrot.lane.b32.xlu1 %v10887_v51, %s10516_s2 }
 0x1ef   :  { %v2213_v3 = vrot.slane %v2205_v63, %v10878_v53  ;;  %v2220_v5 = vrot.slane %v2206_v0, %v10878_v53  ;;  %v2229_v6 = vrot.slane %v2221_v1, %v10878_v53  ;;  %v2236_v13 = vrot.slane %v2222_v2, %v10878_v53 }
 0x1f0   :  { %v900_v17 = vpop.permute.xlu1 %899  ;;  %v910_v22 = vpop.permute.xlu0 %909 }
 0x1f1   :  { %v9188_v25 = vcombine.low %v2213_v3, %v2220_v5  ;;  %v9190_v28 = vcombine.high %v2213_v3, %v2220_v5  ;;  %v9192_v29 = vcombine.low %v2229_v6, %v2236_v13  ;;  %v9194_v32 = vcombine.high %v2229_v6, %v2236_v13 }
 0x1f2   :  { %v973_v36 = vcombine.low %v10702_v61, %v910_v22  ;;  %v974_v37 = vcombine.high %v10702_v61, %v910_v22  ;;  %v10917_v61 = vrot.slane %v2277_v34, %v10873_v42 }
 0x1f3   :  { %v10904_v38 = vrot.slane %v9188_v25, %v10873_v42  ;;  %v10907_v39 = vrot.slane %v9190_v28, %v10873_v42  ;;  %v10910_v43 = vrot.slane %v9192_v29, %v10873_v42  ;;  %v10913_v58 = vrot.slane %v9194_v32, %v10873_v42 }
 0x1f4   :  { %v912_v40 = vpop.permute.xlu1 %911  ;;  %v922_v41 = vpop.permute.xlu0 %921  ;;  %v981_v55 = vrot.slane %v973_v36, %v10873_v42  ;;  %v988_v56 = vrot.slane %v974_v37, %v10873_v42 }
 0x1f5   :  { %v1109_v44 = vcombine.low %v10712_v4, %v912_v40  ;;  %v989_v47 = vcombine.low %v898_v62, %v922_v41  ;;  %v990_v48 = vcombine.high %v898_v62, %v922_v41  ;;  %v1110_v52 = vcombine.high %v10712_v4, %v912_v40 }
 0x1f6   :  { %v2749_v54 = vcombine.low %v10904_v38, %v10907_v39  ;;  %v2781_v1 = vcombine.low %v10910_v43, %v10913_v58  ;;  %v2750_v4 = vcombine.high %v10904_v38, %v10907_v39  ;;  %v2782_v2 = vcombine.high %v10910_v43, %v10913_v58 }
 0x1f7   :  { %v997_v57 = vrot.slane %v989_v47, %v10873_v42  ;;  %v1004_v59 = vrot.slane %v990_v48, %v10873_v42  ;;  %v1117_v62 = vrot.slane %v1109_v44, %v10873_v42  ;;  %v1124_v22 = vrot.slane %v1110_v52, %v10873_v42 }
 0x1f8   :  { %v924_v63 = vpop.permute.xlu1 %923  ;;  %v2068_v0 = vpop.permute.xlu0 %2067  ;;  %v10938_v29 = vrot.slane %v2749_v54, %v10878_v53 }
 0x1f9   :  { %v1037_v3 = vcombine.low %v981_v55, %v997_v57  ;;  %v1038_v5 = vcombine.high %v981_v55, %v997_v57  ;;  %v1053_v6 = vcombine.low %v988_v56, %v1004_v59  ;;  %v1054_v13 = vcombine.high %v988_v56, %v1004_v59  ;;  %v10952_v54 = vpop.f32.mrb[12].mxu0 }
 0x1fa   :  { %v1125_v25 = vcombine.low %v900_v17, %v924_v63  ;;  %v1126_v28 = vcombine.high %v900_v17, %v924_v63  ;;  %v2293_v39 = vcombine.low %v2068_v0, %v10884_v60  ;;  %v2294_v40 = vcombine.high %v2068_v0, %v10884_v60  ;;  %13182 = vst [vmem:[#allocation29_spill] sm:$0xff] %v10952_v54 }
 0x1fb   :  { %v1045_v32 = vrot.slane %v1037_v3, %v10878_v53  ;;  %v1052_v34 = vrot.slane %v1038_v5, %v10878_v53  ;;  %v1061_v35 = vrot.slane %v1053_v6, %v10878_v53  ;;  %v1068_v36 = vrot.slane %v1054_v13, %v10878_v53 }
 0x1fc   :  { %v1133_v37 = vrot.slane %v1125_v25, %v10873_v42  ;;  %v1140_v38 = vrot.slane %v1126_v28, %v10873_v42  ;;  %v10948_v17 = vpop.permute.xlu1 %2071  ;;  %v10950_v41 = vpop.permute.xlu0 %2069 }
 0x1fd   :  { %v9156_v44 = vcombine.low %v1045_v32, %v1052_v34  ;;  %v9158_v47 = vcombine.high %v1045_v32, %v1052_v34  ;;  %v9160_v48 = vcombine.low %v1061_v35, %v1068_v36  ;;  %v9162_v52 = vcombine.high %v1061_v35, %v1068_v36 }
 0x1fe   :  { %v1173_v55 = vcombine.low %v1117_v62, %v1133_v37  ;;  %v1174_v56 = vcombine.high %v1117_v62, %v1133_v37  ;;  %v1189_v57 = vcombine.low %v1124_v22, %v1140_v38  ;;  %v1190_v59 = vcombine.high %v1124_v22, %v1140_v38 }
 0x1ff   :  { %v1525_v63 = vrot.slane %v9156_v44, %v10873_v42  ;;  %v1541_v3 = vrot.slane %v9158_v47, %v10873_v42  ;;  %v1557_v60 = vrot.slane %v9160_v48, %v10873_v42  ;;  %v1573_v0 = vrot.slane %v9162_v52, %v10873_v42 }
 0x200   :  { %v1181_v5 = vrot.slane %v1173_v55, %v10878_v53  ;;  %v1188_v6 = vrot.slane %v1174_v56, %v10878_v53  ;;  %v1197_v13 = vrot.slane %v1189_v57, %v10878_v53  ;;  %v1204_v25 = vrot.slane %v1190_v59, %v10878_v53  ;;  %v2084_v28 = vpop.permute.xlu1 %2083  ;;  %v2082_v62 = vpop.permute.xlu0 %2081 }
 0x201   :  { %v2301_v22 = vrot.slane %v2293_v39, %v10873_v42  ;;  %v2308_v32 = vrot.slane %v2294_v40, %v10873_v42  ;;  %v10965_v34 = vrot.slane %v2781_v1, %v10878_v53  ;;  %v10968_v35 = vrot.slane %v2750_v4, %v10878_v53 }
 0x202   :  { %v9164_v36 = vcombine.low %v1181_v5, %v1188_v6  ;;  %v9166_v37 = vcombine.high %v1181_v5, %v1188_v6  ;;  %v9168_v38 = vcombine.low %v1197_v13, %v1204_v25  ;;  %v9170_v44 = vcombine.high %v1197_v13, %v1204_v25 }
 0x203   :  { %v1581_v47 = vcombine.low %v1525_v63, %v1541_v3  ;;  %v1582_v48 = vcombine.high %v1525_v63, %v1541_v3  ;;  %v1613_v52 = vcombine.low %v1557_v60, %v1573_v0  ;;  %v1614_v55 = vcombine.high %v1557_v60, %v1573_v0  ;;  %v10980_v3 = vpop.f32.mrb[13].mxu0 }
 0x204   :  { %v1661_v56 = vrot.slane %v9164_v36, %v10873_v42  ;;  %v1677_v39 = vrot.slane %v9166_v37, %v10873_v42  ;;  %v10973_v40 = vrot.slane %v9168_v38, %v10873_v42  ;;  %v1709_v1 = vrot.slane %v9170_v44, %v10873_v42  ;;  %v2096_v57 = vpop.permute.xlu1 %2095  ;;  %v2094_v4 = vpop.permute.xlu0 %2093  ;;  %13183 = vst [vmem:[#allocation30_spill] sm:$0xff] %v10980_v3 }
 0x205   :  { %v2341_v59 = vcombine.low %v10917_v61, %v2301_v22  ;;  %v2342_v5 = vcombine.high %v10917_v61, %v2301_v22  ;;  %v2357_v6 = vcombine.low %v10920_v50, %v2308_v32  ;;  %v2358_v63 = vcombine.high %v10920_v50, %v2308_v32  ;;  %v11041_v12 = vpop.f32.mrb[14].mxu0 }
 0x206   :  { %v1717_v60 = vcombine.low %v1661_v56, %v1677_v39  ;;  %v1718_v0 = vcombine.high %v1661_v56, %v1677_v39  ;;  %v1749_v13 = vcombine.low %v10973_v40, %v1709_v1  ;;  %v10987_v25 = vrot.slane %v2782_v2, %v10878_v53  ;;  %13184 = vst [vmem:[#allocation31_spill] sm:$0xff] %v11041_v12 }
 0x207   :  { %v10990_v36 = vrot.slane %v1581_v47, %v10878_v53  ;;  %v10993_v61 = vrot.slane %v1582_v48, %v10878_v53  ;;  %v10996_v50 = vrot.slane %v1613_v52, %v10878_v53  ;;  %v10999_v22 = vrot.slane %v1614_v55, %v10878_v53 }
 0x208   :  { %v1750_v32 = vcombine.high %v10973_v40, %v1709_v1  ;;  %v11003_v37 = vrot.slane %v2341_v59, %v10878_v53  ;;  %v11006_v43 = vrot.slane %v2342_v5, %v10878_v53  ;;  %v11009_v58 = vrot.slane %v2357_v6, %v10878_v53  ;;  %v11011_v2 = vpop.permute.xlu1 %903  ;;  %v11013_v38 = vpop.permute.xlu0 %901 }
 0x209   :  { %v11016_v44 = vrot.slane %v1717_v60, %v10878_v53  ;;  %v11019_v47 = vrot.slane %v1718_v0, %v10878_v53  ;;  %v11022_v48 = vrot.slane %v1749_v13, %v10878_v53  ;;  %v2372_v52 = vrot.slane %v2358_v63, %v10878_v53 }
 0x20a   :  { %v2549_v55 = vcombine.low %v10728_v8, %v2084_v28  ;;  %v2550_v56 = vcombine.high %v10728_v8, %v2084_v28  ;;  %v2413_v39 = vcombine.low %v10726_v7, %v2082_v62  ;;  %v2414_v40 = vcombine.high %v10726_v7, %v2082_v62 }
 0x20b   :  { %v2565_v1 = vcombine.low %v10948_v17, %v2096_v57  ;;  %v2566_v59 = vcombine.high %v10948_v17, %v2096_v57  ;;  %v2429_v5 = vcombine.low %v10950_v41, %v2094_v4  ;;  %v2430_v6 = vcombine.high %v10950_v41, %v2094_v4 }
 0x20c   :  { %v2557_v60 = vrot.slane %v2549_v55, %v10873_v42  ;;  %v2564_v63 = vrot.slane %v2550_v56, %v10873_v42  ;;  %v2421_v0 = vrot.slane %v2413_v39, %v10873_v42  ;;  %v2428_v8 = vrot.slane %v2414_v40, %v10873_v42  ;;  %v916_v28 = vpop.permute.xlu1 %915  ;;  %v914_v13 = vpop.permute.xlu0 %913 }
 0x20d   :  { %v2573_v7 = vrot.slane %v2565_v1, %v10873_v42  ;;  %v2580_v62 = vrot.slane %v2566_v59, %v10873_v42  ;;  %v2437_v17 = vrot.slane %v2429_v5, %v10873_v42  ;;  %v2444_v57 = vrot.slane %v2430_v6, %v10873_v42 }
 0x20e   :  { %v1381_v41 = vcombine.low %v10744_v10, %v916_v28  ;;  %v1382_v4 = vcombine.high %v10744_v10, %v916_v28  ;;  %v1245_v55 = vcombine.low %v10742_v9, %v914_v13  ;;  %v1246_v56 = vcombine.high %v10742_v9, %v914_v13 }
 0x20f   :  { %v2613_v39 = vcombine.low %v2557_v60, %v2573_v7  ;;  %v2614_v40 = vcombine.high %v2557_v60, %v2573_v7  ;;  %v2629_v46 = vcombine.low %v2564_v63, %v2580_v62  ;;  %v2630_v1 = vcombine.high %v2564_v63, %v2580_v62 }
 0x210   :  { %v2477_v11 = vcombine.low %v2421_v0, %v2437_v17  ;;  %v2478_v59 = vcombine.high %v2421_v0, %v2437_v17  ;;  %v2493_v45 = vcombine.low %v2428_v8, %v2444_v57  ;;  %v2494_v5 = vcombine.high %v2428_v8, %v2444_v57  ;;  %v928_v8 = vpop.permute.xlu1 %927  ;;  %v926_v57 = vpop.permute.xlu0 %925 }
 0x211   :  { %v11048_v6 = vrot.slane %v2613_v39, %v10878_v53  ;;  %v11051_v16 = vrot.slane %v2614_v40, %v10878_v53  ;;  %v11054_v10 = vrot.slane %v2629_v46, %v10878_v53  ;;  %v11057_v28 = vrot.slane %v2630_v1, %v10878_v53 }
 0x212   :  { %v11060_v9 = vrot.slane %v1750_v32, %v10878_v53  ;;  %v9196_v60 = vcombine.low %v11003_v37, %v11006_v43  ;;  %v9198_v63 = vcombine.high %v11003_v37, %v11006_v43  ;;  %v9200_v0 = vcombine.low %v11009_v58, %v2372_v52 }
 0x213   :  { %v9202_v13 = vcombine.high %v11009_v58, %v2372_v52  ;;  %v11069_v46 = vrot.slane %v2477_v11, %v10878_v53  ;;  %v11072_v7 = vrot.slane %v2478_v59, %v10878_v53  ;;  %v11075_v32 = vrot.slane %v2493_v45, %v10878_v53 }
 0x214   :  { %v11084_v58 = vrot.slane %v2494_v5, %v10878_v53  ;;  %v1389_v11 = vrot.slane %v1381_v41, %v10873_v42  ;;  %v1396_v52 = vrot.slane %v1382_v4, %v10873_v42  ;;  %v1253_v17 = vrot.slane %v1245_v55, %v10873_v42  ;;  %v11104_v62 = vpop.permute.xlu1 %2107  ;;  %v11132_v27 = vpop.permute.xlu0 %2105 }
 0x215   :  { %v11090_v45 = vrot.slane %v1246_v56, %v10873_v42  ;;  %v2813_v39 = vcombine.low %v10938_v29, %v10965_v34  ;;  %v2829_v40 = vrot.slane %v9196_v60, %v10873_v42  ;;  %v2845_v1 = vrot.slane %v9198_v63, %v10873_v42 }
 0x216   :  { %v2861_v59 = vrot.slane %v9200_v0, %v10873_v42  ;;  %v2877_v41 = vrot.slane %v9202_v13, %v10873_v42  ;;  %v2815_v4 = vcombine.low %v10968_v35, %v10987_v25  ;;  %v1397_v55 = vcombine.low %v11011_v2, %v928_v8 }
 0x217   :  { %v1398_v56 = vcombine.high %v11011_v2, %v928_v8  ;;  %v2885_v5 = vcombine.low %v2829_v40, %v2845_v1  ;;  %v2886_v43 = vcombine.high %v2829_v40, %v2845_v1  ;;  %v1261_v37 = vcombine.low %v11013_v38, %v926_v57 }
 0x218   :  { %v1262_v60 = vcombine.high %v11013_v38, %v926_v57  ;;  %v2917_v63 = vcombine.low %v2861_v59, %v2877_v41  ;;  %v2918_v0 = vcombine.high %v2861_v59, %v2877_v41  ;;  %v1405_v49 = vrot.slane %v1397_v55, %v10873_v42 }
 0x219   :  { %v1412_v13 = vrot.slane %v1398_v56, %v10873_v42  ;;  %v11109_v51 = vrot.slane %v2885_v5, %v10878_v53  ;;  %v11112_v31 = vrot.slane %v2886_v43, %v10878_v53  ;;  %v1269_v2 = vrot.slane %v1261_v37, %v10873_v42 }
 0x21a   :  { %v1276_v8 = vrot.slane %v1262_v60, %v10873_v42  ;;  %v11117_v38 = vrot.slane %v2917_v63, %v10878_v53  ;;  %v11120_v57 = vrot.slane %v2918_v0, %v10878_v53  ;;  %v1445_v40 = vcombine.low %v1389_v11, %v1405_v49 }
 0x21b   :  { %v1446_v1 = vcombine.high %v1389_v11, %v1405_v49  ;;  %v1461_v59 = vcombine.low %v1396_v52, %v1412_v13  ;;  %v1462_v41 = vcombine.high %v1396_v52, %v1412_v13  ;;  %v1309_v55 = vcombine.low %v1253_v17, %v1269_v2  ;;  %v2120_v52 = vpop.permute.xlu1 %2119 }
 0x21c   :  { %v1310_v56 = vcombine.high %v1253_v17, %v1269_v2  ;;  %v2949_v43 = vcombine.low %v11109_v51, %v11117_v38  ;;  %v2951_v37 = vcombine.low %v11112_v31, %v11120_v57  ;;  %v1453_v5 = vrot.slane %v1445_v40, %v10878_v53 }
 0x21d   :  { %v1460_v60 = vrot.slane %v1446_v1, %v10878_v53  ;;  %v1469_v63 = vrot.slane %v1461_v59, %v10878_v53  ;;  %v1476_v0 = vrot.slane %v1462_v41, %v10878_v53  ;;  %v1317_v49 = vrot.slane %v1309_v55, %v10878_v53 }
 0x21e   :  { %v1324_v11 = vrot.slane %v1310_v56, %v10878_v53  ;;  %v4413_v17 = vpack.c.bf16 %v2949_v43, %v2813_v39  ;;  %v4417_v13 = vpack.c.bf16 %v2951_v37, %v2815_v4  ;;  %v1325_v40 = vcombine.low %v11090_v45, %v1276_v8 }
 0x21f   :  { %v9180_v2 = vcombine.low %v1453_v5, %v1460_v60  ;;  %v9182_v33 = vcombine.high %v1453_v5, %v1460_v60  ;;  %v9184_v12 = vcombine.low %v1469_v63, %v1476_v0  ;;  %v9186_v3 = vcombine.high %v1469_v63, %v1476_v0 }
 0x220   :  { %v1326_v1 = vcombine.high %v11090_v45, %v1276_v8  ;;  %v9218_v59 = vcombine.high %v11054_v10, %v11057_v28  ;;  %v9204_v41 = vcombine.low %v11069_v46, %v11072_v7  ;;  %v4434_v55 = vsel %vm4429_vm1, %v4413_v17, 0 }
 0x221   :  { %v4622_v39 = vsel %vm4429_vm1, %v4417_v13, 0  ;;  %9541 = vmatpush3.bf16.xpose.msra.mxu0 %v4434_v55  ;;  %v11143_v4 = vrot.slane %v9180_v2, %v10873_v42  ;;  %v11146_v56 = vrot.slane %v9182_v33, %v10873_v42  ;;  %v1333_v45 = vrot.slane %v1325_v40, %v10878_v53  ;;  %v2118_v2 = vpop.permute.xlu0 %2117 }
 0x222   :  { %9565 = vmatpush3.bf16.xpose.msra.mxu1 %v4622_v39  ;;  %v9206_v8 = vcombine.high %v11069_v46, %v11072_v7  ;;  %v11152_v43 = vrot.slane %v9184_v12, %v10873_v42  ;;  %v11155_v37 = vrot.slane %v9186_v3, %v10873_v42  ;;  %v1340_v5 = vrot.slane %v1326_v1, %v10878_v53  ;;  %v11164_v46 = vpop.permute.xlu1 %2131 }
 0x223   :  { %v13185_v60 = vmov 0.0   ;;  %v9208_v63 = vcombine.low %v11075_v32, %v11084_v58  ;;  %v9210_v33 = vcombine.high %v11075_v32, %v11084_v58  ;;  %v9172_v0 = vcombine.low %v1317_v49, %v1324_v11 }
 0x224   :  { %9546 = vmatprep.subr.bf16.mxu0 %v13185_v60  ;;  %v9174_v17 = vcombine.high %v1317_v49, %v1324_v11  ;;  %9570 = vmatprep.subr.bf16.mxu1 %v13185_v60  ;;  %v9176_v12 = vcombine.low %v1333_v45, %v1340_v5  ;;  %v9178_v7 = vcombine.high %v1333_v45, %v1340_v5 }
 0x225   :  { %v1645_v3 = vcombine.low %v10990_v36, %v10996_v50  ;;  %v1781_v13 = vcombine.low %v11016_v44, %v11022_v48  ;;  %v1647_v32 = vcombine.low %v10993_v61, %v10999_v22  ;;  %v1783_v58 = vcombine.low %v11019_v47, %v11060_v9 }
 0x226   :  { %v2309_v49 = vcombine.low %v10766_v15, %v2120_v52  ;;  %v2310_v39 = vcombine.high %v10766_v15, %v2120_v52  ;;  %v11185_v5 = vrot.slane %v9172_v0, %v10873_v42  ;;  %v11188_v40 = vrot.slane %v9174_v17, %v10873_v42 }
 0x227   :  { %v4397_v55 = vpack.c.bf16 %v1781_v13, %v1645_v3  ;;  %v4401_v30 = vpack.c.bf16 %v1783_v58, %v1647_v32  ;;  %v11191_v54 = vrot.slane %v9176_v12, %v10873_v42  ;;  %v11194_v11 = vrot.slane %v9178_v7, %v10873_v42  ;;  %v11204_v13 = vpop.permute.xlu1 %939 }
 0x228   :  { %v2317_v15 = vrot.slane %v2309_v49, %v10873_v42  ;;  %v2173_v52 = vcombine.low %v10764_v14, %v2118_v2  ;;  %v2324_v0 = vrot.slane %v2310_v39, %v10873_v42  ;;  %v2965_v17 = vrot.slane %v9204_v41, %v10873_v42 }
 0x229   :  { %9543 = vmatmul.mubr.msk.bf16.vlgmr.msra.gmra.mrb[16].mxu0 %vm4429_vm1, %v4397_v55  ;;  %9567 = vmatmul.mubr.msk.bf16.vlgmr.msra.gmra.mrb[8].mxu1 %vm4429_vm1, %v4401_v30  ;;  %v2981_v3 = vrot.slane %v9206_v8, %v10873_v42  ;;  %v2997_v12 = vrot.slane %v9208_v63, %v10873_v42  ;;  %v2174_v7 = vcombine.high %v10764_v14, %v2118_v2  ;;  %v2130_v55 = vpop.permute.xlu0 %2129 }
 0x22a   :  { %v3013_v32 = vrot.slane %v9210_v33, %v10873_v42  ;;  %v13186_v58 = vcombine.low %v11048_v6, %v11051_v16  ;;  %v13187_v30 = vcombine.high %v11048_v6, %v11051_v16  ;;  %9548 = vmatprep.mubr.msk.bf16.mxu0 %vm10518_vm0, %v13185_v60  ;;  %v11219_v8 = vrot.slane %v2173_v52, %v10873_v42 }
 0x22b   :  { %v3021_v14 = vcombine.low %v2965_v17, %v2981_v3  ;;  %v13188_v63 = vcombine.low %v11054_v10, %v11057_v28  ;;  %v3149_v2 = vrot.slane %v9218_v59, %v10873_v42  ;;  %9572 = vmatprep.mubr.msk.bf16.mxu1 %vm10518_vm0, %v13185_v60  ;;  %v3022_v39 = vcombine.high %v2965_v17, %v2981_v3 }
 0x22c   :  { %v3101_v49 = vrot.slane %v13186_v58, %v10873_v42  ;;  %v3117_v41 = vrot.slane %v13187_v30, %v10873_v42  ;;  %v3053_v16 = vcombine.low %v2997_v12, %v3013_v32  ;;  %v3054_v58 = vcombine.high %v2997_v12, %v3013_v32 }
 0x22d   :  { %v3133_v33 = vrot.slane %v13188_v63, %v10873_v42  ;;  %v11229_v30 = vrot.slane %v3021_v14, %v10878_v53  ;;  %v11238_v28 = vrot.slane %v3022_v39, %v10878_v53  ;;  %v2325_v32 = vcombine.low %v11104_v62, %v11164_v46 }
 0x22e   :  { %v3157_v6 = vcombine.low %v3101_v49, %v3117_v41  ;;  %v3158_v45 = vcombine.high %v3101_v49, %v3117_v41  ;;  %v11232_v26 = vrot.slane %v3053_v16, %v10878_v53  ;;  %v11241_v59 = vrot.slane %v3054_v58, %v10878_v53  ;;  %v952_v49 = vpop.permute.xlu1 %951 }
 0x22f   :  { %v3189_v52 = vcombine.low %v3133_v33, %v3149_v2  ;;  %v3190_v1 = vcombine.high %v3133_v33, %v3149_v2  ;;  %13189 = vst [vmem:[#allocation32_spill] sm:$0xff] %v11238_v28  ;;  %v2326_v63 = vcombine.high %v11104_v62, %v11164_v46  ;;  %v2189_v33 = vcombine.low %v11132_v27, %v2130_v55 }
 0x230   :  { %v11235_v10 = vrot.slane %v3157_v6, %v10878_v53  ;;  %v11247_v3 = vrot.slane %v3158_v45, %v10878_v53  ;;  %v3085_v41 = vcombine.low %v11229_v30, %v11232_v26  ;;  %v3087_v14 = vcombine.low %v11238_v28, %v11241_v59  ;;  %v11261_v45 = vpop.permute.xlu0 %937 }
 0x231   :  { %v11244_v17 = vrot.slane %v3189_v52, %v10878_v53  ;;  %v11250_v12 = vrot.slane %v3190_v1, %v10878_v53  ;;  %v2333_v16 = vrot.slane %v2325_v32, %v10873_v42  ;;  %v2190_v6 = vcombine.high %v11132_v27, %v2130_v55 }
 0x232   :  { %13190 = vst [vmem:[#allocation33_spill] sm:$0xff] %v11247_v3  ;;  %v2188_v39 = vrot.slane %v2174_v7, %v10873_v42  ;;  %v2340_v58 = vrot.slane %v2326_v63, %v10873_v42  ;;  %v2197_v62 = vrot.slane %v2189_v33, %v10873_v42  ;;  %v1141_v46 = vcombine.low %v10791_v19, %v952_v49 }
 0x233   :  { %v3221_v1 = vcombine.low %v11235_v10, %v11244_v17  ;;  %v3223_v2 = vcombine.low %v11247_v3, %v11250_v12  ;;  %v2373_v24 = vcombine.low %v2317_v15, %v2333_v16  ;;  %v2374_v20 = vcombine.high %v2317_v15, %v2333_v16 }
 0x234   :  { %v2389_v21 = vcombine.low %v2324_v0, %v2340_v58  ;;  %v2390_v28 = vcombine.high %v2324_v0, %v2340_v58  ;;  %v2204_v3 = vrot.slane %v2190_v6, %v10873_v42  ;;  %v2237_v32 = vcombine.low %v11219_v8, %v2197_v62 }
 0x235   :  { %v4414_v52 = vpack.c.bf16 %v3221_v1, %v3085_v41  ;;  %v4418_v23 = vpack.c.bf16 %v3223_v2, %v3087_v14  ;;  %v11278_v55 = vrot.slane %v2373_v24, %v10878_v53  ;;  %v11281_v63 = vrot.slane %v2374_v20, %v10878_v53  ;;  %v950_v14 = vpop.permute.xlu0 %949 }
 0x236   :  { %v11284_v15 = vrot.slane %v2389_v21, %v10878_v53  ;;  %v11287_v0 = vrot.slane %v2390_v28, %v10878_v53  ;;  %v2238_v41 = vcombine.high %v11219_v8, %v2197_v62  ;;  %v1885_v24 = vcombine.low %v11191_v54, %v11194_v11 }
 0x237   :  { %v4481_v27 = vsel %vm4429_vm1, %v4414_v52, 0  ;;  %v4669_v7 = vsel %vm4429_vm1, %v4418_v23, 0  ;;  %v1853_v23 = vcombine.low %v11185_v5, %v11188_v40  ;;  %v2253_v33 = vcombine.low %v2188_v39, %v2204_v3 }
 0x238   :  { %9547 = vmatpush3.bf16.xpose.msra.mxu0 %v4481_v27  ;;  %9571 = vmatpush3.bf16.xpose.msra.mxu1 %v4669_v7  ;;  %v1142_v20 = vcombine.high %v10791_v19, %v952_v49  ;;  %v1854_v21 = vcombine.high %v11185_v5, %v11188_v40  ;;  %v1886_v28 = vcombine.high %v11191_v54, %v11194_v11 }
 0x239   :  { %9552 = vmatprep.subr.bf16.mxu0 %v13185_v60  ;;  %v9197_v8 = vcombine.low %v11278_v55, %v11281_v63  ;;  %v2254_v1 = vcombine.high %v2188_v39, %v2204_v3  ;;  %9576 = vmatprep.subr.bf16.mxu1 %v13185_v60  ;;  %v9199_v2 = vcombine.high %v11278_v55, %v11281_v63  ;;  %v13199_v55 = vld [vmem:[#allocation22_spill] sm:$0xff] }
 0x23a   :  { %v9201_v19 = vcombine.low %v11284_v15, %v11287_v0  ;;  %v11308_v49 = vrot.slane %v2237_v32, %v10878_v53  ;;  %v1005_v40 = vcombine.low %v10789_v18, %v950_v14  ;;  %v9203_v54 = vcombine.high %v11284_v15, %v11287_v0 }
 0x23b   :  { %v11314_v11 = vrot.slane %v2238_v41, %v10878_v53  ;;  %v11317_v5 = vrot.slane %v2253_v33, %v10878_v53  ;;  %v1149_v3 = vrot.slane %v1141_v46, %v10873_v42  ;;  %v1156_v16 = vrot.slane %v1142_v20, %v10873_v42  ;;  %v964_v41 = vpop.permute.xlu1 %963 }
 0x23c   :  { %v11322_v6 = vrot.slane %v1853_v23, %v10878_v53  ;;  %v11325_v39 = vrot.slane %v1885_v24, %v10878_v53  ;;  %v13191_v58 = vcombine.low %v11143_v4, %v11146_v56  ;;  %v11334_v52 = vrot.slane %v2254_v1, %v10878_v53 }
 0x23d   :  { %v1006_v32 = vcombine.high %v10789_v18, %v950_v14  ;;  %v1013_v46 = vrot.slane %v1005_v40, %v10873_v42  ;;  %v13192_v27 = vcombine.low %v11152_v43, %v11155_v37  ;;  %v2814_v24 = vcombine.high %v10938_v29, %v10965_v34  ;;  %v962_v34 = vpop.permute.xlu0 %961 }
 0x23e   :  { %v11331_v62 = vrot.slane %v13191_v58, %v10878_v53  ;;  %v1917_v23 = vcombine.low %v11322_v6, %v11325_v39  ;;  %v2950_v33 = vcombine.high %v11109_v51, %v11117_v38  ;;  %v11351_v18 = vrot.slane %v1854_v21, %v10878_v53 }
 0x23f   :  { %v11342_v7 = vrot.slane %v13192_v27, %v10878_v53  ;;  %v11356_v20 = vrot.slane %v1886_v28, %v10878_v53  ;;  %v13193_v1 = vcombine.high %v11143_v4, %v11146_v56  ;;  %v13194_v29 = vcombine.high %v11152_v43, %v11155_v37 }
 0x240   :  { %v4415_v38 = vpack.c.bf16 %v2950_v33, %v2814_v24  ;;  %v2816_v21 = vcombine.high %v10968_v35, %v10987_v25  ;;  %v2952_v28 = vcombine.high %v11112_v31, %v11120_v57  ;;  %v1157_v58 = vcombine.low %v11204_v13, %v964_v41 }
 0x241   :  { %v2053_v14 = vcombine.low %v11331_v62, %v11342_v7  ;;  %v11362_v40 = vrot.slane %v13193_v1, %v10878_v53  ;;  %v11368_v51 = vrot.slane %v13194_v29, %v10878_v53  ;;  %v1919_v4 = vcombine.low %v11351_v18, %v11356_v20 }
 0x242   :  { %v1158_v43 = vcombine.high %v11204_v13, %v964_v41  ;;  %v1020_v37 = vrot.slane %v1006_v32, %v10873_v42  ;;  %v4419_v24 = vpack.c.bf16 %v2952_v28, %v2816_v21  ;;  %v1165_v33 = vrot.slane %v1157_v58, %v10873_v42  ;;  %v11398_v58 = vpop.permute.xlu0 %2109 }
 0x243   :  { %v4398_v27 = vpack.c.bf16 %v2053_v14, %v1917_v23  ;;  %v2055_v56 = vcombine.low %v11362_v40, %v11368_v51  ;;  %v1021_v35 = vcombine.low %v11261_v45, %v962_v34  ;;  %v4528_v31 = vsel %vm4429_vm1, %v4415_v38, 0  ;;  %v11387_v14 = vpop.permute.xlu1 %2111 }
 0x244   :  { %v1172_v57 = vrot.slane %v1158_v43, %v10873_v42  ;;  %v1022_v23 = vcombine.high %v11261_v45, %v962_v34  ;;  %v1205_v13 = vcombine.low %v1149_v3, %v1165_v33  ;;  %v1206_v41 = vcombine.high %v1149_v3, %v1165_v33 }
 0x245   :  { %9549 = vmatmul.mubr.msk.bf16.vlgmr.msra.gmra.mrb[20].mxu0 %vm4429_vm1, %v4398_v27  ;;  %v4402_v25 = vpack.c.bf16 %v2055_v56, %v1919_v4  ;;  %v1029_v32 = vrot.slane %v1021_v35, %v10873_v42  ;;  %v4716_v1 = vsel %vm4429_vm1, %v4419_v24, 0 }
 0x246   :  { %9553 = vmatpush3.bf16.xpose.msra.mxu0 %v4528_v31  ;;  %9554 = vmatprep.mubr.msk.bf16.mxu0 %vm10518_vm0, %v13185_v60  ;;  %v1221_v29 = vcombine.low %v1156_v16, %v1172_v57  ;;  %v1222_v38 = vcombine.high %v1156_v16, %v1172_v57  ;;  %v1036_v21 = vrot.slane %v1022_v23, %v10873_v42 }
 0x247   :  { %9573 = vmatmul.mubr.msk.bf16.vlgmr.msra.gmra.mrb[12].mxu1 %vm4429_vm1, %v4402_v25  ;;  %9558 = vmatprep.subr.bf16.mxu0 %v13185_v60  ;;  %v1213_v45 = vrot.slane %v1205_v13, %v10878_v53  ;;  %v1220_v3 = vrot.slane %v1206_v41, %v10878_v53  ;;  %v1069_v34 = vcombine.low %v1013_v46, %v1029_v32  ;;  %v2124_v23 = vpop.permute.xlu1 %2123 }
 0x248   :  { %9577 = vmatpush3.bf16.xpose.msra.mxu1 %v4716_v1  ;;  %v1070_v28 = vcombine.high %v1013_v46, %v1029_v32  ;;  %v1229_v27 = vrot.slane %v1221_v29, %v10878_v53  ;;  %v1236_v4 = vrot.slane %v1222_v38, %v10878_v53  ;;  %v1085_v56 = vcombine.low %v1020_v37, %v1036_v21 }
 0x249   :  { %v1086_v43 = vcombine.high %v1020_v37, %v1036_v21  ;;  %9578 = vmatprep.mubr.msk.bf16.mxu1 %vm10518_vm0, %v13185_v60  ;;  %v9165_v16 = vcombine.low %v1213_v45, %v1220_v3  ;;  %v9167_v24 = vcombine.high %v1213_v45, %v1220_v3  ;;  %v1077_v33 = vrot.slane %v1069_v34, %v10878_v53 }
 0x24a   :  { %v1084_v35 = vrot.slane %v1070_v28, %v10878_v53  ;;  %9582 = vmatprep.subr.bf16.mxu1 %v13185_v60  ;;  %v9169_v46 = vcombine.low %v1229_v27, %v1236_v4  ;;  %v9171_v31 = vcombine.high %v1229_v27, %v1236_v4  ;;  %v1093_v25 = vrot.slane %v1085_v56, %v10878_v53  ;;  %v2122_v27 = vpop.permute.xlu0 %2121 }
 0x24b   :  { %v1100_v57 = vrot.slane %v1086_v43, %v10878_v53  ;;  %v11410_v37 = vrot.slane %v9165_v16, %v10873_v42  ;;  %v11413_v13 = vrot.slane %v9167_v24, %v10873_v42  ;;  %v9189_v45 = vcombine.low %v11308_v49, %v11314_v11 }
 0x24c   :  { %v9157_v41 = vcombine.low %v1077_v33, %v1084_v35  ;;  %v9159_v32 = vcombine.high %v1077_v33, %v1084_v35  ;;  %v11416_v1 = vrot.slane %v9169_v46, %v10873_v42  ;;  %v11419_v29 = vrot.slane %v9171_v31, %v10873_v42 }
 0x24d   :  { %v9161_v38 = vcombine.low %v1093_v25, %v1100_v57  ;;  %v9163_v21 = vcombine.high %v1093_v25, %v1100_v57  ;;  %v9191_v3 = vcombine.high %v11308_v49, %v11314_v11  ;;  %v9193_v34 = vcombine.low %v11317_v5, %v11334_v52  ;;  %v2136_v57 = vpop.permute.xlu1 %2135 }
 0x24e   :  { %v9195_v28 = vcombine.high %v11317_v5, %v11334_v52  ;;  %v1733_v4 = vcombine.low %v11410_v37, %v11413_v13  ;;  %v11434_v43 = vrot.slane %v9157_v41, %v10873_v42  ;;  %v1646_v16 = vcombine.high %v10990_v36, %v10996_v50 }
 0x24f   :  { %v11441_v33 = vrot.slane %v9159_v32, %v10873_v42  ;;  %v1782_v35 = vcombine.high %v11016_v44, %v11022_v48  ;;  %v3086_v46 = vcombine.high %v11229_v30, %v11232_v26  ;;  %v11448_v31 = vrot.slane %v9161_v38, %v10873_v42  ;;  %v13195_v48 = vld [vmem:[#allocation32_spill] sm:$0xff]  ;;  %v13196_v30 = vld [vmem:[#allocation33_spill] sm:$0xff] }
 0x250   :  { %v11451_v25 = vrot.slane %v9163_v21, %v10873_v42  ;;  %v3222_v36 = vcombine.high %v11235_v10, %v11244_v17  ;;  %v1648_v50 = vcombine.high %v10993_v61, %v10999_v22  ;;  %v1784_v44 = vcombine.high %v11019_v47, %v11060_v9  ;;  %v13197_v21 = vld [vmem:[#allocation20_spill] sm:$0xff]  ;;  %v13198_v10 = vld [vmem:[#allocation19_spill] sm:$0xff]  ;;  %v2134_v9 = vpop.permute.xlu0 %2133 }
 0x251   :  { %v4399_v41 = vpack.c.bf16 %v1782_v35, %v1646_v16  ;;  %v3088_v26 = vcombine.high %v13195_v48, %v11241_v59  ;;  %v3224_v32 = vcombine.high %v13196_v30, %v11250_v12  ;;  %v2581_v56 = vcombine.low %v13197_v21, %v2124_v23 }
 0x252   :  { %v4416_v38 = vpack.c.bf16 %v3222_v36, %v3086_v46  ;;  %v2582_v24 = vcombine.high %v13197_v21, %v2124_v23  ;;  %v2445_v17 = vcombine.low %v13198_v10, %v2122_v27  ;;  %v4403_v61 = vpack.c.bf16 %v1784_v44, %v1648_v50 }
 0x253   :  { %9555 = vmatmul.mubr.msk.bf16.vlgmr.msra.gmra.mrb[24].mxu0 %vm4429_vm1, %v4399_v41  ;;  %v4420_v22 = vpack.c.bf16 %v3224_v32, %v3088_v26  ;;  %v2446_v16 = vcombine.high %v13198_v10, %v2122_v27  ;;  %v2597_v47 = vcombine.low %v11387_v14, %v2136_v57  ;;  %v2589_v12 = vrot.slane %v2581_v56, %v10873_v42 }
 0x254   :  { %v4575_v59 = vsel %vm4429_vm1, %v4416_v38, 0  ;;  %v2596_v35 = vrot.slane %v2582_v24, %v10873_v42  ;;  %v2453_v46 = vrot.slane %v2445_v17, %v10873_v42  ;;  %9560 = vmatprep.mubr.msk.bf16.mxu0 %vm10518_vm0, %v13185_v60  ;;  %9579 = vmatmul.mubr.msk.bf16.vlgmr.msra.gmra.mrb[16].mxu1 %vm4429_vm1, %v4403_v61  ;;  %v2598_v36 = vcombine.high %v11387_v14, %v2136_v57  ;;  %v11490_v57 = vpop.permute.xlu1 %943  ;;  %v11505_v21 = vpop.permute.xlu0 %941 }
 0x255   :  { %9559 = vmatpush3.bf16.xpose.msra.mxu0 %v4575_v59  ;;  %v4763_v23 = vsel %vm4429_vm1, %v4420_v22, 0  ;;  %v2460_v27 = vrot.slane %v2446_v16, %v10873_v42  ;;  %v2605_v50 = vrot.slane %v2597_v47, %v10873_v42  ;;  %9584 = vmatprep.mubr.msk.bf16.mxu1 %vm10518_vm0, %v13185_v60  ;;  %v2461_v56 = vcombine.low %v11398_v58, %v2134_v9 }
 0x256   :  { %9583 = vmatpush3.bf16.xpose.msra.mxu1 %v4763_v23  ;;  %v2462_v24 = vcombine.high %v11398_v58, %v2134_v9  ;;  %v1918_v41 = vcombine.high %v11322_v6, %v11325_v39  ;;  %v2612_v44 = vrot.slane %v2598_v36, %v10873_v42  ;;  %9588 = vmatprep.subr.bf16.mxu0 %v13185_v60 }
 0x257   :  { %v2645_v48 = vcombine.low %v2589_v12, %v2605_v50  ;;  %v2646_v26 = vcombine.high %v2589_v12, %v2605_v50  ;;  %v2054_v14 = vcombine.high %v11331_v62, %v11342_v7  ;;  %v2469_v30 = vrot.slane %v2461_v56, %v10873_v42  ;;  %9594 = vmatprep.subr.bf16.mxu1 %v13185_v60 }
 0x258   :  { %v2476_v32 = vrot.slane %v2462_v24, %v10873_v42  ;;  %v1920_v58 = vcombine.high %v11351_v18, %v11356_v20  ;;  %v2056_v6 = vcombine.high %v11362_v40, %v11368_v51  ;;  %v2661_v62 = vcombine.low %v2596_v35, %v2612_v44 }
 0x259   :  { %v11500_v39 = vrot.slane %v2645_v48, %v10878_v53  ;;  %v11503_v38 = vrot.slane %v2646_v26, %v10878_v53  ;;  %v2662_v7 = vcombine.high %v2596_v35, %v2612_v44  ;;  %v2509_v10 = vcombine.low %v2453_v46, %v2469_v30  ;;  %v954_v26 = vpop.permute.xlu0 %953 }
 0x25a   :  { %v2510_v17 = vcombine.high %v2453_v46, %v2469_v30  ;;  %v2525_v61 = vcombine.low %v2460_v27, %v2476_v32  ;;  %v2526_v22 = vcombine.high %v2460_v27, %v2476_v32  ;;  %v1597_v20 = vcombine.low %v11434_v43, %v11441_v33  ;;  %v956_v27 = vpop.permute.xlu1 %955 }
 0x25b   :  { %v11512_v40 = vrot.slane %v2661_v62, %v10878_v53  ;;  %v11515_v51 = vrot.slane %v2662_v7, %v10878_v53  ;;  %v1598_v16 = vcombine.high %v11434_v43, %v11441_v33  ;;  %v1629_v47 = vcombine.low %v11448_v31, %v11451_v25 }
 0x25c   :  { %v9213_v59 = vcombine.low %v11500_v39, %v11503_v38  ;;  %v9215_v12 = vcombine.high %v11500_v39, %v11503_v38  ;;  %v11528_v35 = vrot.slane %v2509_v10, %v10878_v53  ;;  %v4400_v46 = vpack.c.bf16 %v2054_v14, %v1918_v41 }
 0x25d   :  { %v4404_v23 = vpack.c.bf16 %v2056_v6, %v1920_v58  ;;  %v9217_v36 = vcombine.low %v11512_v40, %v11515_v51  ;;  %v11533_v50 = vrot.slane %v2510_v17, %v10878_v53  ;;  %v11536_v56 = vrot.slane %v2525_v61, %v10878_v53 }
 0x25e   :  { %v11539_v24 = vrot.slane %v2526_v22, %v10878_v53  ;;  %9561 = vmatmul.mubr.msk.bf16.vlgmr.msra.gmra.mrb[28].mxu0 %vm4429_vm1, %v4400_v46  ;;  %v11547_v41 = vrot.slane %v9189_v45, %v10873_v42  ;;  %v11553_v44 = vrot.slane %v9191_v3, %v10873_v42  ;;  %v11559_v48 = vrot.slane %v9193_v34, %v10873_v42  ;;  %v13200_v34 = vld [vmem:[#allocation21_spill] sm:$0xff]  ;;  %v968_v32 = vpop.permute.xlu1 %967  ;;  %v966_v46 = vpop.permute.xlu0 %965 }
 0x25f   :  { %9585 = vmatmul.mubr.msk.bf16.vlgmr.msra.gmra.mrb[20].mxu1 %vm4429_vm1, %v4404_v23  ;;  %v11565_v14 = vrot.slane %v9195_v28, %v10873_v42  ;;  %v11571_v49 = vrot.slane %v9197_v8, %v10873_v42  ;;  %v11577_v11 = vrot.slane %v9199_v2, %v10873_v42  ;;  %v11583_v45 = vrot.slane %v9201_v19, %v10873_v42 }
 0x260   :  { %9590 = vmatprep.mubr.msk.bf16.mxu0 %vm10518_vm0, %v13185_v60  ;;  %v2765_v5 = vcombine.low %v11547_v41, %v11553_v44  ;;  %v11593_v8 = vrot.slane %v9203_v54, %v10873_v42  ;;  %v1413_v63 = vcombine.low %v13199_v55, %v956_v27  ;;  %v1414_v2 = vcombine.high %v13199_v55, %v956_v27 }
 0x261   :  { %9596 = vmatprep.mubr.msk.bf16.mxu1 %vm10518_vm0, %v13185_v60  ;;  %v9219_v19 = vcombine.high %v11512_v40, %v11515_v51  ;;  %v9205_v52 = vcombine.low %v11528_v35, %v11533_v50  ;;  %v2797_v3 = vcombine.low %v11559_v48, %v11565_v14  ;;  %v2901_v15 = vcombine.low %v11571_v49, %v11577_v11 }
 0x262   :  { %v2773_v0 = vrot.slane %v2765_v5, %v10878_v53  ;;  %v2933_v54 = vcombine.low %v11583_v45, %v11593_v8  ;;  %v1277_v28 = vcombine.low %v13200_v34, %v954_v26  ;;  %v1278_v30 = vcombine.high %v13200_v34, %v954_v26 }
 0x263   :  { %v2805_v58 = vrot.slane %v2797_v3, %v10878_v53  ;;  %v2909_v6 = vrot.slane %v2901_v15, %v10878_v53  ;;  %v1421_v62 = vrot.slane %v1413_v63, %v10873_v42  ;;  %v1428_v7 = vrot.slane %v1414_v2, %v10873_v42 }
 0x264   :  { %v2941_v10 = vrot.slane %v2933_v54, %v10878_v53  ;;  %v11618_v17 = vrot.slane %v1597_v20, %v10878_v53  ;;  %v1637_v61 = vrot.slane %v1629_v47, %v10878_v53  ;;  %v1741_v22 = vrot.slane %v1733_v4, %v10878_v53 }
 0x265   :  { %v2817_v23 = vcombine.low %v2773_v0, %v2805_v58  ;;  %v13201_v27 = vcombine.low %v11416_v1, %v11419_v29  ;;  %v2818_v5 = vcombine.high %v2773_v0, %v2805_v58  ;;  %v1429_v55 = vcombine.low %v11490_v57, %v968_v32 }
 0x266   :  { %v2953_v63 = vcombine.low %v2909_v6, %v2941_v10  ;;  %v1285_v20 = vrot.slane %v1277_v28, %v10873_v42  ;;  %v2954_v2 = vcombine.high %v2909_v6, %v2941_v10  ;;  %v1430_v47 = vcombine.high %v11490_v57, %v968_v32 }
 0x267   :  { %v1773_v26 = vrot.slane %v13201_v27, %v10878_v53  ;;  %v1292_v3 = vrot.slane %v1278_v30, %v10873_v42  ;;  %v1437_v4 = vrot.slane %v1429_v55, %v10873_v42  ;;  %v1293_v15 = vcombine.low %v11505_v21, %v966_v46 }
 0x268   :  { %v1294_v54 = vcombine.high %v11505_v21, %v966_v46  ;;  %v4421_v34 = vpack.c.bf16 %v2953_v63, %v2817_v23  ;;  %v1649_v27 = vcombine.low %v11618_v17, %v1637_v61  ;;  %v1444_v58 = vrot.slane %v1430_v47, %v10873_v42 }
 0x269   :  { %v1785_v0 = vcombine.low %v1741_v22, %v1773_v26  ;;  %v4423_v18 = vpack.c.bf16 %v2954_v2, %v2818_v5  ;;  %v1477_v9 = vcombine.low %v1421_v62, %v1437_v4  ;;  %v1478_v28 = vcombine.high %v1421_v62, %v1437_v4 }
 0x26a   :  { %v1301_v6 = vrot.slane %v1293_v15, %v10873_v42  ;;  %v4810_v57 = vsel %vm4429_vm1, %v4421_v34, 0  ;;  %v1493_v30 = vcombine.low %v1428_v7, %v1444_v58  ;;  %v1494_v32 = vcombine.high %v1428_v7, %v1444_v58 }
 0x26b   :  { %v1650_v10 = vcombine.high %v11618_v17, %v1637_v61  ;;  %9589 = vmatpush3.bf16.xpose.msra.mxu0 %v4810_v57  ;;  %v1485_v21 = vrot.slane %v1477_v9, %v10878_v53  ;;  %v1492_v46 = vrot.slane %v1478_v28, %v10878_v53  ;;  %v1308_v23 = vrot.slane %v1294_v54, %v10873_v42 }
 0x26c   :  { %v1341_v55 = vcombine.low %v1285_v20, %v1301_v6  ;;  %9600 = vmatprep.subr.bf16.mxu0 %v13185_v60  ;;  %v4405_v5 = vpack.c.bf16 %v1785_v0, %v1649_v27  ;;  %v1501_v62 = vrot.slane %v1493_v30, %v10878_v53  ;;  %v1508_v63 = vrot.slane %v1494_v32, %v10878_v53 }
 0x26d   :  { %v1342_v2 = vcombine.high %v1285_v20, %v1301_v6  ;;  %v9181_v47 = vcombine.low %v1485_v21, %v1492_v46  ;;  %v9183_v7 = vcombine.high %v1485_v21, %v1492_v46  ;;  %v1357_v61 = vcombine.low %v1292_v3, %v1308_v23 }
 0x26e   :  { %v1349_v17 = vrot.slane %v1341_v55, %v10878_v53  ;;  %v9185_v4 = vcombine.low %v1501_v62, %v1508_v63  ;;  %v1358_v15 = vcombine.high %v1292_v3, %v1308_v23  ;;  %v1786_v34 = vcombine.high %v1741_v22, %v1773_v26 }
 0x26f   :  { %v1356_v9 = vrot.slane %v1342_v2, %v10878_v53  ;;  %v9207_v54 = vcombine.high %v11528_v35, %v11533_v50  ;;  %v9209_v27 = vcombine.low %v11536_v56, %v11539_v24  ;;  %v9211_v0 = vcombine.high %v11536_v56, %v11539_v24  ;;  %v13202_v2 = vld [vmem:[#allocation23_spill] sm:$0xff] }
 0x270   :  { %v1365_v20 = vrot.slane %v1357_v61, %v10878_v53  ;;  %v4904_v58 = vsel %vm4429_vm1, %v4423_v18, 0  ;;  %v9187_v28 = vcombine.high %v1501_v62, %v1508_v63  ;;  %v1372_v6 = vrot.slane %v1358_v15, %v10878_v53 }
 0x271   :  { %v9173_v57 = vcombine.low %v1349_v17, %v1356_v9  ;;  %v11659_v3 = vrot.slane %v9181_v47, %v10873_v42  ;;  %v11662_v22 = vrot.slane %v9183_v7, %v10873_v42  ;;  %v9175_v26 = vcombine.high %v1349_v17, %v1356_v9  ;;  %v13203_v47 = vld [vmem:[#allocation29_spill] sm:$0xff] }
 0x272   :  { %v2766_v30 = vcombine.high %v11547_v41, %v11553_v44  ;;  %9591 = vmatmul.mubr.msk.bf16.vlgmr.msra.gmra.mrb[32].mxu0 %vm4429_vm1, %v4405_v5  ;;  %v11668_v56 = vrot.slane %v9185_v4, %v10873_v42  ;;  %v9177_v24 = vcombine.low %v1365_v20, %v1372_v6  ;;  %v4407_v32 = vpack.c.bf16 %v1786_v34, %v1650_v10  ;;  %v11722_v4 = vpop.permute.xlu1 %3233 }
 0x273   :  { %v11671_v18 = vrot.slane %v9173_v57, %v10873_v42  ;;  %9601 = vmatpush3.bf16.xpose.msra.mxu0 %v4904_v58  ;;  %v11674_v21 = vrot.slane %v9175_v26, %v10873_v42  ;;  %v9179_v46 = vcombine.high %v1365_v20, %v1372_v6  ;;  %9602 = vmatprep.mubr.msk.bf16.mxu0 %vm10518_vm0, %v13185_v60 }
 0x274   :  { %v2780_v41 = vrot.slane %v2766_v30, %v10878_v53  ;;  %v11680_v44 = vrot.slane %v9177_v24, %v10873_v42  ;;  %9612 = vmatprep.subr.bf16.mxu0 %v13185_v60  ;;  %v2798_v23 = vcombine.high %v11559_v48, %v11565_v14  ;;  %v2902_v10 = vcombine.high %v11571_v49, %v11577_v11  ;;  %v13208_v24 = vld [vmem:[#allocation30_spill] sm:$0xff] }
 0x275   :  { %v2934_v55 = vcombine.high %v11583_v45, %v11593_v8  ;;  %v11690_v5 = vrot.slane %v9187_v28, %v10873_v42  ;;  %v2005_v62 = vcombine.low %v11659_v3, %v11662_v22  ;;  %v11695_v63 = vrot.slane %v9179_v46, %v10873_v42 }
 0x276   :  { %v11699_v7 = vadd.f32 %v13203_v47, %v13202_v2  ;;  %v2812_v48 = vrot.slane %v2798_v23, %v10878_v53  ;;  %v2916_v14 = vrot.slane %v2902_v10, %v10878_v53  ;;  %v11708_v11 = vrot.slane %v9205_v52, %v10873_v42  ;;  %v11795_v57 = vpop.permute.xlu1 %3245 }
 0x277   :  { %v2948_v49 = vrot.slane %v2934_v55, %v10878_v53  ;;  %v1869_v45 = vcombine.low %v11671_v18, %v11674_v21  ;;  %v1901_v8 = vcombine.low %v11680_v44, %v11695_v63  ;;  %v11715_v17 = vrot.slane %v9207_v54, %v10873_v42 }
 0x278   :  { %v11718_v61 = vrot.slane %v9209_v27, %v10873_v42  ;;  %3237 = vrot.lane.b32.xlu1 %v11699_v7, %s10515_s24  ;;  %v2819_v35 = vcombine.low %v2780_v41, %v2812_v48  ;;  %v11725_v52 = vrot.slane %v9211_v0, %v10873_v42  ;;  %v11731_v9 = vrot.slane %v9213_v59, %v10873_v42 }
 0x279   :  { %v2955_v50 = vcombine.low %v2916_v14, %v2948_v49  ;;  %3261 = vrot.lane.b32.xlu0 %v11699_v7, %s10516_s2  ;;  %v3037_v15 = vcombine.low %v11708_v11, %v11715_v17  ;;  %v11741_v34 = vrot.slane %v9215_v12, %v10873_v42  ;;  %v11747_v54 = vrot.slane %v9217_v36, %v10873_v42 }
 0x27a   :  { %v11753_v59 = vrot.slane %v9219_v19, %v10873_v42  ;;  %9603 = vmatmul.mubr.msk.bf16.vlgmr.msra.gmra.mrb[36].mxu0 %vm4429_vm1, %v4407_v32  ;;  %v3069_v39 = vcombine.low %v11718_v61, %v11725_v52  ;;  %v11762_v38 = vrot.slane %v1598_v16, %v10878_v53  ;;  %v13204_v12 = vcombine.high %v11448_v31, %v11451_v25  ;;  %v11781_v16 = vpop.f32.mrb[15].mxu0 }
 0x27b   :  { %v4425_v27 = vpack.c.bf16 %v2955_v50, %v2819_v35  ;;  %v3045_v40 = vrot.slane %v3037_v15, %v10878_v53  ;;  %v3173_v51 = vcombine.low %v11731_v9, %v11741_v34  ;;  %9614 = vmatprep.mubr.msk.bf16.mxu0 %vm10518_vm0, %v13185_v60  ;;  %v13205_v43 = vcombine.high %v11410_v37, %v11413_v13 }
 0x27c   :  { %v11768_v36 = vrot.slane %v13204_v12, %v10878_v53  ;;  %v3205_v19 = vcombine.low %v11747_v54, %v11753_v59  ;;  %v2037_v31 = vcombine.low %v11668_v56, %v11690_v5  ;;  %v3077_v0 = vrot.slane %v3069_v39, %v10878_v53  ;;  %3249 = vrot.lane.b32.xlu1 %v11699_v7, %s10514_s22  ;;  %v11829_v39 = vpop.permute.xlu1 %3273 }
 0x27d   :  { %v1748_v33 = vrot.slane %v13205_v43, %v10878_v53  ;;  %v4998_v25 = vsel %vm4429_vm1, %v4425_v27, 0  ;;  %v13206_v20 = vcombine.high %v11416_v1, %v11419_v29  ;;  %v3181_v37 = vrot.slane %v3173_v51, %v10878_v53  ;;  %v13207_v29 = vld [vmem:[#allocation25_spill] sm:$0xff] }
 0x27e   :  { %9613 = vmatpush3.bf16.xpose.msra.mxu0 %v4998_v25  ;;  %v3213_v13 = vrot.slane %v3205_v19, %v10878_v53  ;;  %v2820_v28 = vcombine.high %v2780_v41, %v2812_v48  ;;  %v2956_v6 = vcombine.high %v2916_v14, %v2948_v49  ;;  %v3089_v26 = vcombine.low %v3045_v40, %v3077_v0 }
 0x27f   :  { %v1780_v58 = vrot.slane %v13206_v20, %v10878_v53  ;;  %9624 = vmatprep.subr.bf16.mxu0 %v13185_v60  ;;  %v1651_v30 = vcombine.low %v11762_v38, %v11768_v36  ;;  %v11802_v32 = vadd.f32 %v13208_v24, %v13207_v29  ;;  %v11805_v23 = vrot.slane %v1869_v45, %v10878_v53  ;;  %v13209_v45 = vld [vmem:[#allocation31_spill] sm:$0xff] }
 0x280   :  { %v3225_v46 = vcombine.low %v3181_v37, %v3213_v13  ;;  %v11808_v41 = vrot.slane %v1901_v8, %v10878_v53  ;;  %v11811_v10 = vrot.slane %v2005_v62, %v10878_v53  ;;  %v4427_v55 = vpack.c.bf16 %v2956_v6, %v2820_v28  ;;  %v11859_v19 = vpop.permute.xlu1 %3285 }
 0x281   :  { %v1787_v1 = vcombine.low %v1748_v33, %v1780_v58  ;;  %3277 = vrot.lane.b32.xlu1 %v11802_v32, %s10515_s24  ;;  %v11816_v47 = vrot.slane %v2037_v31, %v10878_v53  ;;  %v3090_v49 = vcombine.high %v3045_v40, %v3077_v0  ;;  %v3226_v35 = vcombine.high %v3181_v37, %v3213_v13  ;;  %v13210_v31 = vld [vmem:[#allocation24_spill] sm:$0xff] }
 0x282   :  { %v4422_v48 = vpack.c.bf16 %v3225_v46, %v3089_v26  ;;  %v11820_v50 = vadd.f32 %v13209_v45, %v13202_v2  ;;  %v1921_v62 = vcombine.low %v11805_v23, %v11808_v41  ;;  %v3038_v27 = vcombine.high %v11708_v11, %v11715_v17 }
 0x283   :  { %v4409_v14 = vpack.c.bf16 %v1787_v1, %v1651_v30  ;;  %v2057_v15 = vcombine.low %v11811_v10, %v11816_v47  ;;  %v5092_v12 = vsel %vm4429_vm1, %v4427_v55, 0  ;;  %v3070_v2 = vcombine.high %v11718_v61, %v11725_v52 }
 0x284   :  { %v4857_v8 = vsel %vm4429_vm1, %v4422_v48, 0  ;;  %v1652_v40 = vcombine.high %v11762_v38, %v11768_v36  ;;  %v3174_v51 = vcombine.high %v11731_v9, %v11741_v34  ;;  %v4424_v11 = vpack.c.bf16 %v3226_v35, %v3090_v49  ;;  %3239 = vrot.lane.b32.xlu0 %v11820_v50, %s10515_s24  ;;  %v3248_v6 = vpop.permute.xlu1 %3247  ;;  %v13211_v35 = vld [vmem:[#allocation27_spill] sm:$0xff] }
 0x285   :  { %9595 = vmatpush3.bf16.xpose.msra.mxu1 %v4857_v8  ;;  %9615 = vmatmul.mubr.msk.bf16.vlgmr.msra.gmra.mrb[40].mxu0 %vm4429_vm1, %v4409_v14  ;;  %v1788_v17 = vcombine.high %v1748_v33, %v1780_v58  ;;  %v3206_v61 = vcombine.high %v11747_v54, %v11753_v59  ;;  %v4406_v52 = vpack.c.bf16 %v2057_v15, %v1921_v62  ;;  %v3258_v54 = vpop.permute.xlu0 %3257 }
 0x286   :  { %9625 = vmatpush3.bf16.xpose.msra.mxu0 %v5092_v12  ;;  %9606 = vmatprep.subr.bf16.mxu1 %v13185_v60  ;;  %v11849_v38 = vrot.slane %v3038_v27, %v10878_v53  ;;  %v11852_v9 = vrot.slane %v3070_v2, %v10878_v53  ;;  %v11855_v34 = vrot.slane %v3174_v51, %v10878_v53  ;;  %v4951_v0 = vsel %vm4429_vm1, %v4424_v11, 0 }
 0x287   :  { %9626 = vmatprep.mubr.msk.bf16.mxu0 %vm10518_vm0, %v13185_v60  ;;  %3251 = vrot.lane.b32.xlu1 %v11820_v50, %s10514_s22  ;;  %v3220_v36 = vrot.slane %v3206_v61, %v10878_v53  ;;  %v1870_v59 = vcombine.high %v11671_v18, %v11674_v21  ;;  %v1902_v43 = vcombine.high %v11680_v44, %v11695_v63 }
 0x288   :  { %9636 = vmatprep.subr.bf16.mxu0 %v13185_v60  ;;  %v4411_v33 = vpack.c.bf16 %v1788_v17, %v1652_v40  ;;  %v3309_v25 = vcombine.low %v13210_v31, %v11795_v57  ;;  %v3091_v20 = vcombine.low %v11849_v38, %v11852_v9  ;;  %v3310_v18 = vcombine.high %v13210_v31, %v11795_v57  ;;  %v3260_v40 = vpop.permute.xlu1 %3259 }
 0x289   :  { %v3227_v58 = vcombine.low %v11855_v34, %v3220_v36  ;;  %v2006_v21 = vcombine.high %v11659_v3, %v11662_v22  ;;  %v2038_v44 = vcombine.high %v11668_v56, %v11690_v5  ;;  %v1922_v63 = vcombine.high %v11805_v23, %v11808_v41  ;;  %v11900_v26 = vpop.permute.xlu0 %3297 }
 0x28a   :  { %v2058_v37 = vcombine.high %v11811_v10, %v11816_v47  ;;  %v11889_v13 = vrot.slane %v1870_v59, %v10878_v53  ;;  %v11892_v3 = vrot.slane %v1902_v43, %v10878_v53  ;;  %v3317_v22 = vrot.slane %v3309_v25, %v10873_v42 }
 0x28b   :  { %3263 = vrot.lane.b32.xlu1 %v11820_v50, %s10516_s2  ;;  %v3325_v56 = vcombine.low %v11722_v4, %v3258_v54  ;;  %v4426_v5 = vpack.c.bf16 %v3227_v58, %v3091_v20  ;;  %v3324_v28 = vrot.slane %v3310_v18, %v10873_v42  ;;  %v3326_v57 = vcombine.high %v11722_v4, %v3258_v54 }
 0x28c   :  { %9597 = vmatmul.mubr.msk.bf16.vlgmr.msra.gmra.mrb[24].mxu1 %vm4429_vm1, %v4406_v52  ;;  %v4408_v1 = vpack.c.bf16 %v2058_v37, %v1922_v63  ;;  %v2020_v24 = vrot.slane %v2006_v21, %v10878_v53  ;;  %v2052_v46 = vrot.slane %v2038_v44, %v10878_v53  ;;  %v1923_v41 = vcombine.low %v11889_v13, %v11892_v3 }
 0x28d   :  { %9607 = vmatpush3.bf16.xpose.msra.mxu1 %v4951_v0  ;;  %9627 = vmatmul.mubr.msk.bf16.vlgmr.msra.gmra.mrb[44].mxu0 %vm4429_vm1, %v4411_v33  ;;  %v3333_v30 = vrot.slane %v3325_v56, %v10873_v42  ;;  %v3340_v23 = vrot.slane %v3326_v57, %v10873_v42  ;;  %v3092_v10 = vcombine.high %v11849_v38, %v11852_v9  ;;  %v5045_v4 = vsel %vm4429_vm1, %v4426_v5, 0  ;;  %v3236_v51 = vpop.permute.xlu0 %3235 }
 0x28e   :  { %9608 = vmatprep.mubr.msk.bf16.mxu1 %vm10518_vm0, %v13185_v60  ;;  %9618 = vmatprep.subr.bf16.mxu1 %v13185_v60  ;;  %v3228_v48 = vcombine.high %v11855_v34, %v3220_v36  ;;  %v3445_v45 = vcombine.low %v13211_v35, %v3248_v6  ;;  %v2059_v15 = vcombine.low %v2020_v24, %v2052_v46 }
 0x28f   :  { %9638 = vmatprep.mubr.msk.bf16.mxu0 %vm10518_vm0, %v13185_v60  ;;  %v3373_v55 = vcombine.low %v3317_v22, %v3333_v30  ;;  %v3374_v47 = vcombine.high %v3317_v22, %v3333_v30  ;;  %v3389_v14 = vcombine.low %v3324_v28, %v3340_v23  ;;  %v3390_v49 = vcombine.high %v3324_v28, %v3340_v23 }
 0x290   :  { %v3446_v27 = vcombine.high %v13211_v35, %v3248_v6  ;;  %v3461_v61 = vcombine.low %v3236_v51, %v3260_v40  ;;  %v4428_v52 = vpack.c.bf16 %v3228_v48, %v3092_v10  ;;  %v3453_v34 = vrot.slane %v3445_v45, %v10873_v42 }
 0x291   :  { %v3381_v8 = vrot.slane %v3373_v55, %v10878_v53  ;;  %v3388_v62 = vrot.slane %v3374_v47, %v10878_v53  ;;  %v3397_v12 = vrot.slane %v3389_v14, %v10878_v53  ;;  %v3404_v2 = vrot.slane %v3390_v49, %v10878_v53 }
 0x292   :  { %v3462_v59 = vcombine.high %v3236_v51, %v3260_v40  ;;  %v4410_v43 = vpack.c.bf16 %v2059_v15, %v1923_v41  ;;  %v3460_v33 = vrot.slane %v3446_v27, %v10873_v42  ;;  %v3469_v0 = vrot.slane %v3461_v61, %v10873_v42 }
 0x293   :  { %v9220_v11 = vcombine.low %v3381_v8, %v3388_v62  ;;  %v9222_v17 = vcombine.high %v3381_v8, %v3388_v62  ;;  %v9224_v38 = vcombine.low %v3397_v12, %v3404_v2  ;;  %v9226_v9 = vcombine.high %v3397_v12, %v3404_v2 }
 0x294   :  { %9609 = vmatmul.mubr.msk.bf16.vlgmr.msra.gmra.mrb[28].mxu1 %vm4429_vm1, %v4408_v1  ;;  %v3476_v20 = vrot.slane %v3462_v59, %v10873_v42  ;;  %v5139_v58 = vsel %vm4429_vm1, %v4428_v52, 0  ;;  %v1924_v18 = vcombine.high %v11889_v13, %v11892_v3  ;;  %v2060_v21 = vcombine.high %v2020_v24, %v2052_v46 }
 0x295   :  { %9619 = vmatpush3.bf16.xpose.msra.mxu1 %v5045_v4  ;;  %9620 = vmatprep.mubr.msk.bf16.mxu1 %vm10518_vm0, %v13185_v60  ;;  %v3861_v36 = vrot.slane %v9220_v11, %v10873_v42  ;;  %v3877_v54 = vrot.slane %v9222_v17, %v10873_v42  ;;  %v3893_v31 = vrot.slane %v9224_v38, %v10873_v42 }
 0x296   :  { %9630 = vmatprep.subr.bf16.mxu1 %v13185_v60  ;;  %v3909_v25 = vrot.slane %v9226_v9, %v10873_v42  ;;  %v3509_v44 = vcombine.low %v3453_v34, %v3469_v0  ;;  %v3510_v22 = vcombine.high %v3453_v34, %v3469_v0  ;;  %v3525_v56 = vcombine.low %v3460_v33, %v3476_v20 }
 0x297   :  { %v3917_v63 = vcombine.low %v3861_v36, %v3877_v54  ;;  %v3526_v5 = vcombine.high %v3460_v33, %v3476_v20  ;;  %v4412_v3 = vpack.c.bf16 %v2060_v21, %v1924_v18  ;;  %v3918_v62 = vcombine.high %v3861_v36, %v3877_v54  ;;  %v11963_v33 = vpop.permute.xlu1 %3287 }
 0x298   :  { %v3949_v37 = vcombine.low %v3893_v31, %v3909_v25  ;;  %v3517_v28 = vrot.slane %v3509_v44, %v10878_v53  ;;  %v3524_v6 = vrot.slane %v3510_v22, %v10878_v53  ;;  %v3533_v57 = vrot.slane %v3525_v56, %v10878_v53 }
 0x299   :  { %v3540_v13 = vrot.slane %v3526_v5, %v10878_v53  ;;  %v3925_v30 = vrot.slane %v3917_v63, %v10878_v53  ;;  %v3950_v15 = vcombine.high %v3893_v31, %v3909_v25  ;;  %v3932_v51 = vrot.slane %v3918_v62, %v10878_v53  ;;  %v11967_v25 = vpop.permute.xlu0 %3275 }
 0x29a   :  { %v3957_v1 = vrot.slane %v3949_v37, %v10878_v53  ;;  %v9228_v24 = vcombine.low %v3517_v28, %v3524_v6  ;;  %v9230_v46 = vcombine.high %v3517_v28, %v3524_v6 }
 0x29b   :  { %v9232_v23 = vcombine.low %v3533_v57, %v3540_v13  ;;  %v9234_v41 = vcombine.high %v3533_v57, %v3540_v13  ;;  %v3964_v11 = vrot.slane %v3950_v15, %v10878_v53  ;;  %v11965_v31 = vpop.permute.xlu1 %3299 }
 0x29c   :  { %9621 = vmatmul.mubr.msk.bf16.vlgmr.msra.gmra.mrb[32].mxu1 %vm4429_vm1, %v4410_v43  ;;  %v3997_v10 = vrot.slane %v9228_v24, %v10873_v42  ;;  %v4013_v55 = vrot.slane %v9230_v46, %v10873_v42  ;;  %v3982_v49 = vcombine.high %v3925_v30, %v3957_v1  ;;  %v3981_v35 = vcombine.low %v3925_v30, %v3957_v1 }
 0x29d   :  { %9631 = vmatpush3.bf16.xpose.msra.mxu1 %v5139_v58  ;;  %9632 = vmatprep.mubr.msk.bf16.mxu1 %vm10518_vm0, %v13185_v60  ;;  %v4029_v47 = vrot.slane %v9232_v23, %v10873_v42  ;;  %v4045_v4 = vrot.slane %v9234_v41, %v10873_v42  ;;  %v3983_v9 = vcombine.low %v3932_v51, %v3964_v11 }
 0x29e   :  { %9642 = vmatprep.subr.bf16.mxu1 %v13185_v60  ;;  %v4053_v48 = vcombine.low %v3997_v10, %v4013_v55  ;;  %v4054_v27 = vcombine.high %v3997_v10, %v4013_v55  ;;  %v3984_v34 = vcombine.high %v3932_v51, %v3964_v11 }
 0x29f   :  { %v4085_v14 = vcombine.low %v4029_v47, %v4045_v4  ;;  %v4086_v12 = vcombine.high %v4029_v47, %v4045_v4 }
 0x2a0   :  { %v4061_v45 = vrot.slane %v4053_v48, %v10878_v53  ;;  %v4068_v17 = vrot.slane %v4054_v27, %v10878_v53 }
 0x2a1   :  { %v4093_v8 = vrot.slane %v4085_v14, %v10878_v53  ;;  %v4100_v61 = vrot.slane %v4086_v12, %v10878_v53 }
 0x2a3   :  { %v4117_v2 = vcombine.low %v4061_v45, %v4093_v8  ;;  %v4118_v40 = vcombine.high %v4061_v45, %v4093_v8  ;;  %v4119_v59 = vcombine.low %v4068_v17, %v4100_v61  ;;  %v4120_v36 = vcombine.high %v4068_v17, %v4100_v61 }
 0x2a4   :  { %9633 = vmatmul.mubr.msk.bf16.vlgmr.msra.gmra.mrb[36].mxu1 %vm4429_vm1, %v4412_v3 }
 0x2a5   :  { %9644 = vmatprep.mubr.msk.bf16.mxu1 %vm10518_vm0, %v13185_v60  ;;  %v5551_v52 = vpack.c.bf16 %v4117_v2, %v3981_v35  ;;  %v11956_v38 = vpack.c.bf16 %v4118_v40, %v3982_v49  ;;  %v11959_v54 = vpack.c.bf16 %v4119_v59, %v3983_v9  ;;  %v11961_v43 = vpack.c.bf16 %v4120_v36, %v3984_v34 }
 0x2a7   :  { %9637 = vmatpush3.bf16.msra.mxu0 %v5551_v52 }
 0x2a8   :  { %9648 = vmatprep.subr.bf16.mxu0 %v13185_v60 }
 0x2ea   :  { %v3238_v0 = vpop.permute.xlu1 %3237 }
 0x2eb   :  { %v3262_v20 = vpop.permute.xlu0 %3261 }
 0x2ec   :  { %v3597_v58 = vcombine.low %v3238_v0, %v3262_v20  ;;  %v3598_v18 = vcombine.high %v3238_v0, %v3262_v20 }
 0x2ee   :  { %v3250_v21 = vpop.permute.xlu1 %3249  ;;  %v3605_v37 = vrot.slane %v3597_v58, %v10873_v42  ;;  %v3612_v22 = vrot.slane %v3598_v18, %v10873_v42 }
 0x2ef   :  { %v3581_v44 = vcombine.low %v11699_v7, %v3250_v21  ;;  %v3582_v63 = vcombine.high %v11699_v7, %v3250_v21 }
 0x2f1   :  { %v3589_v56 = vrot.slane %v3581_v44, %v10873_v42  ;;  %v3596_v5 = vrot.slane %v3582_v63, %v10873_v42 }
 0x2f3   :  { %v11975_v28 = vpop.permute.xlu1 %3277  ;;  %v3645_v6 = vcombine.low %v3589_v56, %v3605_v37  ;;  %v3646_v57 = vcombine.high %v3589_v56, %v3605_v37  ;;  %v3661_v13 = vcombine.low %v3596_v5, %v3612_v22  ;;  %v3662_v3 = vcombine.high %v3596_v5, %v3612_v22 }
 0x2f4   :  { %13212 = vst [vmem:[#allocation32_spill] sm:$0xff] %v11975_v28 }
 0x2f5   :  { %v3653_v30 = vrot.slane %v3645_v6, %v10878_v53  ;;  %v3660_v1 = vrot.slane %v3646_v57, %v10878_v53  ;;  %v3669_v7 = vrot.slane %v3661_v13, %v10878_v53  ;;  %v3676_v24 = vrot.slane %v3662_v3, %v10878_v53 }
 0x2f6   :  { %v3240_v45 = vpop.permute.xlu0 %3239 }
 0x2f7   :  { %v9236_v46 = vcombine.low %v3653_v30, %v3660_v1  ;;  %v9238_v23 = vcombine.high %v3653_v30, %v3660_v1  ;;  %v9240_v41 = vcombine.low %v3669_v7, %v3676_v24  ;;  %v9242_v10 = vcombine.high %v3669_v7, %v3676_v24 }
 0x2f9   :  { %v3252_v55 = vpop.permute.xlu1 %3251  ;;  %v4133_v48 = vrot.slane %v9236_v46, %v10873_v42  ;;  %v4149_v14 = vrot.slane %v9238_v23, %v10873_v42  ;;  %v4165_v49 = vrot.slane %v9240_v41, %v10873_v42  ;;  %v4181_v35 = vrot.slane %v9242_v10, %v10873_v42 }
 0x2fa   :  { %v3717_v47 = vcombine.low %v11820_v50, %v3252_v55  ;;  %v3718_v4 = vcombine.high %v11820_v50, %v3252_v55 }
 0x2fb   :  { %v4189_v8 = vcombine.low %v4133_v48, %v4149_v14  ;;  %v4190_v62 = vcombine.high %v4133_v48, %v4149_v14  ;;  %v4221_v2 = vcombine.low %v4165_v49, %v4181_v35  ;;  %v4222_v50 = vcombine.high %v4165_v49, %v4181_v35 }
 0x2fc   :  { %v3725_v15 = vrot.slane %v3717_v47, %v10873_v42  ;;  %v3732_v27 = vrot.slane %v3718_v4, %v10873_v42  ;;  %v11989_v40 = vpop.f32.mrb[16].mxu0  ;;  %v11992_v61 = vpop.f32.mrb[8].mxu1 }
 0x2fd   :  { %v3264_v12 = vpop.permute.xlu1 %3263  ;;  %v4197_v17 = vrot.slane %v4189_v8, %v10878_v53  ;;  %v9544_v52 = vpop.f32.mrb[17].mxu0  ;;  %v5183_v9 = vsel %vm5182_vm2, %v11989_v40, -inf  ;;  %v4229_v34 = vrot.slane %v4221_v2, %v10878_v53  ;;  %v5207_v36 = vsel %vm5182_vm2, %v11992_v61, -inf }
 0x2fe   :  { %v3733_v51 = vcombine.low %v3240_v45, %v3264_v12  ;;  %v3734_v11 = vcombine.high %v3240_v45, %v3264_v12  ;;  %v9568_v59 = vpop.f32.mrb[9].mxu1  ;;  %5184 = vmax.xlane.f32.xlu0 %v5183_v9  ;;  %v11999_v0 = vpop.f32.mrb[18].mxu0  ;;  %v4204_v20 = vrot.slane %v4190_v62, %v10878_v53  ;;  %v4236_v58 = vrot.slane %v4222_v50, %v10878_v53 }
 0x2ff   :  { %5208 = vmax.xlane.f32.xlu1 %v5207_v36  ;;  %v12005_v44 = vpop.f32.mrb[10].mxu1  ;;  %v9545_v63 = vpop.f32.mrb[19].mxu0  ;;  %v4254_v56 = vcombine.high %v4197_v17, %v4229_v34  ;;  %v5186_v30 = vsel %vm5182_vm2, %v11999_v0, -inf }
 0x300   :  { %v3741_v18 = vrot.slane %v3733_v51, %v10873_v42  ;;  %v3748_v21 = vrot.slane %v3734_v11, %v10873_v42  ;;  %v9569_v37 = vpop.f32.mrb[11].mxu1  ;;  %v5210_v22 = vsel %vm5182_vm2, %v12005_v44, -inf  ;;  %v4255_v5 = vcombine.low %v4204_v20, %v4236_v58 }
 0x301   :  { %v4256_v1 = vcombine.high %v4204_v20, %v4236_v58 }
 0x302   :  { %v3781_v6 = vcombine.low %v3725_v15, %v3741_v18  ;;  %v3782_v57 = vcombine.high %v3725_v15, %v3741_v18  ;;  %v3797_v13 = vcombine.low %v3732_v27, %v3748_v21  ;;  %v3798_v3 = vcombine.high %v3732_v27, %v3748_v21  ;;  %5211 = vmax.xlane.f32.xlu0 %v5210_v22 }
 0x303   :  { %5187 = vmax.xlane.f32.xlu1 %v5186_v30  ;;  %v4253_v15 = vcombine.low %v4197_v17, %v4229_v34 }
 0x304   :  { %v3789_v7 = vrot.slane %v3781_v6, %v10878_v53  ;;  %v3796_v24 = vrot.slane %v3782_v57, %v10878_v53  ;;  %v3805_v46 = vrot.slane %v3797_v13, %v10878_v53  ;;  %v3812_v23 = vrot.slane %v3798_v3, %v10878_v53 }
 0x306   :  { %v9244_v41 = vcombine.low %v3789_v7, %v3796_v24  ;;  %v9246_v10 = vcombine.high %v3789_v7, %v3796_v24  ;;  %v9248_v55 = vcombine.low %v3805_v46, %v3812_v23  ;;  %v9250_v47 = vcombine.high %v3805_v46, %v3812_v23 }
 0x308   :  { %v4269_v4 = vrot.slane %v9244_v41, %v10873_v42  ;;  %v4285_v48 = vrot.slane %v9246_v10, %v10873_v42  ;;  %v4301_v14 = vrot.slane %v9248_v55, %v10873_v42  ;;  %v4317_v49 = vrot.slane %v9250_v47, %v10873_v42 }
 0x30a   :  { %v4325_v35 = vcombine.low %v4269_v4, %v4285_v48  ;;  %v4357_v45 = vcombine.low %v4301_v14, %v4317_v49  ;;  %v4326_v8 = vcombine.high %v4269_v4, %v4285_v48  ;;  %v4358_v62 = vcombine.high %v4301_v14, %v4317_v49 }
 0x30c   :  { %v4333_v27 = vrot.slane %v4325_v35, %v10878_v53  ;;  %v4365_v12 = vrot.slane %v4357_v45, %v10878_v53  ;;  %v4340_v2 = vrot.slane %v4326_v8, %v10878_v53  ;;  %v4372_v50 = vrot.slane %v4358_v62, %v10878_v53 }
 0x30e   :  { %v4389_v51 = vcombine.low %v4333_v27, %v4365_v12  ;;  %v4390_v11 = vcombine.high %v4333_v27, %v4365_v12  ;;  %v4391_v52 = vcombine.low %v4340_v2, %v4372_v50  ;;  %v4392_v9 = vcombine.high %v4340_v2, %v4372_v50 }
 0x310   :  { %v5552_v59 = vpack.c.bf16 %v4389_v51, %v4253_v15  ;;  %v12023_v36 = vpack.c.bf16 %v4390_v11, %v4254_v56  ;;  %v12025_v20 = vpack.c.bf16 %v4391_v52, %v4255_v5  ;;  %v12027_v58 = vpack.c.bf16 %v4392_v9, %v4256_v1 }
 0x312   :  { %9643 = vmatpush3.bf16.msra.mxu1 %v5552_v59 }
 0x313   :  { %9654 = vmatprep.subr.bf16.mxu1 %v13185_v60 }
 0x318   :  { %v12030_v17 = vpop.f32.mrb[20].mxu0 }
 0x319   :  { %v9550_v34 = vpop.f32.mrb[21].mxu0  ;;  %v5189_v18 = vsel %vm5182_vm2, %v12030_v17, -inf }
 0x31a   :  { %v12034_v21 = vpop.f32.mrb[12].mxu1  ;;  %5190 = vmax.xlane.f32.xlu1 %v5189_v18  ;;  %v12036_v63 = vpop.f32.mrb[22].mxu0 }
 0x31b   :  { %v9574_v37 = vpop.f32.mrb[13].mxu1  ;;  %v9551_v22 = vpop.f32.mrb[23].mxu0  ;;  %v5192_v56 = vsel %vm5182_vm2, %v12036_v63, -inf  ;;  %v5213_v57 = vsel %vm5182_vm2, %v12034_v21, -inf }
 0x31c   :  { %v12040_v5 = vpop.f32.mrb[14].mxu1  ;;  %5193 = vmax.xlane.f32.xlu0 %v5192_v56 }
 0x31d   :  { %v9575_v6 = vpop.f32.mrb[15].mxu1  ;;  %v5216_v13 = vsel %vm5182_vm2, %v12040_v5, -inf }
 0x31e   :  { %5214 = vmax.xlane.f32.xlu1 %v5213_v57 }
 0x320   :  { %5217 = vmax.xlane.f32.xlu0 %v5216_v13 }
 0x326   :  { %v12046_v3 = vpop.f32.mrb[24].mxu0 }
 0x327   :  { %v9556_v30 = vpop.f32.mrb[25].mxu0  ;;  %v5195_v1 = vsel %vm5182_vm2, %v12046_v3, -inf  ;;  %v12050_v7 = vpop.f32.mrb[16].mxu1 }
 0x328   :  { %v12052_v24 = vpop.f32.mrb[26].mxu0  ;;  %5196 = vmax.xlane.f32.xlu0 %v5195_v1  ;;  %v9580_v46 = vpop.f32.mrb[17].mxu1  ;;  %v5219_v23 = vsel %vm5182_vm2, %v12050_v7, -inf }
 0x329   :  { %v9557_v41 = vpop.f32.mrb[27].mxu0  ;;  %v12056_v10 = vpop.f32.mrb[18].mxu1  ;;  %5220 = vmax.xlane.f32.xlu1 %v5219_v23  ;;  %v5198_v47 = vsel %vm5182_vm2, %v12052_v24, -inf }
 0x32a   :  { %v9581_v55 = vpop.f32.mrb[19].mxu1  ;;  %v5222_v4 = vsel %vm5182_vm2, %v12056_v10, -inf }
 0x32c   :  { %5199 = vmax.xlane.f32.xlu0 %v5198_v47 }
 0x330   :  { %5223 = vmax.xlane.f32.xlu0 %v5222_v4 }
 0x331   :  { %v12064_v14 = vpop.f32.mrb[28].mxu0 }
 0x332   :  { %v12062_v48 = vpop.f32.mrb[20].mxu1  ;;  %v9562_v49 = vpop.f32.mrb[29].mxu0  ;;  %v5201_v45 = vsel %vm5182_vm2, %v12064_v14, -inf }
 0x333   :  { %v9586_v35 = vpop.f32.mrb[21].mxu1  ;;  %5202 = vmax.xlane.f32.xlu1 %v5201_v45  ;;  %v12070_v62 = vpop.f32.mrb[30].mxu0  ;;  %v5225_v2 = vsel %vm5182_vm2, %v12062_v48, -inf }
 0x334   :  { %v12068_v8 = vpop.f32.mrb[22].mxu1  ;;  %v9563_v15 = vpop.f32.mrb[31].mxu0  ;;  %v5204_v12 = vsel %vm5182_vm2, %v12070_v62, -inf }
 0x335   :  { %v9587_v27 = vpop.f32.mrb[23].mxu1  ;;  %5205 = vmax.xlane.f32.xlu0 %v5204_v12  ;;  %v5228_v50 = vsel %vm5182_vm2, %v12068_v8, -inf }
 0x337   :  { %5226 = vmax.xlane.f32.xlu1 %v5225_v2 }
 0x339   :  { %5229 = vmax.xlane.f32.xlu0 %v5228_v50 }
 0x345   :  { %v12078_v51 = vpop.f32.mrb[32].mxu0 }
 0x346   :  { %v9592_v11 = vpop.f32.mrb[33].mxu0  ;;  %v5231_v52 = vsel %vm5182_vm2, %v12078_v51, -inf }
 0x347   :  { %5232 = vmax.xlane.f32.xlu1 %v5231_v52  ;;  %v12082_v9 = vpop.f32.mrb[34].mxu0 }
 0x348   :  { %v9593_v59 = vpop.f32.mrb[35].mxu0  ;;  %v5234_v34 = vsel %vm5182_vm2, %v12082_v9, -inf }
 0x349   :  { %5235 = vmax.xlane.f32.xlu0 %v5234_v34 }
 0x34d   :  { %v12086_v18 = vpop.f32.mrb[36].mxu0 }
 0x34e   :  { %v9604_v37 = vpop.f32.mrb[37].mxu0  ;;  %v5243_v15 = vsel %vm5182_vm2, %v12086_v18, -inf }
 0x34f   :  { %v12088_v22 = vpop.f32.mrb[38].mxu0 }
 0x350   :  { %v9605_v56 = vpop.f32.mrb[39].mxu0  ;;  %v5246_v59 = vsel %vm5182_vm2, %v12088_v22, -inf }
 0x358   :  { %v12090_v6 = vpop.f32.mrb[40].mxu0 }
 0x359   :  { %v9616_v57 = vpop.f32.mrb[41].mxu0  ;;  %v5255_v34 = vsel %vm5182_vm2, %v12090_v6, -inf }
 0x35a   :  { %v12092_v13 = vpop.f32.mrb[42].mxu0 }
 0x35b   :  { %v9617_v30 = vpop.f32.mrb[43].mxu0  ;;  %v5258_v57 = vsel %vm5182_vm2, %v12092_v13, -inf }
 0x35f   :  { %v12094_v1 = vpop.f32.mrb[24].mxu1 }
 0x360   :  { %v12096_v46 = vpop.f32.mrb[44].mxu0  ;;  %v9598_v23 = vpop.f32.mrb[25].mxu1  ;;  %v5237_v41 = vsel %vm5182_vm2, %v12094_v1, -inf }
 0x361   :  { %v9628_v55 = vpop.f32.mrb[45].mxu0  ;;  %5238 = vmax.xlane.f32.xlu1 %v5237_v41  ;;  %v12100_v47 = vpop.f32.mrb[26].mxu1 }
 0x362   :  { %v12102_v4 = vpop.f32.mrb[46].mxu0  ;;  %v9599_v49 = vpop.f32.mrb[27].mxu1  ;;  %v5240_v35 = vsel %vm5182_vm2, %v12100_v47, -inf }
 0x363   :  { %v9629_v45 = vpop.f32.mrb[47].mxu0  ;;  %5241 = vmax.xlane.f32.xlu0 %v5240_v35  ;;  %v5267_v49 = vsel %vm5182_vm2, %v12096_v46, -inf }
 0x365   :  { %5244 = vmax.xlane.f32.xlu1 %v5243_v15  ;;  %v5270_v15 = vsel %vm5182_vm2, %v12102_v4, -inf }
 0x367   :  { %v12108_v27 = vpop.f32.mrb[28].mxu1 }
 0x368   :  { %v9610_v12 = vpop.f32.mrb[29].mxu1  ;;  %v5249_v2 = vsel %vm5182_vm2, %v12108_v27, -inf }
 0x369   :  { %5250 = vmax.xlane.f32.xlu0 %v5249_v2  ;;  %v12112_v50 = vpop.f32.mrb[30].mxu1 }
 0x36a   :  { %v9611_v11 = vpop.f32.mrb[31].mxu1  ;;  %v5252_v52 = vsel %vm5182_vm2, %v12112_v50, -inf }
 0x36b   :  { %5253 = vmax.xlane.f32.xlu1 %v5252_v52  ;;  %v12144_v52 = vadd.f32 %v11781_v16, %v13207_v29 }
 0x36d   :  { %5247 = vmax.xlane.f32.xlu0 %v5246_v59 }
 0x36f   :  { %5256 = vmax.xlane.f32.xlu1 %v5255_v34  ;;  %v12120_v37 = vpop.f32.mrb[32].mxu1 }
 0x370   :  { %v9622_v56 = vpop.f32.mrb[33].mxu1  ;;  %v5261_v41 = vsel %vm5182_vm2, %v12120_v37, -inf }
 0x371   :  { %5259 = vmax.xlane.f32.xlu0 %v5258_v57  ;;  %v12124_v30 = vpop.f32.mrb[34].mxu1 }
 0x372   :  { %v9623_v23 = vpop.f32.mrb[35].mxu1  ;;  %v5264_v55 = vsel %vm5182_vm2, %v12124_v30, -inf }
 0x373   :  { %5262 = vmax.xlane.f32.xlu1 %v5261_v41 }
 0x375   :  { %5265 = vmax.xlane.f32.xlu0 %v5264_v55 }
 0x377   :  { %5268 = vmax.xlane.f32.xlu1 %v5267_v49  ;;  %v12132_v35 = vpop.f32.mrb[36].mxu1 }
 0x378   :  { %v9634_v45 = vpop.f32.mrb[37].mxu1  ;;  %v5273_v11 = vsel %vm5182_vm2, %v12132_v35, -inf }
 0x379   :  { %5271 = vmax.xlane.f32.xlu0 %v5270_v15  ;;  %v12136_v12 = vpop.f32.mrb[38].mxu1 }
 0x37a   :  { %v9635_v2 = vpop.f32.mrb[39].mxu1 }
 0x37b   :  { %5274 = vmax.xlane.f32.xlu1 %v5273_v11 }
 0x38b   :  { %v5185_v34 = vpop.xlane.xlu0 %5184 }
 0x38c   :  { %3289 = vrot.lane.b32.xlu1 %v11802_v32, %s10514_s22  ;;  %v12148_v59 = vpop.xlane.xlu1 %5208  ;;  %v5279_v57 = vsub.f32 %v11989_v40, %v5185_v34  ;;  %v5276_v34 = vsel %vm5182_vm2, %v12136_v12, -inf }
 0x38e   :  { %v5311_v41 = vmul.f32 1.442695, %v5279_v57 }
 0x38f   :  { %3279 = vrot.lane.b32.xlu0 %v12144_v52, %s10515_s24  ;;  %v5212_v55 = vpop.xlane.xlu0 %5211 }
 0x390   :  { %v5188_v56 = vpop.xlane.xlu1 %5187  ;;  %10211 = vpow2.f32 %v5311_v41  ;;  %v5288_v45 = vsub.f32 %v12005_v44, %v5212_v55 }
 0x391   :  { %v5280_v23 = vsub.f32 %v11999_v0, %v5188_v56 }
 0x392   :  { %v5329_v16 = vmul.f32 1.442695, %v5288_v45 }
 0x393   :  { %v5313_v49 = vmul.f32 1.442695, %v5280_v23 }
 0x395   :  { %10213 = vpow2.f32 %v5313_v49 }
 0x396   :  { %10215 = vpow2.f32 %v5329_v16 }
 0x39a   :  { %v12156_v11 = vpop.eup %10211 }
 0x39b   :  { %v5375_v44 = vsel %vm5182_vm2, %v12156_v11, 0.0 }
 0x39f   :  { %v12159_v0 = vpop.eup %10213 }
 0x3a7   :  { %v12153_v29 = vpop.xlane.xlu1 %5190 }
 0x3a9   :  { %v5194_v15 = vpop.xlane.xlu0 %5193 }
 0x3aa   :  { %v5282_v2 = vsub.f32 %v12036_v63, %v5194_v15  ;;  %v5378_v63 = vsel %vm5182_vm2, %v12159_v0, 0.0 }
 0x3ab   :  { %v5215_v28 = vpop.xlane.xlu1 %5214 }
 0x3ac   :  { %v5289_v40 = vsub.f32 %v12034_v21, %v5215_v28  ;;  %v5317_v57 = vmul.f32 1.442695, %v5282_v2  ;;  %v12168_v21 = vpop.eup %10215 }
 0x3ad   :  { %v5218_v56 = vpop.xlane.xlu0 %5217  ;;  %v5402_v55 = vsel %vm5182_vm2, %v12168_v21, 0.0 }
 0x3ae   :  { %v5331_v23 = vmul.f32 1.442695, %v5289_v40  ;;  %v5290_v41 = vsub.f32 %v12040_v5, %v5218_v56  ;;  %5277 = vmax.xlane.f32.xlu0 %v5276_v34 }
 0x3b0   :  { %10217 = vpow2.f32 %v5331_v23  ;;  %5376 = vadd.xlane.f32.xlu1 %v5375_v44  ;;  %v5333_v28 = vmul.f32 1.442695, %v5290_v41 }
 0x3b1   :  { %10219 = vpow2.f32 %v5317_v57 }
 0x3b2   :  { %5379 = vadd.xlane.f32.xlu0 %v5378_v63  ;;  %10221 = vpow2.f32 %v5333_v28 }
 0x3b5   :  { %v5197_v49 = vpop.xlane.xlu0 %5196 }
 0x3b6   :  { %5403 = vadd.xlane.f32.xlu0 %v5402_v55  ;;  %v5283_v45 = vsub.f32 %v12046_v3, %v5197_v49  ;;  %v5221_v44 = vpop.xlane.xlu1 %5220 }
 0x3b8   :  { %v5319_v5 = vmul.f32 1.442695, %v5283_v45 }
 0x3b9   :  { %v5200_v15 = vpop.xlane.xlu0 %5199 }
 0x3ba   :  { %v12173_v16 = vpop.eup %10217  ;;  %10223 = vpow2.f32 %v5319_v5  ;;  %v5284_v2 = vsub.f32 %v12052_v24, %v5200_v15 }
 0x3bb   :  { %v5405_v40 = vsel %vm5182_vm2, %v12173_v16, 0.0  ;;  %v12178_v34 = vpop.eup %10219 }
 0x3bc   :  { %5406 = vadd.xlane.f32.xlu0 %v5405_v40  ;;  %v5321_v56 = vmul.f32 1.442695, %v5284_v2  ;;  %v5384_v3 = vsel %vm5182_vm2, %v12178_v34, 0.0  ;;  %v12183_v41 = vpop.eup %10221 }
 0x3bd   :  { %v5224_v57 = vpop.xlane.xlu0 %5223  ;;  %v5408_v55 = vsel %vm5182_vm2, %v12183_v41, 0.0 }
 0x3be   :  { %10225 = vpow2.f32 %v5321_v56  ;;  %v5292_v23 = vsub.f32 %v12056_v10, %v5224_v57 }
 0x3c0   :  { %5385 = vadd.xlane.f32.xlu0 %v5384_v3  ;;  %v5337_v63 = vmul.f32 1.442695, %v5292_v23  ;;  %v5203_v24 = vpop.xlane.xlu1 %5202  ;;  %v5287_v3 = vsub.f32 %v11992_v61, %v12148_v59 }
 0x3c1   :  { %3291 = vrot.lane.b32.xlu1 %v12144_v52, %s10514_s22  ;;  %v5285_v28 = vsub.f32 %v12064_v14, %v5203_v24 }
 0x3c2   :  { %10227 = vpow2.f32 %v5337_v63  ;;  %v5206_v49 = vpop.xlane.xlu0 %5205  ;;  %v5327_v24 = vmul.f32 1.442695, %v5287_v3 }
 0x3c3   :  { %v5323_v45 = vmul.f32 1.442695, %v5285_v28  ;;  %v5281_v28 = vsub.f32 %v12030_v17, %v12153_v29 }
 0x3c4   :  { %5409 = vadd.xlane.f32.xlu0 %v5408_v55  ;;  %v12190_v10 = vpop.eup %10223  ;;  %v5227_v59 = vpop.xlane.xlu1 %5226 }
 0x3c5   :  { %10229 = vpow2.f32 %v5323_v45  ;;  %v5387_v5 = vsel %vm5182_vm2, %v12190_v10, 0.0  ;;  %v5315_v45 = vmul.f32 1.442695, %v5281_v28  ;;  %v5293_v17 = vsub.f32 %v12062_v48, %v5227_v59 }
 0x3c6   :  { %v5230_v15 = vpop.xlane.xlu0 %5229 }
 0x3c7   :  { %v5294_v40 = vsub.f32 %v12068_v8, %v5230_v15  ;;  %v5339_v29 = vmul.f32 1.442695, %v5293_v17 }
 0x3c8   :  { %5388 = vadd.xlane.f32.xlu0 %v5387_v5  ;;  %v12194_v2 = vpop.eup %10225  ;;  %v5291_v5 = vsub.f32 %v12050_v7, %v5221_v44 }
 0x3c9   :  { %v5341_v14 = vmul.f32 1.442695, %v5294_v40  ;;  %v5390_v56 = vsel %vm5182_vm2, %v12194_v2, 0.0 }
 0x3cb   :  { %10231 = vpow2.f32 %v5341_v14 }
 0x3cc   :  { %5391 = vadd.xlane.f32.xlu0 %v5390_v56  ;;  %v12199_v57 = vpop.eup %10227  ;;  %10233 = vpow2.f32 %v5327_v24  ;;  %v5335_v56 = vmul.f32 1.442695, %v5291_v5 }
 0x3cd   :  { %v5414_v23 = vsel %vm5182_vm2, %v12199_v57, 0.0  ;;  %10235 = vpow2.f32 %v5315_v45 }
 0x3cf   :  { %v12205_v63 = vpop.eup %10229 }
 0x3d0   :  { %5415 = vadd.xlane.f32.xlu0 %v5414_v23  ;;  %v5393_v8 = vsel %vm5182_vm2, %v12205_v63, 0.0  ;;  %v5286_v23 = vsub.f32 %v12070_v62, %v5206_v49 }
 0x3d2   :  { %v5325_v44 = vmul.f32 1.442695, %v5286_v23 }
 0x3d4   :  { %5394 = vadd.xlane.f32.xlu0 %v5393_v8  ;;  %v5233_v3 = vpop.xlane.xlu1 %5232 }
 0x3d5   :  { %v12211_v55 = vpop.eup %10231  ;;  %v5295_v8 = vsub.f32 %v12078_v51, %v5233_v3 }
 0x3d6   :  { %v5236_v15 = vpop.xlane.xlu0 %5235  ;;  %v5420_v61 = vsel %vm5182_vm2, %v12211_v55, 0.0  ;;  %v12219_v7 = vpop.eup %10233 }
 0x3d7   :  { %v5296_v40 = vsub.f32 %v12082_v9, %v5236_v15  ;;  %v5399_v9 = vsel %vm5182_vm2, %v12219_v7, 0.0  ;;  %v12224_v24 = vpop.eup %10235  ;;  %v5343_v48 = vmul.f32 1.442695, %v5295_v8 }
 0x3d8   :  { %5421 = vadd.xlane.f32.xlu0 %v5420_v61  ;;  %v5381_v49 = vsel %vm5182_vm2, %v12224_v24, 0.0 }
 0x3d9   :  { %v5345_v14 = vmul.f32 1.442695, %v5296_v40 }
 0x3db   :  { %10237 = vpow2.f32 %v5345_v14 }
 0x3dc   :  { %10239 = vpow2.f32 %v5335_v56 }
 0x3dd   :  { %10241 = vpow2.f32 %v5339_v29 }
 0x3de   :  { %10243 = vpow2.f32 %v5325_v44 }
 0x3df   :  { %10245 = vpow2.f32 %v5343_v48 }
 0x3e5   :  { %5400 = vadd.xlane.f32.xlu1 %v5399_v9  ;;  %v12226_v28 = vpop.eup %10237 }
 0x3e6   :  { %v5426_v62 = vsel %vm5182_vm2, %v12226_v28, 0.0  ;;  %v12232_v45 = vpop.eup %10239 }
 0x3e7   :  { %5427 = vadd.xlane.f32.xlu0 %v5426_v62  ;;  %v5411_v51 = vsel %vm5182_vm2, %v12232_v45, 0.0  ;;  %v12236_v5 = vpop.eup %10241 }
 0x3e8   :  { %v5417_v40 = vsel %vm5182_vm2, %v12236_v5, 0.0  ;;  %v12241_v14 = vpop.eup %10243 }
 0x3e9   :  { %5382 = vadd.xlane.f32.xlu1 %v5381_v49  ;;  %v5396_v44 = vsel %vm5182_vm2, %v12241_v14, 0.0  ;;  %v12247_v8 = vpop.eup %10245 }
 0x3ed   :  { %5412 = vadd.xlane.f32.xlu1 %v5411_v51 }
 0x3ee   :  { %v5239_v15 = vpop.xlane.xlu1 %5238 }
 0x3ef   :  { %v5297_v61 = vsub.f32 %v12094_v1, %v5239_v15 }
 0x3f0   :  { %v5242_v59 = vpop.xlane.xlu0 %5241 }
 0x3f1   :  { %v5347_v56 = vmul.f32 1.442695, %v5297_v61  ;;  %v5298_v17 = vsub.f32 %v12100_v47, %v5242_v59  ;;  %5418 = vadd.xlane.f32.xlu1 %v5417_v40  ;;  %v5423_v47 = vsel %vm5182_vm2, %v12247_v8, 0.0 }
 0x3f2   :  { %v5245_v29 = vpop.xlane.xlu1 %5244 }
 0x3f3   :  { %10247 = vpow2.f32 %v5347_v56  ;;  %v5349_v23 = vmul.f32 1.442695, %v5298_v17  ;;  %v5299_v3 = vsub.f32 %v12086_v18, %v5245_v29 }
 0x3f5   :  { %10249 = vpow2.f32 %v5349_v23  ;;  %v5351_v1 = vmul.f32 1.442695, %v5299_v3  ;;  %5397 = vadd.xlane.f32.xlu1 %v5396_v44 }
 0x3f6   :  { %v5251_v9 = vpop.xlane.xlu0 %5250 }
 0x3f7   :  { %10251 = vpow2.f32 %v5351_v1  ;;  %v5301_v48 = vsub.f32 %v12108_v27, %v5251_v9 }
 0x3f8   :  { %v5254_v62 = vpop.xlane.xlu1 %5253 }
 0x3f9   :  { %v5302_v49 = vsub.f32 %v12112_v50, %v5254_v62  ;;  %5424 = vadd.xlane.f32.xlu1 %v5423_v47 }
 0x3fa   :  { %v5248_v18 = vpop.xlane.xlu0 %5247 }
 0x3fb   :  { %v5300_v51 = vsub.f32 %v12088_v22, %v5248_v18 }
 0x3fc   :  { %v5257_v15 = vpop.xlane.xlu1 %5256 }
 0x3fd   :  { %v12254_v61 = vpop.eup %10247  ;;  %v5353_v59 = vmul.f32 1.442695, %v5300_v51  ;;  %v5303_v40 = vsub.f32 %v12090_v6, %v5257_v15 }
 0x3fe   :  { %v5260_v56 = vpop.xlane.xlu0 %5259  ;;  %v5429_v27 = vsel %vm5182_vm2, %v12254_v61, 0.0 }
 0x3ff   :  { %v12259_v17 = vpop.eup %10249  ;;  %10253 = vpow2.f32 %v5353_v59  ;;  %v5359_v29 = vmul.f32 1.442695, %v5303_v40  ;;  %v5304_v50 = vsub.f32 %v12092_v13, %v5260_v56  ;;  %5430 = vadd.xlane.f32.xlu1 %v5429_v27 }
 0x400   :  { %v5263_v23 = vpop.xlane.xlu1 %5262  ;;  %v5432_v22 = vsel %vm5182_vm2, %v12259_v17, 0.0 }
 0x401   :  { %v12264_v3 = vpop.eup %10251  ;;  %10255 = vpow2.f32 %v5359_v29  ;;  %v5361_v44 = vmul.f32 1.442695, %v5304_v50  ;;  %5433 = vadd.xlane.f32.xlu0 %v5432_v22 }
 0x402   :  { %v5266_v6 = vpop.xlane.xlu0 %5265  ;;  %v5435_v62 = vsel %vm5182_vm2, %v12264_v3, 0.0 }
 0x403   :  { %10257 = vpow2.f32 %v5361_v44  ;;  %v5306_v1 = vsub.f32 %v12124_v30, %v5266_v6 }
 0x404   :  { %v5269_v9 = vpop.xlane.xlu1 %5268 }
 0x405   :  { %v5307_v13 = vsub.f32 %v12096_v46, %v5269_v9  ;;  %5436 = vadd.xlane.f32.xlu0 %v5435_v62  ;;  %v5357_v9 = vmul.f32 1.442695, %v5302_v49 }
 0x406   :  { %v5272_v47 = vpop.xlane.xlu0 %5271 }
 0x407   :  { %v5367_v18 = vmul.f32 1.442695, %v5307_v13  ;;  %v5308_v51 = vsub.f32 %v12102_v4, %v5272_v47  ;;  %v5355_v47 = vmul.f32 1.442695, %v5301_v48 }
 0x408   :  { %v5275_v44 = vpop.xlane.xlu1 %5274 }
 0x409   :  { %v12271_v15 = vpop.eup %10253  ;;  %10259 = vpow2.f32 %v5367_v18  ;;  %v5369_v59 = vmul.f32 1.442695, %v5308_v51  ;;  %v5309_v62 = vsub.f32 %v12132_v35, %v5275_v44  ;;  %v5305_v18 = vsub.f32 %v12120_v37, %v5263_v23 }
 0x40a   :  { %v5438_v40 = vsel %vm5182_vm2, %v12271_v15, 0.0  ;;  %v12295_v6 = vpop.permute.xlu0 %3279 }
 0x40b   :  { %v12275_v56 = vpop.eup %10255  ;;  %10261 = vpow2.f32 %v5369_v59  ;;  %5439 = vadd.xlane.f32.xlu1 %v5438_v40  ;;  %v5371_v59 = vmul.f32 1.442695, %v5309_v62 }
 0x40c   :  { %v5447_v30 = vsel %vm5182_vm2, %v12275_v56, 0.0  ;;  %v12298_v13 = vpop.permute.xlu1 %3289  ;;  %10263 = vpow2.f32 %v5357_v9 }
 0x40d   :  { %v12279_v46 = vpop.eup %10257  ;;  %5448 = vadd.xlane.f32.xlu0 %v5447_v30  ;;  %10265 = vpow2.f32 %v5355_v47  ;;  %v5363_v30 = vmul.f32 1.442695, %v5305_v18 }
 0x40e   :  { %v5450_v4 = vsel %vm5182_vm2, %v12279_v46, 0.0 }
 0x411   :  { %5451 = vadd.xlane.f32.xlu0 %v5450_v4 }
 0x413   :  { %v12283_v27 = vpop.eup %10259 }
 0x414   :  { %v5459_v29 = vsel %vm5182_vm2, %v12283_v27, 0.0 }
 0x415   :  { %v12287_v50 = vpop.eup %10261  ;;  %5460 = vadd.xlane.f32.xlu1 %v5459_v29  ;;  %v5365_v29 = vmul.f32 1.442695, %v5306_v1 }
 0x416   :  { %v5462_v22 = vsel %vm5182_vm2, %v12287_v50, 0.0 }
 0x417   :  { %5463 = vadd.xlane.f32.xlu0 %v5462_v22  ;;  %v12304_v22 = vpop.eup %10263 }
 0x418   :  { %13213 = vst [vmem:[#allocation33_spill] sm:$0xff] %v12304_v22  ;;  %v12306_v48 = vpop.eup %10265  ;;  %v5444_v9 = vsel %vm5182_vm2, %v12304_v22, 0.0 }
 0x419   :  { %13214 = vst [vmem:[#allocation20_spill] sm:$0xff] %v12306_v48 }
 0x426   :  { %3303 = vrot.lane.b32.xlu1 %v12144_v52, %s10516_s2 }
 0x42d   :  { %3301 = vrot.lane.b32.xlu0 %v11802_v32, %s10516_s2 }
 0x43b   :  { %v5278_v51 = vpop.xlane.xlu0 %5277 }
 0x43c   :  { %v5310_v49 = vsub.f32 %v12136_v12, %v5278_v51  ;;  %v5441_v12 = vsel %vm5182_vm2, %v12306_v48, 0.0 }
 0x43d   :  { %v5377_v40 = vpop.xlane.xlu1 %5376 }
 0x43e   :  { %10267 = vrcp.f32 %v5377_v40  ;;  %v5373_v37 = vmul.f32 1.442695, %v5310_v49 }
 0x43f   :  { %v5380_v4 = vpop.xlane.xlu0 %5379  ;;  %10269 = vpow2.f32 %v5371_v59 }
 0x440   :  { %10271 = vrcp.f32 %v5380_v4 }
 0x441   :  { %10273 = vpow2.f32 %v5363_v30 }
 0x442   :  { %10275 = vpow2.f32 %v5365_v29 }
 0x443   :  { %v12302_v35 = vpop.xlane.xlu0 %5403  ;;  %10277 = vpow2.f32 %v5373_v37 }
 0x448   :  { %v10268_v44 = vpop.eup %10267 }
 0x449   :  { %v12308_v23 = vpop.xlane.xlu0 %5406  ;;  %v12312_v62 = vpop.eup %10269  ;;  %v5503_v18 = vmul.f32 %v10268_v44, %v12156_v11 }
 0x44a   :  { %13215 = vst [vmem:[#allocation19_spill] sm:$0xff] %v12312_v62  ;;  %5445 = vadd.xlane.f32.xlu1 %v5444_v9  ;;  %v10272_v1 = vpop.eup %10271  ;;  %v5465_v40 = vsel %vm5182_vm2, %v12312_v62, 0.0 }
 0x44b   :  { %v12316_v47 = vpop.eup %10273  ;;  %v5504_v51 = vmul.f32 %v10272_v1, %v12159_v0 }
 0x44c   :  { %13216 = vst [vmem:[#allocation22_spill] sm:$0xff] %v12316_v47  ;;  %5442 = vadd.xlane.f32.xlu0 %v5441_v12  ;;  %v5453_v4 = vsel %vm5182_vm2, %v12316_v47, 0.0  ;;  %v12326_v29 = vpop.eup %10275  ;;  %v13219_v12 = vld [vmem:[#allocation26_spill] sm:$0xff] }
 0x44d   :  { %v12320_v59 = vpop.xlane.xlu0 %5385  ;;  %v5535_v30 = vpack.c.bf16 %v5504_v51, %v5503_v18  ;;  %13217 = vst [vmem:[#allocation21_spill] sm:$0xff] %v12326_v29  ;;  %v5456_v11 = vsel %vm5182_vm2, %v12326_v29, 0.0  ;;  %v12337_v0 = vpop.eup %10277  ;;  %v3341_v18 = vcombine.low %v13219_v12, %v11859_v19  ;;  %v3342_v51 = vcombine.high %v13219_v12, %v11859_v19 }
 0x44e   :  { %5466 = vadd.xlane.f32.xlu1 %v5465_v40  ;;  %13218 = vst [vmem:[#allocation23_spill] sm:$0xff] %v12337_v0  ;;  %v5468_v44 = vsel %vm5182_vm2, %v12337_v0, 0.0  ;;  %v3357_v40 = vcombine.low %v11829_v39, %v11900_v26  ;;  %v3494_v19 = vcombine.high %v11967_v25, %v11965_v31 }
 0x44f   :  { %9639 = vmatmul.mubr.msk.bf16.vlgmr.msra.gmra.mrb[48].mxu0 %vm5182_vm2, %v5535_v30  ;;  %v3358_v30 = vcombine.high %v11829_v39, %v11900_v26  ;;  %v3349_v0 = vrot.slane %v3341_v18, %v10873_v42  ;;  %v3356_v26 = vrot.slane %v3342_v51, %v10873_v42 }
 0x450   :  { %5454 = vadd.xlane.f32.xlu0 %v5453_v4  ;;  %9649 = vmatpush3.bf16.msra.mxu0 %v11956_v38  ;;  %v13220_v4 = vld [vmem:[#allocation28_spill] sm:$0xff]  ;;  %v3365_v39 = vrot.slane %v3357_v40, %v10873_v42 }
 0x451   :  { %v12329_v49 = vpop.xlane.xlu0 %5409  ;;  %9650 = vmatprep.mubr.msk.bf16.mxu0 %vm10518_vm0, %v13185_v60  ;;  %9660 = vmatprep.subr.bf16.mxu0 %v13185_v60  ;;  %v3478_v62 = vcombine.high %v13220_v4, %v11963_v33  ;;  %v3372_v29 = vrot.slane %v3358_v30, %v10873_v42 }
 0x454   :  { %5457 = vadd.xlane.f32.xlu0 %v5456_v11  ;;  %v3477_v11 = vcombine.low %v13220_v4, %v11963_v33  ;;  %v3492_v33 = vrot.slane %v3478_v62, %v10873_v42  ;;  %v12372_v4 = vpop.permute.xlu1 %3291 }
 0x455   :  { %v5389_v37 = vpop.xlane.xlu0 %5388 }
 0x456   :  { %10279 = vrcp.f32 %v5389_v37  ;;  %v3493_v37 = vcombine.low %v11967_v25, %v11965_v31  ;;  %v3485_v47 = vrot.slane %v3477_v11, %v10873_v42  ;;  %v3405_v31 = vcombine.low %v3349_v0, %v3365_v39 }
 0x457   :  { %v3406_v25 = vcombine.high %v3349_v0, %v3365_v39 }
 0x458   :  { %5469 = vadd.xlane.f32.xlu0 %v5468_v44  ;;  %v3413_v62 = vrot.slane %v3405_v31, %v10878_v53 }
 0x459   :  { %v5392_v9 = vpop.xlane.xlu0 %5391  ;;  %v3420_v11 = vrot.slane %v3406_v25, %v10878_v53 }
 0x45a   :  { %10281 = vrcp.f32 %v5392_v9 }
 0x45b   :  { %10283 = vrcp.f32 %v12302_v35  ;;  %v9223_v39 = vcombine.high %v3413_v62, %v3420_v11 }
 0x45d   :  { %v12388_v35 = vrot.slane %v9223_v39, %v10873_v42 }
 0x460   :  { %v10280_v38 = vpop.eup %10279 }
 0x461   :  { %v5507_v44 = vmul.f32 %v10280_v38, %v12190_v10  ;;  %v3501_v10 = vrot.slane %v3493_v37, %v10873_v42  ;;  %v3421_v38 = vcombine.low %v3356_v26, %v3372_v29 }
 0x463   :  { %v3541_v18 = vcombine.low %v3485_v47, %v3501_v10  ;;  %v3542_v51 = vcombine.high %v3485_v47, %v3501_v10 }
 0x464   :  { %v10282_v1 = vpop.eup %10281 }
 0x465   :  { %v5508_v9 = vmul.f32 %v10282_v1, %v12194_v2  ;;  %v3508_v2 = vrot.slane %v3494_v19, %v10873_v42  ;;  %v3422_v1 = vcombine.high %v3356_v26, %v3372_v29  ;;  %v3556_v0 = vrot.slane %v3542_v51, %v10878_v53 }
 0x467   :  { %v5537_v12 = vpack.c.bf16 %v5508_v9, %v5507_v44  ;;  %v3557_v40 = vcombine.low %v3492_v33, %v3508_v2  ;;  %v3558_v30 = vcombine.high %v3492_v33, %v3508_v2  ;;  %v3436_v37 = vrot.slane %v3422_v1, %v10878_v53  ;;  %v5416_v9 = vpop.xlane.xlu0 %5415 }
 0x468   :  { %v3549_v44 = vrot.slane %v3541_v18, %v10878_v53 }
 0x469   :  { %9651 = vmatmul.mubr.msk.bf16.vlgmr.msra.gmra.mrb[52].mxu0 %vm5182_vm2, %v5537_v12  ;;  %v3565_v29 = vrot.slane %v3557_v40, %v10878_v53  ;;  %v3572_v47 = vrot.slane %v3558_v30, %v10878_v53  ;;  %v9221_v12 = vcombine.low %v3413_v62, %v3420_v11 }
 0x46a   :  { %9661 = vmatpush3.bf16.msra.mxu0 %v11959_v54  ;;  %9662 = vmatprep.mubr.msk.bf16.mxu0 %vm10518_vm0, %v13185_v60  ;;  %v3429_v54 = vrot.slane %v3421_v38, %v10878_v53  ;;  %v9229_v33 = vcombine.low %v3549_v44, %v3556_v0  ;;  %v9231_v2 = vcombine.high %v3549_v44, %v3556_v0 }
 0x46b   :  { %9672 = vmatprep.subr.bf16.mxu0 %v13185_v60  ;;  %v9233_v31 = vcombine.low %v3565_v29, %v3572_v47  ;;  %v9235_v25 = vcombine.high %v3565_v29, %v3572_v47  ;;  %v5395_v38 = vpop.xlane.xlu0 %5394  ;;  %v12385_v18 = vrot.slane %v9221_v12, %v10873_v42 }
 0x46c   :  { %v9225_v26 = vcombine.low %v3429_v54, %v3436_v37  ;;  %v9227_v10 = vcombine.high %v3429_v54, %v3436_v37  ;;  %v12397_v30 = vrot.slane %v9229_v33, %v10873_v42  ;;  %v10284_v37 = vpop.eup %10283 }
 0x46d   :  { %v12403_v62 = vrot.slane %v9233_v31, %v10873_v42  ;;  %v12406_v11 = vrot.slane %v9235_v25, %v10873_v42  ;;  %v3933_v0 = vcombine.low %v12385_v18, %v12388_v35  ;;  %v5512_v39 = vmul.f32 %v10284_v37, %v12168_v21 }
 0x46e   :  { %v12391_v51 = vrot.slane %v9225_v26, %v10873_v42  ;;  %v12394_v40 = vrot.slane %v9227_v10, %v10873_v42 }
 0x46f   :  { %v5422_v44 = vpop.xlane.xlu0 %5421  ;;  %v4101_v12 = vcombine.low %v12403_v62, %v12406_v11 }
 0x470   :  { %v3965_v47 = vcombine.low %v12391_v51, %v12394_v40 }
 0x472   :  { %v5401_v19 = vpop.xlane.xlu1 %5400  ;;  %v3973_v25 = vrot.slane %v3965_v47, %v10878_v53 }
 0x473   :  { %10285 = vrcp.f32 %v5401_v19 }
 0x474   :  { %10287 = vrcp.f32 %v12320_v59  ;;  %v12400_v59 = vrot.slane %v9231_v2, %v10873_v42  ;;  %v3941_v2 = vrot.slane %v3933_v0, %v10878_v53  ;;  %v5428_v22 = vpop.xlane.xlu0 %5427 }
 0x476   :  { %v5383_v1 = vpop.xlane.xlu1 %5382  ;;  %v4069_v19 = vcombine.low %v12397_v30, %v12400_v59 }
 0x477   :  { %10289 = vrcp.f32 %v5383_v1 }
 0x478   :  { %10291 = vrcp.f32 %v5416_v9  ;;  %v4077_v1 = vrot.slane %v4069_v19, %v10878_v53 }
 0x47a   :  { %v5413_v54 = vpop.xlane.xlu1 %5412 }
 0x47b   :  { %10293 = vrcp.f32 %v5413_v54  ;;  %v4109_v54 = vrot.slane %v4101_v12, %v10878_v53 }
 0x47c   :  { %10295 = vrcp.f32 %v5395_v38 }
 0x47d   :  { %v10286_v29 = vpop.eup %10285 }
 0x47e   :  { %v5511_v9 = vmul.f32 %v10286_v29, %v12219_v7  ;;  %v5419_v26 = vpop.xlane.xlu1 %5418  ;;  %v10288_v10 = vpop.eup %10287  ;;  %v3985_v29 = vcombine.low %v3941_v2, %v3973_v25 }
 0x47f   :  { %v5506_v48 = vmul.f32 %v10288_v10, %v12178_v34  ;;  %v4121_v34 = vcombine.low %v4077_v1, %v4109_v54  ;;  %v3986_v10 = vcombine.high %v3941_v2, %v3973_v25 }
 0x480   :  { %v5539_v33 = vpack.c.bf16 %v5512_v39, %v5511_v9 }
 0x481   :  { %v10290_v31 = vpop.eup %10289 }
 0x482   :  { %v5505_v21 = vmul.f32 %v10290_v31, %v12224_v24  ;;  %v5398_v37 = vpop.xlane.xlu1 %5397  ;;  %9663 = vmatmul.mubr.msk.bf16.vlgmr.msra.gmra.mrb[56].mxu0 %vm5182_vm2, %v5539_v33  ;;  %v10292_v7 = vpop.eup %10291  ;;  %v4122_v33 = vcombine.high %v4077_v1, %v4109_v54  ;;  %v3934_v1 = vcombine.high %v12385_v18, %v12388_v35  ;;  %v3966_v54 = vcombine.high %v12391_v51, %v12394_v40 }
 0x483   :  { %10297 = vrcp.f32 %v5398_v37  ;;  %9673 = vmatpush3.bf16.msra.mxu0 %v11961_v43  ;;  %9674 = vmatprep.mubr.msk.bf16.mxu0 %vm10518_vm0, %v13185_v60  ;;  %v5516_v24 = vmul.f32 %v10292_v7, %v12199_v57  ;;  %v4070_v7 = vcombine.high %v12397_v30, %v12400_v59 }
 0x484   :  { %v5536_v38 = vpack.c.bf16 %v5506_v48, %v5505_v21  ;;  %9684 = vmatprep.subr.bf16.mxu0 %v13185_v60  ;;  %10299 = vrcp.f32 %v5428_v22  ;;  %v5559_v22 = vpack.c.bf16 %v4121_v34, %v3985_v29  ;;  %v5561_v2 = vpack.c.bf16 %v4122_v33, %v3986_v10 }
 0x485   :  { %v10294_v0 = vpop.eup %10293  ;;  %10301 = vrcp.f32 %v12329_v49  ;;  %v3948_v35 = vrot.slane %v3934_v1, %v10878_v53  ;;  %v3980_v51 = vrot.slane %v3966_v54, %v10878_v53  ;;  %v4084_v40 = vrot.slane %v4070_v7, %v10878_v53 }
 0x486   :  { %v5515_v47 = vmul.f32 %v10294_v0, %v12232_v45  ;;  %v5425_v19 = vpop.xlane.xlu1 %5424  ;;  %9645 = vmatmul.mubr.msk.bf16.vlgmr.msra.gmra.mrb[40].mxu1 %vm5182_vm2, %v5536_v38  ;;  %v10296_v57 = vpop.eup %10295  ;;  %v4102_v38 = vcombine.high %v12403_v62, %v12406_v11 }
 0x487   :  { %10303 = vrcp.f32 %v5425_v19  ;;  %9655 = vmatpush3.bf16.msra.mxu1 %v12023_v36  ;;  %9656 = vmatprep.mubr.msk.bf16.mxu1 %vm10518_vm0, %v13185_v60  ;;  %v5509_v36 = vmul.f32 %v10296_v57, %v12205_v63  ;;  %v3987_v29 = vcombine.low %v3948_v35, %v3980_v51  ;;  %v3750_v19 = vcombine.high %v12144_v52, %v12372_v4 }
 0x488   :  { %v5541_v43 = vpack.c.bf16 %v5516_v24, %v5515_v47  ;;  %9666 = vmatprep.subr.bf16.mxu1 %v13185_v60  ;;  %10305 = vrcp.f32 %v12308_v23  ;;  %v4116_v30 = vrot.slane %v4102_v38, %v10878_v53  ;;  %v3749_v47 = vcombine.low %v12144_v52, %v12372_v4 }
 0x489   :  { %10307 = vrcp.f32 %v5419_v26 }
 0x48a   :  { %9675 = vmatmul.mubr.msk.bf16.vlgmr.msra.gmra.mrb[60].mxu0 %vm5182_vm2, %v5541_v43  ;;  %10309 = vrcp.f32 %v5422_v44  ;;  %v4123_v34 = vcombine.low %v4084_v40, %v4116_v30  ;;  %v4124_v24 = vcombine.high %v4084_v40, %v4116_v30 }
 0x48b   :  { %9685 = vmatpush3.bf16.msra.mxu0 %v5559_v22  ;;  %9686 = vmatprep.mubr.msk.bf16.mxu0 %vm10518_vm0, %v13185_v60 }
 0x48c   :  { %9696 = vmatprep.subr.bf16.mxu0 %v13185_v60  ;;  %v12448_v37 = vpop.xlane.xlu1 %5430  ;;  %v5563_v52 = vpack.c.bf16 %v4123_v34, %v3987_v29 }
 0x48d   :  { %v10298_v45 = vpop.eup %10297 }
 0x48e   :  { %v12443_v48 = vpop.xlane.xlu0 %5433  ;;  %v5510_v49 = vmul.f32 %v10298_v45, %v12241_v14  ;;  %v10300_v12 = vpop.eup %10299  ;;  %v3613_v45 = vcombine.low %v11802_v32, %v12298_v13 }
 0x48f   :  { %v10302_v23 = vpop.eup %10301  ;;  %v5520_v31 = vmul.f32 %v10300_v12, %v12226_v28 }
 0x490   :  { %v5538_v39 = vpack.c.bf16 %v5510_v49, %v5509_v36  ;;  %v5514_v14 = vmul.f32 %v10302_v23, %v12183_v41  ;;  %v3614_v36 = vcombine.high %v11802_v32, %v12298_v13 }
 0x491   :  { %v10304_v9 = vpop.eup %10303 }
 0x492   :  { %v5519_v21 = vmul.f32 %v10304_v9, %v12247_v8  ;;  %9657 = vmatmul.mubr.msk.bf16.vlgmr.msra.gmra.mrb[44].mxu1 %vm5182_vm2, %v5538_v39  ;;  %v10306_v63 = vpop.eup %10305  ;;  %v5437_v26 = vpop.xlane.xlu0 %5436 }
 0x493   :  { %9667 = vmatpush3.bf16.msra.mxu1 %v12025_v20  ;;  %9668 = vmatprep.mubr.msk.bf16.mxu1 %vm10518_vm0, %v13185_v60  ;;  %v5513_v28 = vmul.f32 %v10306_v63, %v12173_v16  ;;  %10311 = vrcp.f32 %v5437_v26  ;;  %v10308_v25 = vpop.eup %10307 }
 0x494   :  { %v5543_v44 = vpack.c.bf16 %v5520_v31, %v5519_v21  ;;  %9678 = vmatprep.subr.bf16.mxu1 %v13185_v60  ;;  %v10310_v16 = vpop.eup %10309  ;;  %v5517_v0 = vmul.f32 %v10308_v25, %v12236_v5  ;;  %v13221_v31 = vld [vmem:[#allocation32_spill] sm:$0xff] }
 0x495   :  { %v5540_v8 = vpack.c.bf16 %v5514_v14, %v5513_v28  ;;  %v5518_v18 = vmul.f32 %v10310_v16, %v12211_v55  ;;  %v3988_v55 = vcombine.high %v3948_v35, %v3980_v51  ;;  %v3628_v14 = vrot.slane %v3614_v36, %v10873_v42 }
 0x496   :  { %9687 = vmatmul.mubr.msk.bf16.vlgmr.msra.gmra.mrb[64].mxu0 %vm5182_vm2, %v5543_v44 }
 0x497   :  { %9697 = vmatpush3.bf16.msra.mxu0 %v5561_v2  ;;  %9698 = vmatprep.mubr.msk.bf16.mxu0 %vm10518_vm0, %v13185_v60  ;;  %v5542_v59 = vpack.c.bf16 %v5518_v18, %v5517_v0  ;;  %v5565_v10 = vpack.c.bf16 %v4124_v24, %v3988_v55 }
 0x498   :  { %v5440_v20 = vpop.xlane.xlu1 %5439  ;;  %9708 = vmatprep.subr.bf16.mxu0 %v13185_v60 }
 0x499   :  { %10313 = vrcp.f32 %v5440_v20 }
 0x49a   :  { %v5449_v41 = vpop.xlane.xlu0 %5448  ;;  %9669 = vmatmul.mubr.msk.bf16.vlgmr.msra.gmra.mrb[48].mxu1 %vm5182_vm2, %v5540_v8 }
 0x49b   :  { %9679 = vmatpush3.bf16.msra.mxu1 %v12027_v58  ;;  %9680 = vmatprep.mubr.msk.bf16.mxu1 %vm10518_vm0, %v13185_v60  ;;  %10315 = vrcp.f32 %v5449_v41 }
 0x49c   :  { %9690 = vmatprep.subr.bf16.mxu1 %v13185_v60 }
 0x49d   :  { %v10312_v62 = vpop.eup %10311 }
 0x49e   :  { %v5452_v58 = vpop.xlane.xlu0 %5451  ;;  %v5523_v43 = vmul.f32 %v10312_v62, %v12264_v3  ;;  %v3757_v3 = vrot.slane %v3749_v47, %v10873_v42 }
 0x49f   :  { %10317 = vrcp.f32 %v5452_v58 }
 0x4a2   :  { %v5461_v11 = vpop.xlane.xlu1 %5460  ;;  %9681 = vmatmul.mubr.msk.bf16.vlgmr.msra.gmra.mrb[52].mxu1 %vm5182_vm2, %v5542_v59 }
 0x4a3   :  { %v10314_v5 = vpop.eup %10313  ;;  %9692 = vmatprep.mubr.msk.bf16.mxu1 %vm10518_vm0, %v13185_v60 }
 0x4a4   :  { %v5524_v22 = vmul.f32 %v10314_v5, %v12271_v15  ;;  %v5464_v57 = vpop.xlane.xlu0 %5463  ;;  %v3764_v15 = vrot.slane %v3750_v19, %v10873_v42 }
 0x4a5   :  { %10319 = vrcp.f32 %v5464_v57  ;;  %v10316_v4 = vpop.eup %10315 }
 0x4a6   :  { %10321 = vrcp.f32 %v5461_v11  ;;  %v3304_v49 = vpop.permute.xlu1 %3303  ;;  %v5545_v12 = vpack.c.bf16 %v5524_v22, %v5523_v43  ;;  %v5527_v8 = vmul.f32 %v10316_v4, %v12275_v56 }
 0x4a7   :  { %v3765_v23 = vcombine.low %v12295_v6, %v3304_v49  ;;  %v3766_v39 = vcombine.high %v12295_v6, %v3304_v49  ;;  %v3621_v6 = vrot.slane %v3613_v45, %v10873_v42  ;;  %10323 = vrcp.f32 %v12448_v37 }
 0x4a8   :  { %v3302_v9 = vpop.permute.xlu0 %3301  ;;  %9699 = vmatmul.mubr.msk.bf16.vlgmr.msra.gmra.mrb[68].mxu0 %vm5182_vm2, %v5545_v12  ;;  %10325 = vrcp.f32 %v12443_v48 }
 0x4a9   :  { %v10318_v33 = vpop.eup %10317  ;;  %v3773_v32 = vrot.slane %v3765_v23, %v10873_v42  ;;  %v3780_v13 = vrot.slane %v3766_v39, %v10873_v42  ;;  %v3629_v21 = vcombine.low %v13221_v31, %v3302_v9  ;;  %v3630_v63 = vcombine.high %v13221_v31, %v3302_v9  ;;  %9709 = vmatpush3.bf16.msra.mxu0 %v5563_v52 }
 0x4aa   :  { %v5528_v26 = vmul.f32 %v10318_v33, %v12279_v46  ;;  %9710 = vmatprep.mubr.msk.bf16.mxu0 %vm10518_vm0, %v13185_v60  ;;  %9720 = vmatprep.subr.bf16.mxu0 %v13185_v60 }
 0x4ab   :  { %v3813_v44 = vcombine.low %v3757_v3, %v3773_v32  ;;  %v3814_v2 = vcombine.high %v3757_v3, %v3773_v32  ;;  %v3829_v28 = vcombine.low %v3764_v15, %v3780_v13  ;;  %v3830_v20 = vcombine.high %v3764_v15, %v3780_v13 }
 0x4ac   :  { %v3637_v25 = vrot.slane %v3629_v21, %v10873_v42  ;;  %v3644_v41 = vrot.slane %v3630_v63, %v10873_v42  ;;  %v5547_v0 = vpack.c.bf16 %v5528_v26, %v5527_v8 }
 0x4ad   :  { %v3821_v37 = vrot.slane %v3813_v44, %v10878_v53  ;;  %v3828_v46 = vrot.slane %v3814_v2, %v10878_v53  ;;  %v3837_v1 = vrot.slane %v3829_v28, %v10878_v53  ;;  %v3844_v16 = vrot.slane %v3830_v20, %v10878_v53 }
 0x4ae   :  { %v3677_v54 = vcombine.low %v3621_v6, %v3637_v25  ;;  %v3678_v7 = vcombine.high %v3621_v6, %v3637_v25  ;;  %v3693_v38 = vcombine.low %v3628_v14, %v3644_v41  ;;  %v3694_v62 = vcombine.high %v3628_v14, %v3644_v41 }
 0x4af   :  { %v10320_v18 = vpop.eup %10319  ;;  %v9245_v48 = vcombine.low %v3821_v37, %v3828_v46  ;;  %v9247_v58 = vcombine.high %v3821_v37, %v3828_v46  ;;  %v9249_v56 = vcombine.low %v3837_v1, %v3844_v16  ;;  %v9251_v35 = vcombine.high %v3837_v1, %v3844_v16 }
 0x4b0   :  { %v10322_v51 = vpop.eup %10321  ;;  %v5532_v40 = vmul.f32 %v10320_v18, %v12287_v50  ;;  %v3685_v30 = vrot.slane %v3677_v54, %v10878_v53  ;;  %v3692_v59 = vrot.slane %v3678_v7, %v10878_v53  ;;  %9711 = vmatmul.mubr.msk.bf16.vlgmr.msra.gmra.mrb[72].mxu0 %vm5182_vm2, %v5547_v0  ;;  %v3701_v55 = vrot.slane %v3693_v38, %v10878_v53  ;;  %v13222_v0 = vld [vmem:[#allocation33_spill] sm:$0xff] }
 0x4b1   :  { %v4276_v11 = vrot.slane %v9245_v48, %v10873_v42  ;;  %v4292_v5 = vrot.slane %v9247_v58, %v10873_v42  ;;  %v4308_v29 = vrot.slane %v9249_v56, %v10873_v42  ;;  %v4324_v34 = vrot.slane %v9251_v35, %v10873_v42  ;;  %9721 = vmatpush3.bf16.msra.mxu0 %v5565_v10  ;;  %v10324_v57 = vpop.eup %10323  ;;  %v13223_v48 = vld [vmem:[#allocation20_spill] sm:$0xff] }
 0x4b2   :  { %v3708_v50 = vrot.slane %v3694_v62, %v10878_v53  ;;  %v9237_v24 = vcombine.low %v3685_v30, %v3692_v59  ;;  %v9239_v47 = vcombine.high %v3685_v30, %v3692_v59  ;;  %9722 = vmatprep.mubr.msk.bf16.mxu0 %vm10518_vm0, %v13185_v60  ;;  %v5531_v19 = vmul.f32 %v10322_v51, %v12283_v27  ;;  %v10326_v23 = vpop.eup %10325 }
 0x4b3   :  { %v4341_v43 = vcombine.low %v4276_v11, %v4292_v5  ;;  %v4373_v22 = vcombine.low %v4308_v29, %v4324_v34  ;;  %v5521_v31 = vmul.f32 %v10324_v57, %v12254_v61  ;;  %v5522_v6 = vmul.f32 %v10326_v23, %v12259_v17 }
 0x4b4   :  { %v4140_v45 = vrot.slane %v9237_v24, %v10873_v42  ;;  %v4156_v36 = vrot.slane %v9239_v47, %v10873_v42  ;;  %v9241_v49 = vcombine.low %v3701_v55, %v3708_v50  ;;  %v9243_v12 = vcombine.high %v3701_v55, %v3708_v50 }
 0x4b5   :  { %v5549_v3 = vpack.c.bf16 %v5532_v40, %v5531_v19  ;;  %v4349_v27 = vrot.slane %v4341_v43, %v10878_v53  ;;  %v4381_v10 = vrot.slane %v4373_v22, %v10878_v53  ;;  %v5544_v26 = vpack.c.bf16 %v5522_v6, %v5521_v31  ;;  %v13226_v22 = vld [vmem:[#allocation23_spill] sm:$0xff] }
 0x4b6   :  { %v4172_v39 = vrot.slane %v9241_v49, %v10873_v42  ;;  %v4188_v52 = vrot.slane %v9243_v12, %v10873_v42  ;;  %v4205_v4 = vcombine.low %v4140_v45, %v4156_v36  ;;  %v4206_v28 = vcombine.high %v4140_v45, %v4156_v36  ;;  %v13227_v45 = vld [vmem:[#allocation19_spill] sm:$0xff] }
 0x4b7   :  { %v4393_v13 = vcombine.low %v4349_v27, %v4381_v10  ;;  %v4394_v14 = vcombine.high %v4349_v27, %v4381_v10  ;;  %v4342_v8 = vcombine.high %v4276_v11, %v4292_v5  ;;  %v4374_v25 = vcombine.high %v4308_v29, %v4324_v34  ;;  %v13224_v5 = vld [vmem:[#allocation22_spill] sm:$0xff]  ;;  %v13225_v34 = vld [vmem:[#allocation21_spill] sm:$0xff] }
 0x4b8   :  { %v4213_v15 = vrot.slane %v4205_v4, %v10878_v53  ;;  %v4237_v9 = vcombine.low %v4172_v39, %v4188_v52  ;;  %9723 = vmatmul.mubr.msk.bf16.vlgmr.msra.gmra.mrb[76].mxu0 %vm5182_vm2, %v5549_v3  ;;  %v4238_v17 = vcombine.high %v4172_v39, %v4188_v52  ;;  %v4220_v41 = vrot.slane %v4206_v28, %v10878_v53 }
 0x4b9   :  { %v4356_v16 = vrot.slane %v4342_v8, %v10878_v53  ;;  %v4388_v54 = vrot.slane %v4374_v25, %v10878_v53 }
 0x4ba   :  { %v4245_v33 = vrot.slane %v4237_v9, %v10878_v53  ;;  %v4252_v37 = vrot.slane %v4238_v17, %v10878_v53 }
 0x4bb   :  { %v4395_v51 = vcombine.low %v4356_v16, %v4388_v54  ;;  %v4396_v50 = vcombine.high %v4356_v16, %v4388_v54 }
 0x4bc   :  { %v4257_v32 = vcombine.low %v4213_v15, %v4245_v33  ;;  %v4258_v63 = vcombine.high %v4213_v15, %v4245_v33  ;;  %v4259_v38 = vcombine.low %v4220_v41, %v4252_v37  ;;  %v4260_v11 = vcombine.high %v4220_v41, %v4252_v37 }
 0x4be   :  { %v5560_v21 = vpack.c.bf16 %v4393_v13, %v4257_v32  ;;  %v5562_v44 = vpack.c.bf16 %v4394_v14, %v4258_v63  ;;  %v5564_v30 = vpack.c.bf16 %v4395_v51, %v4259_v38  ;;  %v5566_v19 = vpack.c.bf16 %v4396_v50, %v4260_v11 }
 0x4c0   :  { %9691 = vmatpush3.bf16.msra.mxu1 %v5560_v21 }
 0x4c1   :  { %9702 = vmatprep.subr.bf16.mxu1 %v13185_v60 }
 0x4c3   :  { %9693 = vmatmul.mubr.msk.bf16.vlgmr.msra.gmra.mrb[56].mxu1 %vm5182_vm2, %v5544_v26 }
 0x4c4   :  { %9703 = vmatpush3.bf16.msra.mxu1 %v5562_v44  ;;  %9704 = vmatprep.mubr.msk.bf16.mxu1 %vm10518_vm0, %v13185_v60 }
 0x4c5   :  { %9714 = vmatprep.subr.bf16.mxu1 %v13185_v60 }
 0x4d7   :  { %v5446_v2 = vpop.xlane.xlu1 %5445 }
 0x4d8   :  { %10327 = vrcp.f32 %v5446_v2 }
 0x4d9   :  { %v5443_v61 = vpop.xlane.xlu0 %5442 }
 0x4da   :  { %10329 = vrcp.f32 %v5443_v61 }
 0x4db   :  { %v5467_v56 = vpop.xlane.xlu1 %5466 }
 0x4dd   :  { %v5455_v20 = vpop.xlane.xlu0 %5454 }
 0x4de   :  { %10331 = vrcp.f32 %v5455_v20 }
 0x4e1   :  { %v5458_v46 = vpop.xlane.xlu0 %5457 }
 0x4e2   :  { %v10328_v1 = vpop.eup %10327  ;;  %10333 = vrcp.f32 %v5458_v46 }
 0x4e3   :  { %v5526_v18 = vmul.f32 %v10328_v1, %v13222_v0 }
 0x4e4   :  { %v10330_v7 = vpop.eup %10329 }
 0x4e5   :  { %v5525_v58 = vmul.f32 %v10330_v7, %v13223_v48  ;;  %v5470_v35 = vpop.xlane.xlu0 %5469 }
 0x4e6   :  { %10335 = vrcp.f32 %v5470_v35 }
 0x4e7   :  { %v5546_v40 = vpack.c.bf16 %v5526_v18, %v5525_v58  ;;  %10337 = vrcp.f32 %v5467_v56 }
 0x4e8   :  { %v10332_v59 = vpop.eup %10331 }
 0x4e9   :  { %9705 = vmatmul.mubr.msk.bf16.vlgmr.msra.gmra.mrb[60].mxu1 %vm5182_vm2, %v5546_v40  ;;  %v5529_v29 = vmul.f32 %v10332_v59, %v13224_v5  ;;  %v9973_v59 = vld [vmem:[#allocation7 + $0x4] ss:$8 sps:$4 sm:$0xff]  }
 0x4ea   :  { %9715 = vmatpush3.bf16.msra.mxu1 %v5564_v30  ;;  %9716 = vmatprep.mubr.msk.bf16.mxu1 %vm10518_vm0, %v13185_v60  ;;  %v9971_v30 = vld [vmem:[#allocation7] ss:$8 sps:$4 sm:$0xff]  }
 0x4eb   :  { %9726 = vmatprep.subr.bf16.mxu1 %v13185_v60  ;;  %7689 = vmatprep.subr.bf16.mxu0 %v9973_v59 }
 0x4ec   :  { %v10334_v62 = vpop.eup %10333  ;;  %7690 = vmatpush1.bf16.msra.mxu0 %v9971_v30 }
 0x4ed   :  { %v5530_v55 = vmul.f32 %v10334_v62, %v13225_v34 }
 0x4ef   :  { %v5548_v24 = vpack.c.bf16 %v5530_v55, %v5529_v29 }
 0x4f0   :  { %v10336_v47 = vpop.eup %10335 }
 0x4f1   :  { %9717 = vmatmul.mubr.msk.bf16.vlgmr.msra.gmra.mrb[64].mxu1 %vm5182_vm2, %v5548_v24  ;;  %v10338_v43 = vpop.eup %10337  ;;  %v5534_v57 = vmul.f32 %v10336_v47, %v13226_v22 }
 0x4f2   :  { %9727 = vmatpush3.bf16.msra.mxu1 %v5566_v19  ;;  %9728 = vmatprep.mubr.msk.bf16.mxu1 %vm10518_vm0, %v13185_v60  ;;  %v5533_v36 = vmul.f32 %v10338_v43, %v13227_v45 }
 0x4f4   :  { %v5550_v49 = vpack.c.bf16 %v5534_v57, %v5533_v36 }
 0x4f9   :  { %9729 = vmatmul.mubr.msk.bf16.vlgmr.msra.gmra.mrb[68].mxu1 %vm5182_vm2, %v5550_v49 }
 0x522   :  { %v5604_v12 = vpop.f32.mrb[48].mxu0 }
 0x523   :  { %v9640_v23 = vpop.f32.mrb[49].mxu0 }
 0x524   :  { %v5607_v39 = vpop.f32.mrb[50].mxu0 }
 0x525   :  { %v9641_v52 = vpop.f32.mrb[51].mxu0 }
 0x53c   :  { %v5692_v4 = vpop.f32.mrb[52].mxu0 }
 0x53d   :  { %v9652_v3 = vpop.f32.mrb[53].mxu0 }
 0x53e   :  { %v5695_v15 = vpop.f32.mrb[54].mxu0  ;;  %v9976_v3 = vld [vmem:[#allocation7 + $0x14] ss:$8 sps:$4 sm:$0xff]  }
 0x53f   :  { %v9653_v9 = vpop.f32.mrb[55].mxu0  ;;  %7691 = vmatprep.subr.bf16.mxu0 %v9976_v3 }
 0x555   :  { %v5780_v27 = vpop.f32.mrb[56].mxu0 }
 0x556   :  { %v6271_v10 = vcombine.low %v5604_v12, %v5780_v27  ;;  %v6272_v33 = vcombine.high %v5604_v12, %v5780_v27  ;;  %v9664_v32 = vpop.f32.mrb[57].mxu0 }
 0x557   :  { %v5783_v60 = vpop.f32.mrb[58].mxu0 }
 0x558   :  { %v6407_v13 = vcombine.low %v5607_v39, %v5783_v60  ;;  %v6408_v31 = vcombine.high %v5607_v39, %v5783_v60  ;;  %v9665_v21 = vpop.f32.mrb[59].mxu0  ;;  %v6279_v17 = vrot.slane %v6271_v10, %v10873_v42  ;;  %v6286_v20 = vrot.slane %v6272_v33, %v10873_v42 }
 0x559   :  { %v12564_v63 = vpop.f32.mrb[40].mxu1 }
 0x55a   :  { %v9646_v6 = vpop.f32.mrb[41].mxu1  ;;  %v6415_v0 = vrot.slane %v6407_v13, %v10873_v42  ;;  %v6422_v18 = vrot.slane %v6408_v31, %v10873_v42 }
 0x55b   :  { %v12566_v14 = vpop.f32.mrb[42].mxu1 }
 0x55c   :  { %v9647_v26 = vpop.f32.mrb[43].mxu1 }
 0x55d   :  { %v5868_v44 = vpop.f32.mrb[60].mxu0 }
 0x55e   :  { %v6287_v2 = vcombine.low %v5692_v4, %v5868_v44  ;;  %v6288_v61 = vcombine.high %v5692_v4, %v5868_v44  ;;  %v9676_v28 = vpop.f32.mrb[61].mxu0  ;;  %v9974_v4 = vld [vmem:[#allocation7 + $0x10] ss:$8 sps:$4 sm:$0xff]  }
 0x55f   :  { %v5871_v8 = vpop.f32.mrb[62].mxu0  ;;  %7692 = vmatpush1.bf16.msra.mxu0 %v9974_v4 }
 0x560   :  { %v6295_v25 = vrot.slane %v6287_v2, %v10873_v42  ;;  %v6302_v41 = vrot.slane %v6288_v61, %v10873_v42  ;;  %v6423_v37 = vcombine.low %v5695_v15, %v5871_v8  ;;  %v6424_v46 = vcombine.high %v5695_v15, %v5871_v8  ;;  %v9677_v1 = vpop.f32.mrb[63].mxu0 }
 0x562   :  { %v6335_v16 = vcombine.low %v6279_v17, %v6295_v25  ;;  %v6336_v54 = vcombine.high %v6279_v17, %v6295_v25  ;;  %v6351_v7 = vcombine.low %v6286_v20, %v6302_v41  ;;  %v6352_v38 = vcombine.high %v6286_v20, %v6302_v41  ;;  %v9977_v41 = vld [vmem:[#allocation7 + $0x20] ss:$8 sps:$4 sm:$0xff]  }
 0x563   :  { %v6431_v48 = vrot.slane %v6423_v37, %v10873_v42  ;;  %v6438_v58 = vrot.slane %v6424_v46, %v10873_v42  ;;  %v9979_v37 = vld [vmem:[#allocation7 + $0x24] ss:$8 sps:$4 sm:$0xff]  }
 0x564   :  { %v6343_v56 = vrot.slane %v6335_v16, %v10878_v53  ;;  %v6350_v35 = vrot.slane %v6336_v54, %v10878_v53  ;;  %v6359_v51 = vrot.slane %v6351_v7, %v10878_v53  ;;  %v6366_v40 = vrot.slane %v6352_v38, %v10878_v53  ;;  %v9982_v38 = vld [vmem:[#allocation7 + $0x34] ss:$8 sps:$4 sm:$0xff]   ;;  %7693 = vmatprep.subr.bf16.mxu0 %v9979_v37 }
 0x565   :  { %v6471_v62 = vcombine.low %v6415_v0, %v6431_v48  ;;  %v6472_v11 = vcombine.high %v6415_v0, %v6431_v48  ;;  %v6487_v5 = vcombine.low %v6422_v18, %v6438_v58  ;;  %v6488_v29 = vcombine.high %v6422_v18, %v6438_v58  ;;  %v12580_v34 = vpop.f32.mrb[44].mxu1  ;;  %7694 = vmatpush1.bf16.msra.mxu0 %v9977_v41  ;;  %v9989_v41 = vld [vmem:[#allocation7 + $0x60] ss:$8 sps:$4 sm:$0xff]  }
 0x566   :  { %v9284_v55 = vcombine.low %v6343_v56, %v6350_v35  ;;  %v9286_v50 = vcombine.high %v6343_v56, %v6350_v35  ;;  %v9288_v24 = vcombine.low %v6359_v51, %v6366_v40  ;;  %v9290_v47 = vcombine.high %v6359_v51, %v6366_v40  ;;  %v9658_v19 = vpop.f32.mrb[45].mxu1  ;;  %7695 = vmatprep.subr.bf16.mxu0 %v9982_v38 }
 0x567   :  { %v6479_v43 = vrot.slane %v6471_v62, %v10878_v53  ;;  %v6486_v22 = vrot.slane %v6472_v11, %v10878_v53  ;;  %v6495_v57 = vrot.slane %v6487_v5, %v10878_v53  ;;  %v6502_v45 = vrot.slane %v6488_v29, %v10878_v53  ;;  %v12586_v36 = vpop.f32.mrb[46].mxu1  ;;  %v9980_v62 = vld [vmem:[#allocation7 + $0x30] ss:$8 sps:$4 sm:$0xff]   ;;  %v9985_v29 = vld [vmem:[#allocation7 + $0x44] ss:$8 sps:$4 sm:$0xff]  }
 0x568   :  { %v6823_v49 = vrot.slane %v9284_v55, %v10873_v42  ;;  %v6839_v12 = vrot.slane %v9286_v50, %v10873_v42  ;;  %v6855_v23 = vrot.slane %v9288_v24, %v10873_v42  ;;  %v6871_v39 = vrot.slane %v9290_v47, %v10873_v42  ;;  %v9659_v52 = vpop.f32.mrb[47].mxu1 }
 0x569   :  { %v9292_v15 = vcombine.low %v6479_v43, %v6486_v22  ;;  %v9294_v9 = vcombine.high %v6479_v43, %v6486_v22  ;;  %v9296_v27 = vcombine.low %v6495_v57, %v6502_v45  ;;  %v9298_v10 = vcombine.high %v6495_v57, %v6502_v45  ;;  %v12592_v33 = vpop.f32.mrb[64].mxu0  ;;  %7696 = vmatpush1.bf16.msra.mxu0 %v9980_v62 }
 0x56a   :  { %v9688_v32 = vpop.f32.mrb[65].mxu0  ;;  %v6880_v60 = vcombine.high %v6823_v49, %v6839_v12  ;;  %v6912_v13 = vcombine.high %v6855_v23, %v6871_v39  ;;  %v6879_v31 = vcombine.low %v6823_v49, %v6839_v12  ;;  %v6911_v21 = vcombine.low %v6855_v23, %v6871_v39  ;;  %7697 = vmatprep.subr.bf16.mxu0 %v9985_v29  ;;  %v9988_v49 = vld [vmem:[#allocation7 + $0x54] ss:$8 sps:$4 sm:$0xff]   ;;  %v9992_v29 = vld [vmem:[#allocation7 + $0x70] ss:$8 sps:$4 sm:$0xff]  }
 0x56b   :  { %v6959_v6 = vrot.slane %v9292_v15, %v10873_v42  ;;  %v6975_v26 = vrot.slane %v9294_v9, %v10873_v42  ;;  %v6991_v44 = vrot.slane %v9296_v27, %v10873_v42  ;;  %v7007_v2 = vrot.slane %v9298_v10, %v10873_v42  ;;  %v12598_v61 = vpop.f32.mrb[66].mxu0  ;;  %v9986_v9 = vld [vmem:[#allocation7 + $0x50] ss:$8 sps:$4 sm:$0xff]  }
 0x56c   :  { %v9689_v28 = vpop.f32.mrb[67].mxu0  ;;  %v6894_v17 = vrot.slane %v6880_v60, %v10878_v53  ;;  %v6926_v20 = vrot.slane %v6912_v13, %v10878_v53  ;;  %v12603_v8 = vrot.slane %v6879_v31, %v10878_v53  ;;  %v12606_v25 = vrot.slane %v6911_v21, %v10878_v53  ;;  %v9991_v31 = vld [vmem:[#allocation7 + $0x64] ss:$8 sps:$4 sm:$0xff]  }
 0x56d   :  { %v5824_v46 = vpop.f32.mrb[48].mxu1  ;;  %v7016_v1 = vcombine.high %v6959_v6, %v6975_v26  ;;  %v7048_v16 = vcombine.high %v6991_v44, %v7007_v2  ;;  %v7015_v54 = vcombine.low %v6959_v6, %v6975_v26  ;;  %v7047_v7 = vcombine.low %v6991_v44, %v7007_v2 }
 0x56e   :  { %v6543_v0 = vcombine.low %v12564_v63, %v5824_v46  ;;  %v6544_v18 = vcombine.high %v12564_v63, %v5824_v46  ;;  %v9670_v48 = vpop.f32.mrb[49].mxu1  ;;  %v6945_v58 = vcombine.low %v6894_v17, %v6926_v20  ;;  %v6944_v56 = vcombine.high %v12603_v8, %v12606_v25 }
 0x56f   :  { %v5827_v35 = vpop.f32.mrb[50].mxu1  ;;  %v7030_v51 = vrot.slane %v7016_v1, %v10878_v53  ;;  %v7062_v40 = vrot.slane %v7048_v16, %v10878_v53  ;;  %v12615_v30 = vrot.slane %v7015_v54, %v10878_v53  ;;  %v12618_v59 = vrot.slane %v7047_v7, %v10878_v53  ;;  %v9994_v54 = vld [vmem:[#allocation7 + $0x74] ss:$8 sps:$4 sm:$0xff]  }
 0x570   :  { %v6679_v63 = vcombine.low %v12566_v14, %v5827_v35  ;;  %v6680_v11 = vcombine.high %v12566_v14, %v5827_v35  ;;  %v9671_v5 = vpop.f32.mrb[51].mxu1  ;;  %v6946_v24 = vcombine.high %v6894_v17, %v6926_v20  ;;  %v6943_v19 = vcombine.low %v12603_v8, %v12606_v25  ;;  %v9983_v14 = vld [vmem:[#allocation7 + $0x40] ss:$8 sps:$4 sm:$0xff]  }
 0x571   :  { %v7081_v55 = vcombine.low %v7030_v51, %v7062_v40  ;;  %v7080_v50 = vcombine.high %v12615_v30, %v12618_v59  ;;  %v7082_v47 = vcombine.high %v7030_v51, %v7062_v40  ;;  %v7079_v43 = vcombine.low %v12615_v30, %v12618_v59  ;;  %7698 = vmatpush1.bf16.msra.mxu0 %v9983_v14 }
 0x572   :  { %v6551_v4 = vrot.slane %v6543_v0, %v10873_v42  ;;  %v6558_v3 = vrot.slane %v6544_v18, %v10873_v42  ;;  %7699 = vmatprep.subr.bf16.mxu0 %v9988_v49  ;;  %v6687_v44 = vrot.slane %v6679_v63, %v10873_v42  ;;  %v6694_v2 = vrot.slane %v6680_v11, %v10873_v42 }
 0x573   :  { %v9772_v22 = vpack.i.bf16 %v7081_v55, %v6945_v58  ;;  %v9767_v57 = vpack.i.bf16 %v7080_v50, %v6944_v56  ;;  %v12628_v45 = vpack.i.bf16 %v7082_v47, %v6946_v24 }
 0x575   :  { %9773 = vrot.lane.b32.xlu1 %v9772_v22, %s10514_s22  ;;  %9768 = vrot.lane.b32.xlu0 %v9767_v57, %s10516_s2  ;;  %v5912_v12 = vpop.f32.mrb[52].mxu1  ;;  %v9997_v22 = vld [vmem:[#allocation7 + $0x84] ss:$8 sps:$4 sm:$0xff]  }
 0x576   :  { %v6559_v23 = vcombine.low %v12580_v34, %v5912_v12  ;;  %v6560_v39 = vcombine.high %v12580_v34, %v5912_v12  ;;  %v9682_v52 = vpop.f32.mrb[53].mxu1  ;;  %7700 = vmatpush1.bf16.msra.mxu0 %v9986_v9 }
 0x577   :  { %v5915_v15 = vpop.f32.mrb[54].mxu1  ;;  %7701 = vmatprep.subr.bf16.mxu0 %v9991_v31 }
 0x578   :  { %v6567_v27 = vrot.slane %v6559_v23, %v10873_v42  ;;  %v6574_v10 = vrot.slane %v6560_v39, %v10873_v42  ;;  %v6695_v32 = vcombine.low %v12586_v36, %v5915_v15  ;;  %v6696_v60 = vcombine.high %v12586_v36, %v5915_v15  ;;  %v9683_v13 = vpop.f32.mrb[55].mxu1 }
 0x57a   :  { %v6607_v34 = vcombine.low %v6551_v4, %v6567_v27  ;;  %v6608_v21 = vcombine.high %v6551_v4, %v6567_v27  ;;  %v6623_v6 = vcombine.low %v6558_v3, %v6574_v10  ;;  %v6624_v26 = vcombine.high %v6558_v3, %v6574_v10  ;;  %7702 = vmatpush1.bf16.msra.mxu0 %v9989_v41 }
 0x57b   :  { %v12642_v28 = vpop.f32.mrb[68].mxu0  ;;  %v6703_v17 = vrot.slane %v6695_v32, %v10873_v42  ;;  %v6710_v20 = vrot.slane %v6696_v60, %v10873_v42  ;;  %7703 = vmatprep.subr.bf16.mxu0 %v9994_v54  ;;  %v9995_v32 = vld [vmem:[#allocation7 + $0x80] ss:$8 sps:$4 sm:$0xff]   ;;  %v9998_v54 = vld [vmem:[#allocation7 + $0x90] ss:$8 sps:$4 sm:$0xff]  }
 0x57c   :  { %v9700_v36 = vpop.f32.mrb[69].mxu0  ;;  %v6615_v37 = vrot.slane %v6607_v34, %v10878_v53  ;;  %v6622_v46 = vrot.slane %v6608_v21, %v10878_v53  ;;  %v6631_v1 = vrot.slane %v6623_v6, %v10878_v53  ;;  %v6638_v16 = vrot.slane %v6624_v26, %v10878_v53  ;;  %v10000_v6 = vld [vmem:[#allocation7 + $0x94] ss:$8 sps:$4 sm:$0xff]  }
 0x57d   :  { %v12650_v7 = vpop.f32.mrb[70].mxu0  ;;  %v6743_v38 = vcombine.low %v6687_v44, %v6703_v17  ;;  %v6744_v0 = vcombine.high %v6687_v44, %v6703_v17  ;;  %v6759_v18 = vcombine.low %v6694_v2, %v6710_v20  ;;  %v6760_v48 = vcombine.high %v6694_v2, %v6710_v20 }
 0x57e   :  { %v9701_v58 = vpop.f32.mrb[71].mxu0  ;;  %v9300_v56 = vcombine.low %v6615_v37, %v6622_v46  ;;  %v9302_v35 = vcombine.high %v6615_v37, %v6622_v46  ;;  %v9304_v51 = vcombine.low %v6631_v1, %v6638_v16  ;;  %v9306_v40 = vcombine.high %v6631_v1, %v6638_v16  ;;  %7704 = vmatpush1.bf16.msra.mxu0 %v9992_v29 }
 0x57f   :  { %v6751_v62 = vrot.slane %v6743_v38, %v10878_v53  ;;  %v6758_v63 = vrot.slane %v6744_v0, %v10878_v53  ;;  %v6767_v11 = vrot.slane %v6759_v18, %v10878_v53  ;;  %v6774_v5 = vrot.slane %v6760_v48, %v10878_v53  ;;  %7705 = vmatprep.subr.bf16.mxu0 %v9997_v22  ;;  %v10003_v18 = vld [vmem:[#allocation7 + $0xa4] ss:$8 sps:$4 sm:$0xff]  }
 0x580   :  { %v7095_v55 = vrot.slane %v9300_v56, %v10873_v42  ;;  %v7111_v50 = vrot.slane %v9302_v35, %v10873_v42  ;;  %v7127_v24 = vrot.slane %v9304_v51, %v10873_v42  ;;  %v7143_v47 = vrot.slane %v9306_v40, %v10873_v42 }
 0x581   :  { %v9308_v57 = vcombine.low %v6751_v62, %v6758_v63  ;;  %v9310_v14 = vcombine.high %v6751_v62, %v6758_v63  ;;  %v9312_v49 = vcombine.low %v6767_v11, %v6774_v5  ;;  %v9314_v12 = vcombine.high %v6767_v11, %v6774_v5  ;;  %v10001_v63 = vld [vmem:[#allocation7 + $0xa0] ss:$8 sps:$4 sm:$0xff]  }
 0x582   :  { %v7151_v23 = vcombine.low %v7095_v55, %v7111_v50  ;;  %v7183_v39 = vcombine.low %v7127_v24, %v7143_v47  ;;  %v7152_v52 = vcombine.high %v7095_v55, %v7111_v50  ;;  %v7184_v4 = vcombine.high %v7127_v24, %v7143_v47  ;;  %7706 = vmatpush1.bf16.msra.mxu0 %v9995_v32  ;;  %v10006_v24 = vld [vmem:[#allocation7 + $0xb4] ss:$8 sps:$4 sm:$0xff]  }
 0x583   :  { %v7231_v3 = vrot.slane %v9308_v57, %v10873_v42  ;;  %v7247_v15 = vrot.slane %v9310_v14, %v10873_v42  ;;  %v7263_v9 = vrot.slane %v9312_v49, %v10873_v42  ;;  %v7279_v27 = vrot.slane %v9314_v12, %v10873_v42  ;;  %v6132_v10 = vpop.f32.mrb[72].mxu0  ;;  %7707 = vmatprep.subr.bf16.mxu0 %v10000_v6 }
 0x584   :  { %v6303_v60 = vcombine.low %v12592_v33, %v6132_v10  ;;  %v6304_v13 = vcombine.high %v12592_v33, %v6132_v10  ;;  %v9712_v31 = vpop.f32.mrb[73].mxu0  ;;  %v12667_v34 = vrot.slane %v7151_v23, %v10878_v53  ;;  %v12670_v21 = vrot.slane %v7183_v39, %v10878_v53  ;;  %v10009_v10 = vld [vmem:[#allocation7 + $0xc4] ss:$8 sps:$4 sm:$0xff]  }
 0x585   :  { %v6135_v26 = vpop.f32.mrb[74].mxu0  ;;  %v7287_v44 = vcombine.low %v7231_v3, %v7247_v15  ;;  %v7319_v2 = vcombine.low %v7263_v9, %v7279_v27  ;;  %v7166_v17 = vrot.slane %v7152_v52, %v10878_v53  ;;  %v7198_v20 = vrot.slane %v7184_v4, %v10878_v53  ;;  %v10004_v4 = vld [vmem:[#allocation7 + $0xb0] ss:$8 sps:$4 sm:$0xff]  }
 0x586   :  { %v6439_v41 = vcombine.low %v12598_v61, %v6135_v26  ;;  %v6440_v33 = vcombine.high %v12598_v61, %v6135_v26  ;;  %v9713_v36 = vpop.f32.mrb[75].mxu0  ;;  %v7216_v37 = vcombine.high %v12667_v34, %v12670_v21  ;;  %v7288_v38 = vcombine.high %v7231_v3, %v7247_v15  ;;  %7708 = vmatpush1.bf16.msra.mxu0 %v9998_v54 }
 0x587   :  { %v12679_v46 = vrot.slane %v7287_v44, %v10878_v53  ;;  %v12682_v1 = vrot.slane %v7319_v2, %v10878_v53  ;;  %v7217_v16 = vcombine.low %v7166_v17, %v7198_v20  ;;  %v7320_v0 = vcombine.high %v7263_v9, %v7279_v27  ;;  %7709 = vmatprep.subr.bf16.mxu0 %v10003_v18 }
 0x588   :  { %v7218_v48 = vcombine.high %v7166_v17, %v7198_v20  ;;  %v7215_v58 = vcombine.low %v12667_v34, %v12670_v21  ;;  %v7302_v35 = vrot.slane %v7288_v38, %v10878_v53  ;;  %v6311_v47 = vrot.slane %v6303_v60, %v10873_v42 }
 0x589   :  { %v7352_v61 = vcombine.high %v12679_v46, %v12682_v1  ;;  %v7351_v56 = vcombine.low %v12679_v46, %v12682_v1  ;;  %v7334_v51 = vrot.slane %v7320_v0, %v10878_v53  ;;  %v6318_v22 = vrot.slane %v6304_v13, %v10873_v42 }
 0x58a   :  { %7710 = vmatpush1.bf16.msra.mxu0 %v10001_v63  ;;  %v6447_v32 = vrot.slane %v6439_v41, %v10873_v42  ;;  %v6454_v60 = vrot.slane %v6440_v33, %v10873_v42  ;;  %v10007_v41 = vld [vmem:[#allocation7 + $0xc0] ss:$8 sps:$4 sm:$0xff]  }
 0x58b   :  { %v6220_v40 = vpop.f32.mrb[76].mxu0  ;;  %v12692_v62 = vpack.i.bf16 %v7352_v61, %v7216_v37  ;;  %v7353_v55 = vcombine.low %v7302_v35, %v7334_v51  ;;  %v7354_v50 = vcombine.high %v7302_v35, %v7334_v51  ;;  %7711 = vmatprep.subr.bf16.mxu0 %v10006_v24 }
 0x58c   :  { %v6319_v11 = vcombine.low %v12642_v28, %v6220_v40  ;;  %v6320_v5 = vcombine.high %v12642_v28, %v6220_v40  ;;  %v9724_v29 = vpop.f32.mrb[77].mxu0 }
 0x58d   :  { %v6223_v57 = vpop.f32.mrb[78].mxu0  ;;  %v12702_v28 = vpack.i.bf16 %v7353_v55, %v7217_v16  ;;  %v12704_v52 = vpack.i.bf16 %v7354_v50, %v7218_v48 }
 0x58e   :  { %v6327_v14 = vrot.slane %v6319_v11, %v10873_v42  ;;  %v6334_v49 = vrot.slane %v6320_v5, %v10873_v42  ;;  %v6455_v12 = vcombine.low %v12650_v7, %v6223_v57  ;;  %v6456_v23 = vcombine.high %v12650_v7, %v6223_v57  ;;  %v9725_v39 = vpop.f32.mrb[79].mxu0  ;;  %7712 = vmatpush1.bf16.msra.mxu0 %v10004_v4 }
 0x58f   :  { %7713 = vmatprep.subr.bf16.mxu0 %v10009_v10 }
 0x590   :  { %v6367_v3 = vcombine.low %v6311_v47, %v6327_v14  ;;  %v6368_v15 = vcombine.high %v6311_v47, %v6327_v14  ;;  %v6383_v9 = vcombine.low %v6318_v22, %v6334_v49  ;;  %v6384_v27 = vcombine.high %v6318_v22, %v6334_v49  ;;  %v10010_v49 = vld [vmem:[#allocation7 + $0xd0] ss:$8 sps:$4 sm:$0xff]  }
 0x591   :  { %v6463_v13 = vrot.slane %v6455_v12, %v10873_v42  ;;  %v6470_v7 = vrot.slane %v6456_v23, %v10873_v42  ;;  %v10012_v12 = vld [vmem:[#allocation7 + $0xd4] ss:$8 sps:$4 sm:$0xff]  }
 0x592   :  { %v6375_v31 = vrot.slane %v6367_v3, %v10878_v53  ;;  %v6382_v6 = vrot.slane %v6368_v15, %v10878_v53  ;;  %v6391_v26 = vrot.slane %v6383_v9, %v10878_v53  ;;  %v6398_v44 = vrot.slane %v6384_v27, %v10878_v53  ;;  %7714 = vmatpush1.bf16.msra.mxu0 %v10007_v41 }
 0x593   :  { %v6503_v2 = vcombine.low %v6447_v32, %v6463_v13  ;;  %v6504_v17 = vcombine.high %v6447_v32, %v6463_v13  ;;  %v6519_v20 = vcombine.low %v6454_v60, %v6470_v7  ;;  %v6520_v36 = vcombine.high %v6454_v60, %v6470_v7  ;;  %7715 = vmatprep.subr.bf16.mxu0 %v10012_v12 }
 0x594   :  { %v9285_v37 = vcombine.low %v6375_v31, %v6382_v6  ;;  %v9287_v33 = vcombine.high %v6375_v31, %v6382_v6  ;;  %v9289_v16 = vcombine.low %v6391_v26, %v6398_v44  ;;  %v9291_v54 = vcombine.high %v6391_v26, %v6398_v44 }
 0x595   :  { %v6511_v38 = vrot.slane %v6503_v2, %v10878_v53  ;;  %v6518_v0 = vrot.slane %v6504_v17, %v10878_v53  ;;  %v6527_v18 = vrot.slane %v6519_v20, %v10878_v53  ;;  %v6534_v61 = vrot.slane %v6520_v36, %v10878_v53  ;;  %v10013_v17 = vld [vmem:[#allocation7 + $0xe0] ss:$8 sps:$4 sm:$0xff]   ;;  %v10015_v20 = vld [vmem:[#allocation7 + $0xe4] ss:$8 sps:$4 sm:$0xff]  }
 0x596   :  { %v6830_v48 = vrot.slane %v9285_v37, %v10873_v42  ;;  %v6846_v35 = vrot.slane %v9287_v33, %v10873_v42  ;;  %v6862_v51 = vrot.slane %v9289_v16, %v10873_v42  ;;  %v6878_v40 = vrot.slane %v9291_v54, %v10873_v42  ;;  %v12722_v63 = vpop.f32.mrb[56].mxu1  ;;  %7716 = vmatpush1.bf16.msra.mxu0 %v10010_v49 }
 0x597   :  { %v9293_v11 = vcombine.low %v6511_v38, %v6518_v0  ;;  %v9295_v5 = vcombine.high %v6511_v38, %v6518_v0  ;;  %v9297_v29 = vcombine.low %v6527_v18, %v6534_v61  ;;  %v9299_v55 = vcombine.high %v6527_v18, %v6534_v61  ;;  %v9694_v50 = vpop.f32.mrb[57].mxu1  ;;  %7717 = vmatprep.subr.bf16.mxu0 %v10015_v20 }
 0x598   :  { %v12724_v24 = vpop.f32.mrb[58].mxu1  ;;  %v6896_v47 = vcombine.high %v6830_v48, %v6846_v35  ;;  %v6928_v22 = vcombine.high %v6862_v51, %v6878_v40  ;;  %v6895_v57 = vcombine.low %v6830_v48, %v6846_v35  ;;  %v6927_v14 = vcombine.low %v6862_v51, %v6878_v40  ;;  %v10016_v35 = vld [vmem:[#allocation7 + $0xf0] ss:$8 sps:$4 sm:$0xff]   ;;  %v10018_v51 = vld [vmem:[#allocation7 + $0xf4] ss:$8 sps:$4 sm:$0xff]  }
 0x599   :  { %v6966_v23 = vrot.slane %v9293_v11, %v10873_v42  ;;  %v6982_v39 = vrot.slane %v9295_v5, %v10873_v42  ;;  %v6998_v4 = vrot.slane %v9297_v29, %v10873_v42  ;;  %v7014_v3 = vrot.slane %v9299_v55, %v10873_v42  ;;  %v9695_v15 = vpop.f32.mrb[59].mxu1 }
 0x59a   :  { %v6910_v9 = vrot.slane %v6896_v47, %v10878_v53  ;;  %v6942_v27 = vrot.slane %v6928_v22, %v10878_v53  ;;  %v12733_v10 = vrot.slane %v6895_v57, %v10878_v53  ;;  %v12736_v32 = vrot.slane %v6927_v14, %v10878_v53  ;;  %7718 = vmatpush1.bf16.msra.mxu0 %v10013_v17 }
 0x59b   :  { %v7032_v60 = vcombine.high %v6966_v23, %v6982_v39  ;;  %v7064_v13 = vcombine.high %v6998_v4, %v7014_v3  ;;  %v7031_v7 = vcombine.low %v6966_v23, %v6982_v39  ;;  %v7063_v31 = vcombine.low %v6998_v4, %v7014_v3  ;;  %7719 = vmatprep.subr.bf16.mxu0 %v10018_v51 }
 0x59c   :  { %v6950_v6 = vcombine.high %v6910_v9, %v6942_v27  ;;  %v6948_v26 = vcombine.high %v12733_v10, %v12736_v32  ;;  %v6949_v44 = vcombine.low %v6910_v9, %v6942_v27  ;;  %v6947_v2 = vcombine.low %v12733_v10, %v12736_v32 }
 0x59d   :  { %v7046_v36 = vrot.slane %v7032_v60, %v10878_v53  ;;  %v7078_v41 = vrot.slane %v7064_v13, %v10878_v53  ;;  %v12745_v37 = vrot.slane %v7031_v7, %v10878_v53  ;;  %v12748_v33 = vrot.slane %v7063_v31, %v10878_v53 }
 0x59e   :  { %7720 = vmatpush1.bf16.msra.mxu0 %v10016_v35 }
 0x59f   :  { %v7086_v16 = vcombine.high %v7046_v36, %v7078_v41  ;;  %v7084_v54 = vcombine.high %v12745_v37, %v12748_v33  ;;  %v7085_v38 = vcombine.low %v7046_v36, %v7078_v41  ;;  %v7083_v0 = vcombine.low %v12745_v37, %v12748_v33 }
 0x5a1   :  { %v9787_v18 = vpack.i.bf16 %v7086_v16, %v6950_v6  ;;  %v9777_v61 = vpack.i.bf16 %v7084_v54, %v6948_v26  ;;  %v9782_v48 = vpack.i.bf16 %v7085_v38, %v6949_v44 }
 0x5a3   :  { %9788 = vrot.lane.b32.xlu0 %v9787_v18, %s10515_s24  ;;  %9778 = vrot.lane.b32.xlu1 %v9777_v61, %s10516_s2 }
 0x5a7   :  { %9783 = vrot.lane.b32.xlu1 %v9782_v48, %s10514_s22 }
 0x5ab   :  { %9793 = vrot.lane.b32.xlu1 %v12628_v45, %s10515_s24 }
 0x5af   :  { %9798 = vrot.lane.b32.xlu1 %v12692_v62, %s10516_s2 }
 0x5b3   :  { %9803 = vrot.lane.b32.xlu1 %v12702_v28, %s10514_s22 }
 0x5b7   :  { %9823 = vrot.lane.b32.xlu1 %v12704_v52, %s10515_s24 }
 0x5bc   :  { %v6088_v40 = vpop.f32.mrb[60].mxu1 }
 0x5bd   :  { %v9706_v11 = vpop.f32.mrb[61].mxu1 }
 0x5be   :  { %v6091_v5 = vpop.f32.mrb[62].mxu1 }
 0x5bf   :  { %v9707_v29 = vpop.f32.mrb[63].mxu1 }
 0x5c4   :  { %v6176_v55 = vpop.f32.mrb[64].mxu1 }
 0x5c5   :  { %v6575_v50 = vcombine.low %v12722_v63, %v6176_v55  ;;  %v6576_v47 = vcombine.high %v12722_v63, %v6176_v55  ;;  %v9718_v22 = vpop.f32.mrb[65].mxu1 }
 0x5c6   :  { %v6179_v45 = vpop.f32.mrb[66].mxu1 }
 0x5c7   :  { %v6711_v57 = vcombine.low %v12724_v24, %v6179_v45  ;;  %v6712_v62 = vcombine.high %v12724_v24, %v6179_v45  ;;  %v9719_v14 = vpop.f32.mrb[67].mxu1  ;;  %v6583_v23 = vrot.slane %v6575_v50, %v10873_v42  ;;  %v6590_v39 = vrot.slane %v6576_v47, %v10873_v42 }
 0x5c9   :  { %v6719_v31 = vrot.slane %v6711_v57, %v10873_v42  ;;  %v6726_v6 = vrot.slane %v6712_v62, %v10873_v42 }
 0x5cc   :  { %v6264_v28 = vpop.f32.mrb[68].mxu1 }
 0x5cd   :  { %v6591_v49 = vcombine.low %v6088_v40, %v6264_v28  ;;  %v6592_v12 = vcombine.high %v6088_v40, %v6264_v28  ;;  %v9730_v52 = vpop.f32.mrb[69].mxu1 }
 0x5ce   :  { %v6267_v4 = vpop.f32.mrb[70].mxu1 }
 0x5cf   :  { %v6599_v3 = vrot.slane %v6591_v49, %v10873_v42  ;;  %v6606_v63 = vrot.slane %v6592_v12, %v10873_v42  ;;  %v6727_v15 = vcombine.low %v6091_v5, %v6267_v4  ;;  %v6728_v9 = vcombine.high %v6091_v5, %v6267_v4  ;;  %v9731_v27 = vpop.f32.mrb[71].mxu1 }
 0x5d1   :  { %v6639_v60 = vcombine.low %v6583_v23, %v6599_v3  ;;  %v6640_v13 = vcombine.high %v6583_v23, %v6599_v3  ;;  %v6655_v24 = vcombine.low %v6590_v39, %v6606_v63  ;;  %v6656_v7 = vcombine.high %v6590_v39, %v6606_v63 }
 0x5d2   :  { %v6735_v26 = vrot.slane %v6727_v15, %v10873_v42  ;;  %v6742_v44 = vrot.slane %v6728_v9, %v10873_v42 }
 0x5d3   :  { %v6647_v17 = vrot.slane %v6639_v60, %v10878_v53  ;;  %v6654_v20 = vrot.slane %v6640_v13, %v10878_v53  ;;  %v6663_v36 = vrot.slane %v6655_v24, %v10878_v53  ;;  %v6670_v41 = vrot.slane %v6656_v7, %v10878_v53 }
 0x5d4   :  { %v6775_v16 = vcombine.low %v6719_v31, %v6735_v26  ;;  %v6776_v54 = vcombine.high %v6719_v31, %v6735_v26  ;;  %v6791_v38 = vcombine.low %v6726_v6, %v6742_v44  ;;  %v6792_v18 = vcombine.high %v6726_v6, %v6742_v44 }
 0x5d5   :  { %v9301_v61 = vcombine.low %v6647_v17, %v6654_v20  ;;  %v9303_v48 = vcombine.high %v6647_v17, %v6654_v20  ;;  %v9305_v35 = vcombine.low %v6663_v36, %v6670_v41  ;;  %v9307_v51 = vcombine.high %v6663_v36, %v6670_v41 }
 0x5d6   :  { %v6783_v40 = vrot.slane %v6775_v16, %v10878_v53  ;;  %v6790_v11 = vrot.slane %v6776_v54, %v10878_v53  ;;  %v6799_v5 = vrot.slane %v6791_v38, %v10878_v53  ;;  %v6806_v29 = vrot.slane %v6792_v18, %v10878_v53 }
 0x5d7   :  { %v7102_v55 = vrot.slane %v9301_v61, %v10873_v42  ;;  %v7118_v50 = vrot.slane %v9303_v48, %v10873_v42  ;;  %v7134_v47 = vrot.slane %v9305_v35, %v10873_v42  ;;  %v7150_v22 = vrot.slane %v9307_v51, %v10873_v42 }
 0x5d8   :  { %v9309_v45 = vcombine.low %v6783_v40, %v6790_v11  ;;  %v9311_v57 = vcombine.high %v6783_v40, %v6790_v11  ;;  %v9313_v62 = vcombine.low %v6799_v5, %v6806_v29  ;;  %v9315_v14 = vcombine.high %v6799_v5, %v6806_v29 }
 0x5d9   :  { %v7167_v28 = vcombine.low %v7102_v55, %v7118_v50  ;;  %v7199_v49 = vcombine.low %v7134_v47, %v7150_v22  ;;  %v7168_v12 = vcombine.high %v7102_v55, %v7118_v50  ;;  %v7200_v52 = vcombine.high %v7134_v47, %v7150_v22 }
 0x5da   :  { %v7238_v23 = vrot.slane %v9309_v45, %v10873_v42  ;;  %v7254_v39 = vrot.slane %v9311_v57, %v10873_v42  ;;  %v7270_v4 = vrot.slane %v9313_v62, %v10873_v42  ;;  %v7286_v3 = vrot.slane %v9315_v14, %v10873_v42 }
 0x5db   :  { %v12794_v63 = vrot.slane %v7167_v28, %v10878_v53  ;;  %v12797_v15 = vrot.slane %v7199_v49, %v10878_v53  ;;  %v7182_v9 = vrot.slane %v7168_v12, %v10878_v53  ;;  %v7214_v27 = vrot.slane %v7200_v52, %v10878_v53 }
 0x5dc   :  { %v7303_v60 = vcombine.low %v7238_v23, %v7254_v39  ;;  %v7335_v13 = vcombine.low %v7270_v4, %v7286_v3  ;;  %v7304_v24 = vcombine.high %v7238_v23, %v7254_v39  ;;  %v7336_v7 = vcombine.high %v7270_v4, %v7286_v3 }
 0x5dd   :  { %v7220_v31 = vcombine.high %v12794_v63, %v12797_v15  ;;  %v7221_v6 = vcombine.low %v7182_v9, %v7214_v27  ;;  %v7222_v26 = vcombine.high %v7182_v9, %v7214_v27  ;;  %v7219_v42 = vcombine.low %v12794_v63, %v12797_v15  ;;  %v10027_v63 = vld [vmem:[#allocation8 + $0x24] ss:$16 sps:$4 sm:$0xff]   ;;  %v10030_v15 = vld [vmem:[#allocation8 + $0x2c] ss:$16 sps:$4 sm:$0xff]  }
 0x5de   :  { %v12806_v44 = vrot.slane %v7303_v60, %v10878_v53  ;;  %v12809_v17 = vrot.slane %v7335_v13, %v10878_v53  ;;  %v7318_v20 = vrot.slane %v7304_v24, %v10878_v53  ;;  %v7350_v36 = vrot.slane %v7336_v7, %v10878_v53 }
 0x5e0   :  { %v7356_v41 = vcombine.high %v12806_v44, %v12809_v17  ;;  %v7357_v16 = vcombine.low %v7318_v20, %v7350_v36  ;;  %v7358_v54 = vcombine.high %v7318_v20, %v7350_v36  ;;  %v7355_v38 = vcombine.low %v12806_v44, %v12809_v17  ;;  %v10019_v44 = vld [vmem:[#allocation8] ss:$16 sps:$4 sm:$0xff]   ;;  %v10021_v17 = vld [vmem:[#allocation8 + $0x4] ss:$16 sps:$4 sm:$0xff]  }
 0x5e1   :  { %8277 = vmatprep.subr.bf16.mxu1 %v10021_v17  ;;  %v10073_v17 = vld [vmem:[#allocation8 + $0x120] ss:$16 sps:$4 sm:$0xff]  }
 0x5e2   :  { %v9807_v18 = vpack.i.bf16 %v7356_v41, %v7220_v31  ;;  %v9812_v61 = vpack.i.bf16 %v7357_v16, %v7221_v6  ;;  %v9817_v48 = vpack.i.bf16 %v7358_v54, %v7222_v26  ;;  %8278 = vmatpush1.bf16.msra.mxu1 %v10019_v44  ;;  %v10072_v44 = vld [vmem:[#allocation8 + $0x10c] ss:$16 sps:$4 sm:$0xff]  }
 0x5e3   :  { %8279 = vmatprep.subr.bf16.mxu1 %v10027_v63  ;;  %v10078_v63 = vld [vmem:[#allocation8 + $0x12c] ss:$16 sps:$4 sm:$0xff]  }
 0x5e4   :  { %9808 = vrot.lane.b32.xlu0 %v9807_v18, %s10516_s2 }
 0x5e7   :  { %v9774_v35 = vpop.permute.xlu1 %9773  ;;  %v9769_v51 = vpop.permute.xlu0 %9768 }
 0x5e8   :  { %9813 = vrot.lane.b32.xlu0 %v9812_v61, %s10514_s22  ;;  %v9771_v5 = vunpack.i.h.bf16 %v9769_v51  ;;  %v9770_v29 = vunpack.i.l.bf16 %v9769_v51  ;;  %v9776_v47 = vunpack.i.h.bf16 %v9774_v35  ;;  %v9775_v22 = vunpack.i.l.bf16 %v9774_v35 }
 0x5ea   :  { %v7456_v12 = vsel %vm4429_vm1, %v7079_v43, %v9771_v5  ;;  %v7455_v52 = vsel %vm4429_vm1, %v6943_v19, %v9770_v29  ;;  %v10024_v29 = vld [vmem:[#allocation8 + $0xc] ss:$16 sps:$4 sm:$0xff]  }
 0x5eb   :  { %v7460_v30 = vsel %vm7459_vm3, %v7455_v52, %v9775_v22  ;;  %v7461_v59 = vsel %vm7459_vm3, %v7456_v12, %v9776_v47  ;;  %8330 = vmatprep.subr.bf16.mxu0 %v10024_v29  ;;  %v10036_v47 = vld [vmem:[#allocation8 + $0x4c] ss:$16 sps:$4 sm:$0xff]   ;;  %v10031_v22 = vld [vmem:[#allocation8 + $0x40] ss:$16 sps:$4 sm:$0xff]   ;;  %v10076_v29 = vld [vmem:[#allocation8 + $0x128] ss:$16 sps:$4 sm:$0xff]  }
 0x5ec   :  { %9818 = vrot.lane.b32.xlu0 %v9817_v48, %s10515_s24  ;;  %v10048_v12 = vld [vmem:[#allocation8 + $0x8c] ss:$16 sps:$4 sm:$0xff]   ;;  %v10043_v52 = vld [vmem:[#allocation8 + $0x80] ss:$16 sps:$4 sm:$0xff]  }
 0x615   :  { %v9779_v53 = vpop.permute.xlu1 %9778  ;;  %v9789_v55 = vpop.permute.xlu0 %9788 }
 0x616   :  { %v9781_v40 = vunpack.i.h.bf16 %v9779_v53  ;;  %v9780_v11 = vunpack.i.l.bf16 %v9779_v53  ;;  %v9791_v28 = vunpack.i.h.bf16 %v9789_v55  ;;  %v9790_v49 = vunpack.i.l.bf16 %v9789_v55  ;;  %v10028_v55 = vld [vmem:[#allocation8 + $0x28] ss:$16 sps:$4 sm:$0xff]  }
 0x618   :  { %v7469_v62 = vsel %vm4429_vm1, %v6947_v2, %v9780_v11  ;;  %v7470_v14 = vsel %vm4429_vm1, %v7083_v0, %v9781_v40 }
 0x619   :  { %v9784_v50 = vpop.permute.xlu1 %9783 }
 0x61a   :  { %v9786_v45 = vunpack.i.h.bf16 %v9784_v50  ;;  %v9785_v57 = vunpack.i.l.bf16 %v9784_v50  ;;  %v10033_v50 = vld [vmem:[#allocation8 + $0x44] ss:$16 sps:$4 sm:$0xff]  }
 0x61c   :  { %v7473_v10 = vsel %vm7459_vm3, %v7469_v62, %v9785_v57  ;;  %v7474_v32 = vsel %vm7459_vm3, %v7470_v14, %v9786_v45  ;;  %v10034_v45 = vld [vmem:[#allocation8 + $0x48] ss:$16 sps:$4 sm:$0xff]   ;;  %v10039_v57 = vld [vmem:[#allocation8 + $0x64] ss:$16 sps:$4 sm:$0xff]   ;;  %v10042_v62 = vld [vmem:[#allocation8 + $0x6c] ss:$16 sps:$4 sm:$0xff]  }
 0x61d   :  { %v9794_v2 = vpop.permute.xlu1 %9793  ;;  %v7477_v37 = vsel %vm7464_vm4, %v7473_v10, %v9790_v49  ;;  %v7478_v33 = vsel %vm7464_vm4, %v7474_v32, %v9791_v28  ;;  %v10037_v14 = vld [vmem:[#allocation8 + $0x60] ss:$16 sps:$4 sm:$0xff]   ;;  %v10040_v28 = vld [vmem:[#allocation8 + $0x68] ss:$16 sps:$4 sm:$0xff]   ;;  %v10045_v49 = vld [vmem:[#allocation8 + $0x84] ss:$16 sps:$4 sm:$0xff]  }
 0x61e   :  { %v9796_v0 = vunpack.i.h.bf16 %v9794_v2  ;;  %v9795_v23 = vunpack.i.l.bf16 %v9794_v2  ;;  %v7482_v39 = vpack.c.bf16 %v7478_v33, %v7477_v37  ;;  %v10046_v10 = vld [vmem:[#allocation8 + $0x88] ss:$16 sps:$4 sm:$0xff]   ;;  %v10051_v32 = vld [vmem:[#allocation8 + $0xa4] ss:$16 sps:$4 sm:$0xff]   ;;  %v10054_v2 = vld [vmem:[#allocation8 + $0xac] ss:$16 sps:$4 sm:$0xff]  }
 0x61f   :  { %v10049_v37 = vld [vmem:[#allocation8 + $0xa0] ss:$16 sps:$4 sm:$0xff]   ;;  %v10052_v33 = vld [vmem:[#allocation8 + $0xa8] ss:$16 sps:$4 sm:$0xff]  }
 0x620   :  { %v7465_v8 = vsel %vm7464_vm4, %v7460_v30, %v9795_v23  ;;  %v7466_v25 = vsel %vm7464_vm4, %v7461_v59, %v9796_v0  ;;  %7721 = vmatprep.mubr.bf16.mxu0 %v7482_v39  ;;  %v10057_v0 = vld [vmem:[#allocation8 + $0xc4] ss:$16 sps:$4 sm:$0xff]   ;;  %v10060_v23 = vld [vmem:[#allocation8 + $0xcc] ss:$16 sps:$4 sm:$0xff]   ;;  %v10055_v39 = vld [vmem:[#allocation8 + $0xc0] ss:$16 sps:$4 sm:$0xff]  }
 0x621   :  { %v7481_v19 = vpack.c.bf16 %v7466_v25, %v7465_v8  ;;  %v9799_v43 = vpop.permute.xlu1 %9798  ;;  %v10058_v30 = vld [vmem:[#allocation8 + $0xc8] ss:$16 sps:$4 sm:$0xff]   ;;  %v7517_v59 = vld [vmem:[%s13120_s4] sm:$0x3] }
 0x622   :  { %v9801_v3 = vunpack.i.h.bf16 %v9799_v43  ;;  %v9800_v9 = vunpack.i.l.bf16 %v9799_v43  ;;  %v13228_v8 = vld [vmem:[#allocation17_spill] sm:$0xff] }
 0x623   :  { %7722 = vmatmul.mubr.bf16.vlgmr.msra.gmra.mrb[80].mxu0 %v7481_v19  ;;  %v12872_v25 = vrot.slane %v7517_v59, %v13228_v8  ;;  %v13229_v19 = vld [vmem:[#allocation18_spill] sm:$0xff] }
 0x624   :  { %v7458_v24 = vsel %vm4429_vm1, %v7351_v56, %v9801_v3  ;;  %v7457_v7 = vsel %vm4429_vm1, %v7215_v58, %v9800_v9  ;;  %v12875_v43 = vrot.slane %v7517_v59, %v13229_v19  ;;  %v10112_v59 = vld [vmem:[#allocation8 + $0x1e8] ss:$16 sps:$4 sm:$0xff]  }
 0x625   :  { %v9804_v4 = vpop.permute.xlu1 %9803 }
 0x626   :  { %v9806_v27 = vunpack.i.h.bf16 %v9804_v4  ;;  %v9805_v60 = vunpack.i.l.bf16 %v9804_v4 }
 0x628   :  { %v7462_v26 = vsel %vm7459_vm3, %v7457_v7, %v9805_v60  ;;  %v7463_v20 = vsel %vm7459_vm3, %v7458_v24, %v9806_v27 }
 0x629   :  { %v9824_v13 = vpop.permute.xlu1 %9823 }
 0x62a   :  { %v9826_v31 = vunpack.i.h.bf16 %v9824_v13  ;;  %v9825_v6 = vunpack.i.l.bf16 %v9824_v13  ;;  %v10355_v13 = vld [vmem:[#allocation2] sm:$0xff] }
 0x62c   :  { %v7467_v36 = vsel %vm7464_vm4, %v7462_v26, %v9825_v6  ;;  %v7468_v41 = vsel %vm7464_vm4, %v7463_v20, %v9826_v31  ;;  %v10356_v6 = vld [vmem:[#allocation2 + $0x8] sm:$0xff] }
 0x62d   :  { %v7483_v16 = vpack.c.bf16 %v7468_v41, %v7467_v36  ;;  %v10357_v36 = vld [vmem:[#allocation2 + $0x10] sm:$0xff] }
 0x656   :  { %v9809_v54 = vpop.permute.xlu0 %9808 }
 0x657   :  { %v9811_v1 = vunpack.i.h.bf16 %v9809_v54  ;;  %v9810_v56 = vunpack.i.l.bf16 %v9809_v54 }
 0x659   :  { %v7472_v21 = vsel %vm4429_vm1, %v7355_v38, %v9811_v1  ;;  %v7471_v58 = vsel %vm4429_vm1, %v7219_v42, %v9810_v56  ;;  %v10022_v38 = vld [vmem:[#allocation8 + $0x8] ss:$16 sps:$4 sm:$0xff]   ;;  %v10025_v42 = vld [vmem:[#allocation8 + $0x20] ss:$16 sps:$4 sm:$0xff]  }
 0x65a   :  { %v9814_v46 = vpop.permute.xlu0 %9813  ;;  %8331 = vmatpush1.bf16.msra.mxu0 %v10022_v38  ;;  %8280 = vmatpush1.bf16.msra.mxu1 %v10025_v42  ;;  %v10075_v38 = vld [vmem:[#allocation8 + $0x124] ss:$16 sps:$4 sm:$0xff]   ;;  %v10084_v42 = vld [vmem:[#allocation8 + $0x14c] ss:$16 sps:$4 sm:$0xff]  }
 0x65b   :  { %v9816_v18 = vunpack.i.h.bf16 %v9814_v46  ;;  %v9815_v61 = vunpack.i.l.bf16 %v9814_v46  ;;  %8332 = vmatprep.subr.bf16.mxu0 %v10030_v15  ;;  %8281 = vmatprep.subr.bf16.mxu1 %v10033_v50  ;;  %v10081_v15 = vld [vmem:[#allocation8 + $0x144] ss:$16 sps:$4 sm:$0xff]   ;;  %v10082_v50 = vld [vmem:[#allocation8 + $0x148] ss:$16 sps:$4 sm:$0xff]  }
 0x65d   :  { %v7475_v51 = vsel %vm7459_vm3, %v7471_v58, %v9815_v61  ;;  %v7476_v53 = vsel %vm7459_vm3, %v7472_v21, %v9816_v18 }
 0x65e   :  { %v9819_v34 = vpop.permute.xlu0 %9818  ;;  %8333 = vmatpush1.bf16.msra.mxu0 %v10028_v55  ;;  %8282 = vmatpush1.bf16.msra.mxu1 %v10031_v22  ;;  %v10079_v55 = vld [vmem:[#allocation8 + $0x140] ss:$16 sps:$4 sm:$0xff]   ;;  %v10090_v22 = vld [vmem:[#allocation8 + $0x16c] ss:$16 sps:$4 sm:$0xff]  }
 0x65f   :  { %v9821_v48 = vunpack.i.h.bf16 %v9819_v34  ;;  %v9820_v35 = vunpack.i.l.bf16 %v9819_v34  ;;  %8334 = vmatprep.subr.bf16.mxu0 %v10036_v47  ;;  %8283 = vmatprep.subr.bf16.mxu1 %v10039_v57  ;;  %v10087_v47 = vld [vmem:[#allocation8 + $0x164] ss:$16 sps:$4 sm:$0xff]   ;;  %v10088_v57 = vld [vmem:[#allocation8 + $0x168] ss:$16 sps:$4 sm:$0xff]  }
 0x661   :  { %v7479_v40 = vsel %vm7464_vm4, %v7475_v51, %v9820_v35  ;;  %v7480_v11 = vsel %vm7464_vm4, %v7476_v53, %v9821_v48  ;;  %v10061_v48 = vld [vmem:[#allocation8 + $0xe0] ss:$16 sps:$4 sm:$0xff]   ;;  %v10063_v35 = vld [vmem:[#allocation8 + $0xe4] ss:$16 sps:$4 sm:$0xff]   ;;  %v10064_v51 = vld [vmem:[#allocation8 + $0xe8] ss:$16 sps:$4 sm:$0xff]  }
 0x662   :  { %v7484_v5 = vpack.c.bf16 %v7480_v11, %v7479_v40  ;;  %8335 = vmatpush1.bf16.msra.mxu0 %v10034_v45  ;;  %8284 = vmatpush1.bf16.msra.mxu1 %v10037_v14  ;;  %v10066_v53 = vld [vmem:[#allocation8 + $0xec] ss:$16 sps:$4 sm:$0xff]   ;;  %v10067_v40 = vld [vmem:[#allocation8 + $0x100] ss:$16 sps:$4 sm:$0xff]   ;;  %v10069_v11 = vld [vmem:[#allocation8 + $0x104] ss:$16 sps:$4 sm:$0xff]  }
 0x663   :  { %8336 = vmatprep.subr.bf16.mxu0 %v10042_v62  ;;  %8285 = vmatprep.subr.bf16.mxu1 %v10045_v49  ;;  %v10085_v45 = vld [vmem:[#allocation8 + $0x160] ss:$16 sps:$4 sm:$0xff]   ;;  %v10093_v62 = vld [vmem:[#allocation8 + $0x184] ss:$16 sps:$4 sm:$0xff]   ;;  %v10096_v14 = vld [vmem:[#allocation8 + $0x18c] ss:$16 sps:$4 sm:$0xff]  }
 0x664   :  { %7731 = vmatprep.mubr.bf16.mxu0 %v7484_v5  ;;  %v10070_v5 = vld [vmem:[#allocation8 + $0x108] ss:$16 sps:$4 sm:$0xff]  }
 0x665   :  { %7732 = vmatmul.mubr.bf16.gmra.mrb[84].mxu0 %v7483_v16  ;;  %v10358_v16 = vld [vmem:[#allocation2 + $0x18] sm:$0xff] }
 0x666   :  { %8337 = vmatpush1.bf16.msra.mxu0 %v10040_v28  ;;  %8286 = vmatpush1.bf16.msra.mxu1 %v10043_v52  ;;  %v10091_v28 = vld [vmem:[#allocation8 + $0x180] ss:$16 sps:$4 sm:$0xff]   ;;  %v10094_v49 = vld [vmem:[#allocation8 + $0x188] ss:$16 sps:$4 sm:$0xff]   ;;  %v10102_v52 = vld [vmem:[#allocation8 + $0x1ac] ss:$16 sps:$4 sm:$0xff]  }
 0x667   :  { %8338 = vmatprep.subr.bf16.mxu0 %v10048_v12  ;;  %8287 = vmatprep.subr.bf16.mxu1 %v10051_v32  ;;  %v10099_v12 = vld [vmem:[#allocation8 + $0x1a4] ss:$16 sps:$4 sm:$0xff]   ;;  %v10100_v32 = vld [vmem:[#allocation8 + $0x1a8] ss:$16 sps:$4 sm:$0xff]  }
 0x66a   :  { %8339 = vmatpush1.bf16.msra.mxu0 %v10046_v10  ;;  %8288 = vmatpush1.bf16.msra.mxu1 %v10049_v37  ;;  %v10097_v10 = vld [vmem:[#allocation8 + $0x1a0] ss:$16 sps:$4 sm:$0xff]   ;;  %v10108_v37 = vld [vmem:[#allocation8 + $0x1cc] ss:$16 sps:$4 sm:$0xff]  }
 0x66b   :  { %8340 = vmatprep.subr.bf16.mxu0 %v10054_v2  ;;  %8289 = vmatprep.subr.bf16.mxu1 %v10057_v0  ;;  %v10105_v2 = vld [vmem:[#allocation8 + $0x1c4] ss:$16 sps:$4 sm:$0xff]   ;;  %v10106_v0 = vld [vmem:[#allocation8 + $0x1c8] ss:$16 sps:$4 sm:$0xff]  }
 0x66e   :  { %8341 = vmatpush1.bf16.msra.mxu0 %v10052_v33  ;;  %8290 = vmatpush1.bf16.msra.mxu1 %v10055_v39  ;;  %v10103_v33 = vld [vmem:[#allocation8 + $0x1c0] ss:$16 sps:$4 sm:$0xff]   ;;  %v10114_v39 = vld [vmem:[#allocation8 + $0x1ec] ss:$16 sps:$4 sm:$0xff]  }
 0x66f   :  { %8342 = vmatprep.subr.bf16.mxu0 %v10060_v23  ;;  %8291 = vmatprep.subr.bf16.mxu1 %v10063_v35  ;;  %v10111_v23 = vld [vmem:[#allocation8 + $0x1e4] ss:$16 sps:$4 sm:$0xff]  }
 0x672   :  { %8343 = vmatpush1.bf16.msra.mxu0 %v10058_v30  ;;  %8292 = vmatpush1.bf16.msra.mxu1 %v10061_v48  ;;  %v10109_v30 = vld [vmem:[#allocation8 + $0x1e0] ss:$16 sps:$4 sm:$0xff]  }
 0x673   :  { %8344 = vmatprep.subr.bf16.mxu0 %v10066_v53  ;;  %8293 = vmatprep.subr.bf16.mxu1 %v10069_v11 }
 0x676   :  { %8345 = vmatpush1.bf16.msra.mxu0 %v10064_v51  ;;  %8294 = vmatpush1.bf16.msra.mxu1 %v10067_v40  ;;  %v10117_v51 = vld [vmem:[#allocation10 + $0x4] ss:$8 sps:$4 sm:$0xff]  }
 0x677   :  { %8346 = vmatprep.subr.bf16.mxu0 %v10072_v44  ;;  %8295 = vmatprep.subr.bf16.mxu1 %v10075_v38 }
 0x67a   :  { %8347 = vmatpush1.bf16.msra.mxu0 %v10070_v5  ;;  %8296 = vmatpush1.bf16.msra.mxu1 %v10073_v17 }
 0x67b   :  { %8348 = vmatprep.subr.bf16.mxu0 %v10078_v63  ;;  %8297 = vmatprep.subr.bf16.mxu1 %v10081_v15 }
 0x67e   :  { %8349 = vmatpush1.bf16.msra.mxu0 %v10076_v29  ;;  %8298 = vmatpush1.bf16.msra.mxu1 %v10079_v55 }
 0x67f   :  { %8350 = vmatprep.subr.bf16.mxu0 %v10084_v42  ;;  %8299 = vmatprep.subr.bf16.mxu1 %v10087_v47 }
 0x682   :  { %8351 = vmatpush1.bf16.msra.mxu0 %v10082_v50  ;;  %8300 = vmatpush1.bf16.msra.mxu1 %v10085_v45 }
 0x683   :  { %8352 = vmatprep.subr.bf16.mxu0 %v10090_v22  ;;  %8301 = vmatprep.subr.bf16.mxu1 %v10093_v62 }
 0x686   :  { %8353 = vmatpush1.bf16.msra.mxu0 %v10088_v57  ;;  %8302 = vmatpush1.bf16.msra.mxu1 %v10091_v28  ;;  %v7750_v57 = vld [vmem:[%s13125_s9] sm:$0x3] }
 0x687   :  { %8354 = vmatprep.subr.bf16.mxu0 %v10096_v14  ;;  %8303 = vmatprep.subr.bf16.mxu1 %v10099_v12 }
 0x68a   :  { %8355 = vmatpush1.bf16.msra.mxu0 %v10094_v49  ;;  %8304 = vmatpush1.bf16.msra.mxu1 %v10097_v10  ;;  %v7751_v49 = vld [vmem:[%s13126_s10] sm:$0x3]  ;;  %v12937_v10 = vrot.slane %v7750_v57, %v13229_v19 }
 0x68b   :  { %8356 = vmatprep.subr.bf16.mxu0 %v10102_v52  ;;  %8305 = vmatprep.subr.bf16.mxu1 %v10105_v2  ;;  %v12934_v52 = vrot.slane %v7750_v57, %v13228_v8 }
 0x68e   :  { %8357 = vmatpush1.bf16.msra.mxu0 %v10100_v32  ;;  %8306 = vmatpush1.bf16.msra.mxu1 %v10103_v33  ;;  %v12945_v33 = vrot.slane %v7751_v49, %v13229_v19 }
 0x68f   :  { %8358 = vmatprep.subr.bf16.mxu0 %v10108_v37  ;;  %8307 = vmatprep.subr.bf16.mxu1 %v10111_v23 }
 0x692   :  { %8359 = vmatpush1.bf16.msra.mxu0 %v10106_v0  ;;  %8308 = vmatpush1.bf16.msra.mxu1 %v10109_v30 }
 0x693   :  { %8360 = vmatprep.subr.bf16.mxu0 %v10114_v39  ;;  %8803 = vmatprep.subr.bf16.mxu1 %v10117_v51  ;;  %v10141_v51 = vld [vmem:[#allocation10 + $0x84] ss:$8 sps:$4 sm:$0xff]  }
 0x696   :  { %8361 = vmatpush1.bf16.msra.mxu0 %v10112_v59 }
 0x6f6   :  { %v7723_v4 = vpop.f32.mrb[80].mxu0 }
 0x6f7   :  { %v7724_v3 = vadd.f32 %v7723_v4, %v12872_v25  ;;  %v7725_v9 = vpop.f32.mrb[81].mxu0 }
 0x6f8   :  { %v7726_v27 = vadd.f32 %v7725_v9, %v12875_v43  ;;  %v7727_v60 = vpop.f32.mrb[82].mxu0 }
 0x6f9   :  { %v12879_v24 = vadd.f32 %v10355_v13, %v7724_v3  ;;  %v7728_v7 = vadd.f32 %v7727_v60, %v12872_v25  ;;  %v7729_v31 = vpop.f32.mrb[83].mxu0  ;;  %v10359_v13 = vld [vmem:[#allocation2 + $0x20] sm:$0xff] }
 0x6fa   :  { %v12882_v26 = vadd.f32 %v10356_v6, %v7726_v27  ;;  %v7730_v20 = vadd.f32 %v7729_v31, %v12875_v43 }
 0x6fb   :  { %v12885_v41 = vadd.f32 %v10357_v36, %v7728_v7  ;;  %v7769_v1 = vmul.f32 %v12879_v24, %v12879_v24 }
 0x6fc   :  { %v12887_v54 = vadd.f32 %v10358_v16, %v7730_v20  ;;  %v7752_v46 = vadd.f32 %v12882_v26, %v12879_v24  ;;  %v7770_v56 = vmul.f32 %v12882_v26, %v12882_v26  ;;  %v10360_v20 = vld [vmem:[#allocation2 + $0x28] sm:$0xff] }
 0x6fd   :  { %v7771_v34 = vmul.f32 %v12885_v41, %v12885_v41 }
 0x6fe   :  { %7753 = vadd.xlane.f32.xlu0 %v7752_v46  ;;  %v7755_v18 = vadd.f32 %v12887_v54, %v12885_v41  ;;  %v7777_v61 = vadd.f32 %v7770_v56, %v7769_v1  ;;  %v7772_v21 = vmul.f32 %v12887_v54, %v12887_v54  ;;  %v10361_v46 = vld [vmem:[#allocation2 + $0x30] sm:$0xff]  ;;  %v10362_v56 = vld [vmem:[#allocation2 + $0x38] sm:$0xff] }
 0x700   :  { %7756 = vadd.xlane.f32.xlu1 %v7755_v18  ;;  %v7780_v58 = vadd.f32 %v7772_v21, %v7771_v34 }
 0x702   :  { %7778 = vadd.xlane.f32.xlu0 %v7777_v61 }
 0x706   :  { %7781 = vadd.xlane.f32.xlu0 %v7780_v58 }
 0x738   :  { %v7733_v4 = vpop.f32.mrb[84].mxu0 }
 0x739   :  { %v7734_v3 = vadd.f32 %v7733_v4, %v12872_v25  ;;  %v7735_v9 = vpop.f32.mrb[85].mxu0 }
 0x73a   :  { %v7736_v27 = vadd.f32 %v7735_v9, %v12875_v43  ;;  %v7737_v60 = vpop.f32.mrb[86].mxu0 }
 0x73b   :  { %v12903_v7 = vadd.f32 %v10359_v13, %v7734_v3  ;;  %v7738_v31 = vadd.f32 %v7737_v60, %v12872_v25  ;;  %v7739_v6 = vpop.f32.mrb[87].mxu0  ;;  %v10115_v13 = vld [vmem:[#allocation10] ss:$8 sps:$4 sm:$0xff]  }
 0x73c   :  { %v12906_v36 = vadd.f32 %v10360_v20, %v7736_v27  ;;  %v7740_v16 = vadd.f32 %v7739_v6, %v12875_v43  ;;  %v10118_v6 = vld [vmem:[#allocation10 + $0x10] ss:$8 sps:$4 sm:$0xff]   ;;  %v10123_v20 = vld [vmem:[#allocation10 + $0x24] ss:$8 sps:$4 sm:$0xff]  }
 0x73d   :  { %v12909_v1 = vadd.f32 %v10361_v46, %v7738_v31  ;;  %v7773_v34 = vmul.f32 %v12903_v7, %v12903_v7  ;;  %v10120_v31 = vld [vmem:[#allocation10 + $0x14] ss:$8 sps:$4 sm:$0xff]  }
 0x73e   :  { %v12911_v18 = vadd.f32 %v10362_v56, %v7740_v16  ;;  %v7758_v61 = vadd.f32 %v12906_v36, %v12903_v7  ;;  %v7774_v25 = vmul.f32 %v12906_v36, %v12906_v36  ;;  %v10121_v16 = vld [vmem:[#allocation10 + $0x20] ss:$8 sps:$4 sm:$0xff]   ;;  %v10126_v46 = vld [vmem:[#allocation10 + $0x34] ss:$8 sps:$4 sm:$0xff]   ;;  %v10124_v56 = vld [vmem:[#allocation10 + $0x30] ss:$8 sps:$4 sm:$0xff]  }
 0x73f   :  { %v7775_v43 = vmul.f32 %v12909_v1, %v12909_v1 }
 0x740   :  { %7759 = vadd.xlane.f32.xlu1 %v7758_v61  ;;  %v7761_v21 = vadd.f32 %v12911_v18, %v12909_v1  ;;  %v7776_v58 = vmul.f32 %v12911_v18, %v12911_v18  ;;  %v7783_v48 = vadd.f32 %v7774_v25, %v7773_v34  ;;  %v10129_v61 = vld [vmem:[#allocation10 + $0x44] ss:$8 sps:$4 sm:$0xff]   ;;  %v10127_v34 = vld [vmem:[#allocation10 + $0x40] ss:$8 sps:$4 sm:$0xff]   ;;  %v10132_v25 = vld [vmem:[#allocation10 + $0x54] ss:$8 sps:$4 sm:$0xff]  }
 0x742   :  { %7762 = vadd.xlane.f32.xlu0 %v7761_v21  ;;  %v7786_v35 = vadd.f32 %v7776_v58, %v7775_v43  ;;  %v10130_v21 = vld [vmem:[#allocation10 + $0x50] ss:$8 sps:$4 sm:$0xff]   ;;  %v10135_v43 = vld [vmem:[#allocation10 + $0x64] ss:$8 sps:$4 sm:$0xff]   ;;  %v10133_v58 = vld [vmem:[#allocation10 + $0x60] ss:$8 sps:$4 sm:$0xff]  }
 0x744   :  { %7784 = vadd.xlane.f32.xlu1 %v7783_v48  ;;  %v10138_v48 = vld [vmem:[#allocation10 + $0x74] ss:$8 sps:$4 sm:$0xff]  }
 0x746   :  { %7787 = vadd.xlane.f32.xlu0 %v7786_v35  ;;  %v10136_v35 = vld [vmem:[#allocation10 + $0x70] ss:$8 sps:$4 sm:$0xff]  }
 0x78b   :  { %v7754_v53 = vpop.xlane.xlu0 %7753 }
 0x78c   :  { %v7765_v40 = vmul.f32 0.00390625, %v7754_v53 }
 0x78d   :  { %v7757_v11 = vpop.xlane.xlu1 %7756 }
 0x78e   :  { %v7766_v44 = vmul.f32 0.00390625, %v7757_v11  ;;  %v7793_v17 = vmul.f32 %v7765_v40, %v7765_v40  ;;  %v7813_v62 = vsub.f32 %v12879_v24, %v7765_v40  ;;  %v7814_v14 = vsub.f32 %v12882_v26, %v7765_v40  ;;  %v10139_v40 = vld [vmem:[#allocation10 + $0x80] ss:$8 sps:$4 sm:$0xff]  }
 0x78f   :  { %v7779_v5 = vpop.xlane.xlu0 %7778  ;;  %v12942_v26 = vrot.slane %v7751_v49, %v13228_v8 }
 0x790   :  { %v7789_v38 = vmul.f32 0.00390625, %v7779_v5  ;;  %v7794_v42 = vmul.f32 %v7766_v44, %v7766_v44  ;;  %v7815_v2 = vsub.f32 %v12885_v41, %v7766_v44  ;;  %v7816_v37 = vsub.f32 %v12887_v54, %v7766_v44  ;;  %v10144_v5 = vld [vmem:[#allocation10 + $0x94] ss:$8 sps:$4 sm:$0xff]  }
 0x792   :  { %v7797_v29 = vsub.f32 %v7789_v38, %v7793_v17 }
 0x793   :  { %v7782_v63 = vpop.xlane.xlu0 %7781 }
 0x794   :  { %v7801_v15 = vmax.f32 %v7797_v29, 0.0  ;;  %v7790_v55 = vmul.f32 0.00390625, %v7782_v63  ;;  %v10142_v29 = vld [vmem:[#allocation10 + $0x90] ss:$8 sps:$4 sm:$0xff]  }
 0x796   :  { %v7805_v50 = vadd.f32 1e-05, %v7801_v15  ;;  %v7798_v47 = vsub.f32 %v7790_v55, %v7794_v42  ;;  %v10147_v42 = vld [vmem:[#allocation10 + $0xa4] ss:$8 sps:$4 sm:$0xff]  }
 0x798   :  { %10339 = vrsqrt.f32 %v7805_v50  ;;  %v7802_v22 = vmax.f32 %v7798_v47, 0.0 }
 0x79a   :  { %v7806_v45 = vadd.f32 1e-05, %v7802_v22 }
 0x79c   :  { %10341 = vrsqrt.f32 %v7806_v45  ;;  %v10145_v45 = vld [vmem:[#allocation10 + $0xa0] ss:$8 sps:$4 sm:$0xff]  }
 0x7a2   :  { %v10340_v28 = vpop.eup %10339 }
 0x7a3   :  { %v7822_v12 = vmul.f32 %v10340_v28, %v7814_v14  ;;  %v7821_v32 = vmul.f32 %v10340_v28, %v7813_v62  ;;  %v10150_v14 = vld [vmem:[#allocation10 + $0xb4] ss:$8 sps:$4 sm:$0xff]  }
 0x7a5   :  { %v7841_v23 = vmul.f32 %v12937_v10, %v7822_v12  ;;  %v7840_v30 = vmul.f32 %v12934_v52, %v7821_v32  ;;  %v10148_v12 = vld [vmem:[#allocation10 + $0xb0] ss:$8 sps:$4 sm:$0xff]  }
 0x7a6   :  { %v10342_v24 = vpop.eup %10341 }
 0x7a7   :  { %v7824_v0 = vmul.f32 %v10342_v24, %v7816_v37  ;;  %v7823_v39 = vmul.f32 %v10342_v24, %v7815_v2  ;;  %v12952_v41 = vadd.f32 %v12945_v33, %v7841_v23  ;;  %v12958_v3 = vadd.f32 %v12942_v26, %v7840_v30  ;;  %v10153_v2 = vld [vmem:[#allocation10 + $0xc4] ss:$8 sps:$4 sm:$0xff]   ;;  %v10151_v37 = vld [vmem:[#allocation10 + $0xc0] ss:$8 sps:$4 sm:$0xff]   ;;  %v10156_v24 = vld [vmem:[#allocation10 + $0xd4] ss:$8 sps:$4 sm:$0xff]  }
 0x7a9   :  { %v7843_v59 = vmul.f32 %v12937_v10, %v7824_v0  ;;  %v7842_v4 = vmul.f32 %v12934_v52, %v7823_v39  ;;  %v10154_v0 = vld [vmem:[#allocation10 + $0xd0] ss:$8 sps:$4 sm:$0xff]  }
 0x7ab   :  { %v12955_v54 = vadd.f32 %v12945_v33, %v7843_v59  ;;  %v12961_v9 = vadd.f32 %v12942_v26, %v7842_v4 }
 0x7ad   :  { %v7868_v27 = vpack.c.bf16 %v12955_v54, %v12952_v41  ;;  %v7867_v60 = vpack.c.bf16 %v12961_v9, %v12958_v3 }
 0x7af   :  { %8309 = vmatprep.mubr.bf16.mxu1 %v7868_v27  ;;  %8362 = vmatprep.mubr.bf16.mxu0 %v7868_v27 }
 0x7b0   :  { %8310 = vmatmul.mubr.bf16.vlgmr.msra.gmra.mrb[72].mxu1 %v7867_v60  ;;  %8363 = vmatmul.mubr.bf16.vlgmr.msra.gmra.mrb[88].mxu0 %v7867_v60 }
 0x7b1   :  { %8804 = vmatpush1.bf16.msra.mxu1 %v10115_v13 }
 0x7b2   :  { %8805 = vmatprep.subr.bf16.mxu1 %v10120_v31 }
 0x7b5   :  { %8806 = vmatpush1.bf16.msra.mxu1 %v10118_v6 }
 0x7b6   :  { %8807 = vmatprep.subr.bf16.mxu1 %v10123_v20 }
 0x7b9   :  { %8808 = vmatpush1.bf16.msra.mxu1 %v10121_v16 }
 0x7ba   :  { %8809 = vmatprep.subr.bf16.mxu1 %v10126_v46 }
 0x7bd   :  { %8810 = vmatpush1.bf16.msra.mxu1 %v10124_v56 }
 0x7be   :  { %8811 = vmatprep.subr.bf16.mxu1 %v10129_v61 }
 0x7c1   :  { %8812 = vmatpush1.bf16.msra.mxu1 %v10127_v34  ;;  %v10159_v34 = vld [vmem:[#allocation10 + $0xe4] ss:$8 sps:$4 sm:$0xff]  }
 0x7c2   :  { %8813 = vmatprep.subr.bf16.mxu1 %v10132_v25  ;;  %v10162_v25 = vld [vmem:[#allocation10 + $0xf4] ss:$8 sps:$4 sm:$0xff]  }
 0x7c5   :  { %8814 = vmatpush1.bf16.msra.mxu1 %v10130_v21  ;;  %v10165_v21 = vld [vmem:[#allocation10 + $0x104] ss:$8 sps:$4 sm:$0xff]  }
 0x7c6   :  { %8815 = vmatprep.subr.bf16.mxu1 %v10135_v43 }
 0x7c9   :  { %8816 = vmatpush1.bf16.msra.mxu1 %v10133_v58  ;;  %v13230_v58 = vld [vmem:[#allocation16_spill] sm:$0xff] }
 0x7ca   :  { %8817 = vmatprep.subr.bf16.mxu1 %v10138_v48  ;;  %v13231_v48 = vsub.s32 2, %v13230_v58 }
 0x7cd   :  { %v7760_v53 = vpop.xlane.xlu1 %7759  ;;  %8818 = vmatpush1.bf16.msra.mxu1 %v10136_v35 }
 0x7ce   :  { %v7767_v11 = vmul.f32 0.00390625, %v7760_v53  ;;  %8819 = vmatprep.subr.bf16.mxu1 %v10141_v51  ;;  %v13232_v53 = vsub.s32 3, %v13230_v58  ;;  %v10195_v58 = vld [vmem:[#allocation10 + $0x1a4] ss:$8 sps:$4 sm:$0xff]  }
 0x7cf   :  { %v7763_v44 = vpop.xlane.xlu0 %7762 }
 0x7d0   :  { %v7768_v17 = vmul.f32 0.00390625, %v7763_v44  ;;  %v7795_v63 = vmul.f32 %v7767_v11, %v7767_v11  ;;  %v7817_v23 = vsub.f32 %v12903_v7, %v7767_v11  ;;  %v7818_v39 = vsub.f32 %v12906_v36, %v7767_v11 }
 0x7d1   :  { %v7785_v38 = vpop.xlane.xlu1 %7784  ;;  %8820 = vmatpush1.bf16.msra.mxu1 %v10139_v40 }
 0x7d2   :  { %v7791_v15 = vmul.f32 0.00390625, %v7785_v38  ;;  %8821 = vmatprep.subr.bf16.mxu1 %v10144_v5  ;;  %v7796_v47 = vmul.f32 %v7768_v17, %v7768_v17  ;;  %v7819_v59 = vsub.f32 %v12909_v1, %v7768_v17  ;;  %v7820_v4 = vsub.f32 %v12911_v18, %v7768_v17 }
 0x7d3   :  { %v7788_v55 = vpop.xlane.xlu0 %7787 }
 0x7d4   :  { %v7799_v50 = vsub.f32 %v7791_v15, %v7795_v63  ;;  %v7792_v22 = vmul.f32 0.00390625, %v7788_v55 }
 0x7d5   :  { %8822 = vmatpush1.bf16.msra.mxu1 %v10142_v29 }
 0x7d6   :  { %v7803_v57 = vmax.f32 %v7799_v50, 0.0  ;;  %v7800_v62 = vsub.f32 %v7792_v22, %v7796_v47  ;;  %8823 = vmatprep.subr.bf16.mxu1 %v10147_v42 }
 0x7d8   :  { %v7807_v28 = vadd.f32 1e-05, %v7803_v57  ;;  %v7804_v49 = vmax.f32 %v7800_v62, 0.0 }
 0x7d9   :  { %8824 = vmatpush1.bf16.msra.mxu1 %v10145_v45 }
 0x7da   :  { %10343 = vrsqrt.f32 %v7807_v28  ;;  %v7808_v32 = vadd.f32 1e-05, %v7804_v49  ;;  %8825 = vmatprep.subr.bf16.mxu1 %v10150_v14 }
 0x7dc   :  { %10345 = vrsqrt.f32 %v7808_v32 }
 0x7dd   :  { %8826 = vmatpush1.bf16.msra.mxu1 %v10148_v12 }
 0x7de   :  { %8827 = vmatprep.subr.bf16.mxu1 %v10153_v2 }
 0x7e1   :  { %8828 = vmatpush1.bf16.msra.mxu1 %v10151_v37 }
 0x7e2   :  { %8829 = vmatprep.subr.bf16.mxu1 %v10156_v24 }
 0x7e4   :  { %v10344_v30 = vpop.eup %10343 }
 0x7e5   :  { %v7826_v27 = vmul.f32 %v10344_v30, %v7818_v39  ;;  %v7825_v60 = vmul.f32 %v10344_v30, %v7817_v23  ;;  %8830 = vmatpush1.bf16.msra.mxu1 %v10154_v0 }
 0x7e6   :  { %v10346_v13 = vpop.eup %10345  ;;  %8831 = vmatprep.subr.bf16.mxu1 %v10159_v34  ;;  %v10184_v34 = vld [vmem:[#allocation10 + $0x170] ss:$8 sps:$4 sm:$0xff]  }
 0x7e7   :  { %v7828_v31 = vmul.f32 %v10346_v13, %v7820_v4  ;;  %v7845_v6 = vmul.f32 %v12937_v10, %v7826_v27  ;;  %v7827_v20 = vmul.f32 %v10346_v13, %v7819_v59  ;;  %v7844_v16 = vmul.f32 %v12934_v52, %v7825_v60  ;;  %v10163_v59 = vld [vmem:[#allocation10 + $0x100] ss:$8 sps:$4 sm:$0xff]   ;;  %v10168_v4 = vld [vmem:[#allocation10 + $0x114] ss:$8 sps:$4 sm:$0xff]   ;;  %v10166_v27 = vld [vmem:[#allocation10 + $0x110] ss:$8 sps:$4 sm:$0xff]  }
 0x7e8   :  { %v10171_v60 = vld [vmem:[#allocation10 + $0x124] ss:$8 sps:$4 sm:$0xff]   ;;  %v10169_v13 = vld [vmem:[#allocation10 + $0x120] ss:$8 sps:$4 sm:$0xff]  }
 0x7e9   :  { %v7847_v46 = vmul.f32 %v12937_v10, %v7828_v31  ;;  %v12975_v7 = vadd.f32 %v12945_v33, %v7845_v6  ;;  %v7846_v36 = vmul.f32 %v12934_v52, %v7827_v20  ;;  %v12979_v1 = vadd.f32 %v12942_v26, %v7844_v16  ;;  %v10157_v52 = vld [vmem:[#allocation10 + $0xe0] ss:$8 sps:$4 sm:$0xff]   ;;  %v10174_v31 = vld [vmem:[#allocation10 + $0x134] ss:$8 sps:$4 sm:$0xff]   ;;  %v10172_v6 = vld [vmem:[#allocation10 + $0x130] ss:$8 sps:$4 sm:$0xff]  }
 0x7ea   :  { %8832 = vmatpush1.bf16.msra.mxu1 %v10157_v52  ;;  %v10177_v20 = vld [vmem:[#allocation10 + $0x144] ss:$8 sps:$4 sm:$0xff]   ;;  %v10175_v16 = vld [vmem:[#allocation10 + $0x140] ss:$8 sps:$4 sm:$0xff]   ;;  %v10186_v52 = vld [vmem:[#allocation10 + $0x174] ss:$8 sps:$4 sm:$0xff]  }
 0x7eb   :  { %v12982_v18 = vadd.f32 %v12945_v33, %v7847_v46  ;;  %v12985_v56 = vadd.f32 %v12942_v26, %v7846_v36  ;;  %v10160_v33 = vld [vmem:[#allocation10 + $0xf0] ss:$8 sps:$4 sm:$0xff]   ;;  %8833 = vmatprep.subr.bf16.mxu1 %v10162_v25  ;;  %v7935_v26 = vld [vmem:[%s13122_s6] sm:$0xf]  ;;  %v10180_v46 = vld [vmem:[#allocation10 + $0x154] ss:$8 sps:$4 sm:$0xff]  }
 0x7ec   :  { %v12995_v43 = vrot.slane %v7935_v26, %v13228_v8  ;;  %v12999_v35 = vrot.slane %v7935_v26, %v13231_v48  ;;  %v13002_v51 = vrot.slane %v7935_v26, %v13229_v19  ;;  %v13006_v40 = vrot.slane %v7935_v26, %v13232_v53  ;;  %v10178_v36 = vld [vmem:[#allocation10 + $0x150] ss:$8 sps:$4 sm:$0xff]   ;;  %v10189_v25 = vld [vmem:[#allocation10 + $0x184] ss:$8 sps:$4 sm:$0xff]   ;;  %v10193_v48 = vld [vmem:[#allocation10 + $0x1a0] ss:$8 sps:$4 sm:$0xff]  }
 0x7ed   :  { %v7870_v61 = vpack.c.bf16 %v12982_v18, %v12975_v7  ;;  %v7869_v10 = vpack.c.bf16 %v12985_v56, %v12979_v1  ;;  %v10190_v26 = vld [vmem:[#allocation10 + $0x190] ss:$8 sps:$4 sm:$0xff]   ;;  %v10198_v53 = vld [vmem:[#allocation10 + $0x1b4] ss:$8 sps:$4 sm:$0xff]  }
 0x7ee   :  { %8834 = vmatpush1.bf16.msra.mxu1 %v10160_v33  ;;  %v10187_v33 = vld [vmem:[#allocation10 + $0x180] ss:$8 sps:$4 sm:$0xff]  }
 0x7ef   :  { %8319 = vmatprep.mubr.bf16.mxu1 %v7870_v61  ;;  %8372 = vmatprep.mubr.bf16.mxu0 %v7870_v61  ;;  %v10183_v61 = vld [vmem:[#allocation10 + $0x164] ss:$8 sps:$4 sm:$0xff]  }
 0x7f0   :  { %8320 = vmatmul.mubr.bf16.gmra.mrb[76].mxu1 %v7869_v10  ;;  %8373 = vmatmul.mubr.bf16.gmra.mrb[92].mxu0 %v7869_v10  ;;  %v10181_v10 = vld [vmem:[#allocation10 + $0x160] ss:$8 sps:$4 sm:$0xff]  }
 0x7f1   :  { %8856 = vmatprep.subr.bf16.mxu1 %v10165_v21  ;;  %v10192_v21 = vld [vmem:[#allocation10 + $0x194] ss:$8 sps:$4 sm:$0xff]  }
 0x883   :  { %v8311_v11 = vpop.f32.mrb[72].mxu1  ;;  %v8364_v5 = vpop.f32.mrb[88].mxu0 }
 0x884   :  { %v8312_v44 = vadd.f32 %v8311_v11, %v12995_v43  ;;  %v8365_v17 = vadd.f32 %v8364_v5, %v12999_v35  ;;  %v8313_v38 = vpop.f32.mrb[73].mxu1  ;;  %v8366_v29 = vpop.f32.mrb[89].mxu0  ;;  %v10196_v11 = vld [vmem:[#allocation10 + $0x1b0] ss:$8 sps:$4 sm:$0xff]   ;;  %v10201_v5 = vld [vmem:[#allocation10 + $0x1c4] ss:$8 sps:$4 sm:$0xff]  }
 0x885   :  { %v8314_v63 = vadd.f32 %v8313_v38, %v13002_v51  ;;  %v8367_v15 = vadd.f32 %v8366_v29, %v13006_v40  ;;  %v8315_v42 = vpop.f32.mrb[74].mxu1  ;;  %v8368_v55 = vpop.f32.mrb[90].mxu0  ;;  %v10202_v38 = vld [vmem:[#allocation10 + $0x1d0] ss:$8 sps:$4 sm:$0xff]   ;;  %v10207_v29 = vld [vmem:[#allocation10 + $0x1e4] ss:$8 sps:$4 sm:$0xff]  }
 0x886   :  { %v8316_v50 = vadd.f32 %v8315_v42, %v12995_v43  ;;  %v8369_v47 = vadd.f32 %v8368_v55, %v12999_v35  ;;  %v8317_v22 = vpop.f32.mrb[75].mxu1  ;;  %v8370_v45 = vpop.f32.mrb[91].mxu0  ;;  %v8383_v14 = vmax.f32 %v8312_v44, 0.0  ;;  %v8385_v28 = vmax.f32 %v8365_v17, 0.0  ;;  %v10199_v44 = vld [vmem:[#allocation10 + $0x1c0] ss:$8 sps:$4 sm:$0xff]  }
 0x887   :  { %v8318_v57 = vadd.f32 %v8317_v22, %v13002_v51  ;;  %v8371_v62 = vadd.f32 %v8370_v45, %v13006_v40  ;;  %v8384_v32 = vmax.f32 %v8314_v63, 0.0  ;;  %v8386_v2 = vmax.f32 %v8367_v15, 0.0  ;;  %v10204_v17 = vld [vmem:[#allocation10 + $0x1d4] ss:$8 sps:$4 sm:$0xff]   ;;  %v10205_v42 = vld [vmem:[#allocation10 + $0x1e0] ss:$8 sps:$4 sm:$0xff]  }
 0x888   :  { %v8387_v49 = vmax.f32 %v8316_v50, 0.0  ;;  %v8389_v12 = vmax.f32 %v8369_v47, 0.0  ;;  %v10210_v45 = vld [vmem:[#allocation10 + $0x1f4] ss:$8 sps:$4 sm:$0xff]  }
 0x889   :  { %v8388_v37 = vmax.f32 %v8318_v57, 0.0  ;;  %v8390_v24 = vmax.f32 %v8371_v62, 0.0 }
 0x88a   :  { %v8399_v0 = vpack.c.bf16 %v8387_v49, %v8383_v14  ;;  %v13016_v23 = vpack.c.bf16 %v8389_v12, %v8385_v28 }
 0x88b   :  { %v8400_v39 = vpack.c.bf16 %v8388_v37, %v8384_v32  ;;  %v13018_v30 = vpack.c.bf16 %v8390_v24, %v8386_v2 }
 0x88d   :  { %8835 = vmatprep.mubr.bf16.mxu1 %v8400_v39 }
 0x88e   :  { %8836 = vmatmul.mubr.bf16.vlgmr.msra.gmra.mrb[80].mxu1 %v8399_v0  ;;  %v10208_v0 = vld [vmem:[#allocation10 + $0x1f0] ss:$8 sps:$4 sm:$0xff]  }
 0x88f   :  { %8857 = vmatpush1.bf16.msra.mxu1 %v10163_v59 }
 0x890   :  { %8858 = vmatprep.subr.bf16.mxu1 %v10168_v4 }
 0x893   :  { %8859 = vmatpush1.bf16.msra.mxu1 %v10166_v27 }
 0x894   :  { %8860 = vmatprep.subr.bf16.mxu1 %v10171_v60 }
 0x897   :  { %8861 = vmatpush1.bf16.msra.mxu1 %v10169_v13 }
 0x898   :  { %8862 = vmatprep.subr.bf16.mxu1 %v10174_v31 }
 0x89b   :  { %8863 = vmatpush1.bf16.msra.mxu1 %v10172_v6 }
 0x89c   :  { %8864 = vmatprep.subr.bf16.mxu1 %v10177_v20 }
 0x89f   :  { %8865 = vmatpush1.bf16.msra.mxu1 %v10175_v16 }
 0x8a0   :  { %8866 = vmatprep.subr.bf16.mxu1 %v10180_v46 }
 0x8a3   :  { %8867 = vmatpush1.bf16.msra.mxu1 %v10178_v36 }
 0x8a4   :  { %8868 = vmatprep.subr.bf16.mxu1 %v10183_v61 }
 0x8a7   :  { %8869 = vmatpush1.bf16.msra.mxu1 %v10181_v10 }
 0x8a8   :  { %8870 = vmatprep.subr.bf16.mxu1 %v10186_v52 }
 0x8ab   :  { %8871 = vmatpush1.bf16.msra.mxu1 %v10184_v34 }
 0x8ac   :  { %8872 = vmatprep.subr.bf16.mxu1 %v10189_v25 }
 0x8af   :  { %8873 = vmatpush1.bf16.msra.mxu1 %v10187_v33 }
 0x8b0   :  { %8874 = vmatprep.subr.bf16.mxu1 %v10192_v21 }
 0x8b3   :  { %8875 = vmatpush1.bf16.msra.mxu1 %v10190_v26 }
 0x8b4   :  { %8876 = vmatprep.subr.bf16.mxu1 %v10195_v58 }
 0x8b7   :  { %8877 = vmatpush1.bf16.msra.mxu1 %v10193_v48 }
 0x8b8   :  { %8878 = vmatprep.subr.bf16.mxu1 %v10198_v53 }
 0x8bb   :  { %8879 = vmatpush1.bf16.msra.mxu1 %v10196_v11 }
 0x8bc   :  { %8880 = vmatprep.subr.bf16.mxu1 %v10201_v5 }
 0x8bf   :  { %8881 = vmatpush1.bf16.msra.mxu1 %v10199_v44 }
 0x8c0   :  { %8882 = vmatprep.subr.bf16.mxu1 %v10204_v17 }
 0x8c3   :  { %v8321_v63 = vpop.f32.mrb[76].mxu1  ;;  %v8374_v15 = vpop.f32.mrb[92].mxu0  ;;  %8883 = vmatpush1.bf16.msra.mxu1 %v10202_v38 }
 0x8c4   :  { %v8322_v55 = vadd.f32 %v8321_v63, %v12995_v43  ;;  %v8375_v50 = vadd.f32 %v8374_v15, %v12999_v35  ;;  %v8323_v47 = vpop.f32.mrb[77].mxu1  ;;  %v8376_v22 = vpop.f32.mrb[93].mxu0  ;;  %8884 = vmatprep.subr.bf16.mxu1 %v10207_v29 }
 0x8c5   :  { %v8324_v57 = vadd.f32 %v8323_v47, %v13002_v51  ;;  %v8377_v62 = vadd.f32 %v8376_v22, %v13006_v40  ;;  %v8325_v14 = vpop.f32.mrb[78].mxu1  ;;  %v8378_v28 = vpop.f32.mrb[94].mxu0 }
 0x8c6   :  { %v8326_v49 = vadd.f32 %v8325_v14, %v12995_v43  ;;  %v8379_v12 = vadd.f32 %v8378_v28, %v12999_v35  ;;  %v8327_v32 = vpop.f32.mrb[79].mxu1  ;;  %v8380_v2 = vpop.f32.mrb[95].mxu0  ;;  %v8391_v39 = vmax.f32 %v8322_v55, 0.0  ;;  %v8393_v59 = vmax.f32 %v8375_v50, 0.0 }
 0x8c7   :  { %v8328_v37 = vadd.f32 %v8327_v32, %v13002_v51  ;;  %v8381_v24 = vadd.f32 %v8380_v2, %v13006_v40  ;;  %8885 = vmatpush1.bf16.msra.mxu1 %v10205_v42  ;;  %v8392_v60 = vmax.f32 %v8324_v57, 0.0  ;;  %v8394_v13 = vmax.f32 %v8377_v62, 0.0  ;;  %v8471_v51 = vld [vmem:[%s13124_s8] sm:$0x3] }
 0x8c8   :  { %v8395_v4 = vmax.f32 %v8326_v49, 0.0  ;;  %v8397_v27 = vmax.f32 %v8379_v12, 0.0  ;;  %8886 = vmatprep.subr.bf16.mxu1 %v10210_v45  ;;  %v8476_v40 = vrot.slane %v8471_v51, %v13228_v8  ;;  %v8480_v46 = vrot.slane %v8471_v51, %v13229_v19 }
 0x8c9   :  { %v8396_v31 = vmax.f32 %v8328_v37, 0.0  ;;  %v8398_v6 = vmax.f32 %v8381_v24, 0.0 }
 0x8ca   :  { %v8403_v43 = vpack.c.bf16 %v8395_v4, %v8391_v39  ;;  %v8405_v20 = vpack.c.bf16 %v8397_v27, %v8393_v59 }
 0x8cb   :  { %v8404_v35 = vpack.c.bf16 %v8396_v31, %v8392_v60  ;;  %v8406_v16 = vpack.c.bf16 %v8398_v6, %v8394_v13  ;;  %8887 = vmatpush1.bf16.msra.mxu1 %v10208_v0 }
 0x8cd   :  { %8845 = vmatprep.mubr.bf16.mxu1 %v8404_v35 }
 0x8ce   :  { %8846 = vmatmul.mubr.bf16.gmra.mrb[84].mxu1 %v8403_v43 }
 0x8cf   :  { %8888 = vmatprep.mubr.bf16.mxu1 %v13018_v30 }
 0x8d6   :  { %8889 = vmatmul.mubr.bf16.vlgmr.msra.gmra.mrb[80].mxu1 %v13016_v23 }
 0x8d7   :  { %8898 = vmatprep.mubr.bf16.mxu1 %v8406_v16 }
 0x8de   :  { %8899 = vmatmul.mubr.bf16.gmra.mrb[84].mxu1 %v8405_v20 }
 0x9a9   :  { %v8890_v36 = vpop.f32.mrb[80].mxu1 }
 0x9aa   :  { %v9732_v61 = vadd.f32 %v8890_v36, %v8476_v40  ;;  %v8892_v10 = vpop.f32.mrb[81].mxu1 }
 0x9ab   :  { %v9733_v52 = vadd.f32 %v8892_v10, %v8480_v46  ;;  %v8894_v34 = vpop.f32.mrb[82].mxu1 }
 0x9ac   :  { %v13036_v25 = vadd.f32 %v9732_v61, %v12958_v3  ;;  %v9734_v30 = vadd.f32 %v8894_v34, %v8476_v40  ;;  %v8896_v23 = vpop.f32.mrb[83].mxu1 }
 0x9ad   :  { %v13039_v33 = vadd.f32 %v9733_v52, %v12952_v41  ;;  %v9735_v21 = vadd.f32 %v8896_v23, %v8480_v46 }
 0x9ae   :  { %v13042_v26 = vadd.f32 %v9734_v30, %v12961_v9  ;;  %v8935_v53 = vmul.f32 %v13036_v25, %v13036_v25 }
 0x9af   :  { %v13045_v58 = vadd.f32 %v9735_v21, %v12955_v54  ;;  %v8919_v48 = vadd.f32 %v13039_v33, %v13036_v25  ;;  %v8936_v3 = vmul.f32 %v13039_v33, %v13039_v33  ;;  %v8917_v21 = vld [vmem:[%s13127_s11] sm:$0x3]  ;;  %s10521_s11 = smov [#allocation11]  }
 0x9b0   :  { %v8937_v9 = vmul.f32 %v13042_v26, %v13042_v26 }
 0x9b1   :  { %v8900_v11 = vpop.f32.mrb[84].mxu1  ;;  %8920 = vadd.xlane.f32.xlu1 %v8919_v48  ;;  %v8922_v41 = vadd.f32 %v13045_v58, %v13042_v26  ;;  %v8938_v54 = vmul.f32 %v13045_v58, %v13045_v58  ;;  %v8943_v29 = vadd.f32 %v8936_v3, %v8935_v53  ;;  %v8918_v3 = vld [vmem:[%s13128_s12] sm:$0x3]  ;;  %s9046_s12 = sshll.u32 %s10521_s11, 4  ;;  %s9047_s12 = int_to_ptr.vmem [resolvable:$true] %s9046_s12 }
 0x9b2   :  { %v9736_v5 = vadd.f32 %v8900_v11, %v8476_v40  ;;  %v8902_v44 = vpop.f32.mrb[85].mxu1  ;;  %s10473_s16 = scalar_lea.vmem %s9047_s12, 1024  ;;  %p10478_p13 = scmp.lt.s32.totalorder %s9047_s12, %s9047_s12 }
 0x9b3   :  { %v9737_v17 = vadd.f32 %v8902_v44, %v8480_v46  ;;  %v8904_v38 = vpop.f32.mrb[86].mxu1  ;;  %8923 = vadd.xlane.f32.xlu0 %v8922_v41  ;;  %v8946_v47 = vadd.f32 %v8938_v54, %v8937_v9  ;;  %v8999_v54 = vrot.slane %v8917_v21, %v13228_v8  ;;  %p10474_p12 = scmp.ne.s32.totalorder %s9047_s12, %s10473_s16  ;;  %p10479_p0 = scmp.lt.s32.totalorder %s10473_s16, %s10473_s16 }
 0x9b4   :  { %v13060_v63 = vadd.f32 %v9736_v5, %v12979_v1  ;;  %v9738_v15 = vadd.f32 %v8904_v38, %v8476_v40  ;;  %v8906_v42 = vpop.f32.mrb[87].mxu1  ;;  %v9003_v5 = vrot.slane %v8917_v21, %v13229_v19  ;;  %v9022_v38 = vrot.slane %v8918_v3, %v13229_v19 }
 0x9b5   :  { %v13063_v55 = vadd.f32 %v9737_v17, %v12975_v7  ;;  %v9739_v50 = vadd.f32 %v8906_v42, %v8480_v46  ;;  %8944 = vadd.xlane.f32.xlu1 %v8943_v29  ;;  %v9018_v17 = vrot.slane %v8918_v3, %v13228_v8  ;;  %p10480_p1 = por %p10479_p0, %p10478_p13 }
 0x9b6   :  { %v13066_v22 = vadd.f32 %v9738_v15, %v12985_v56  ;;  %v8939_v1 = vmul.f32 %v13060_v63, %v13060_v63 }
 0x9b7   :  { %v13069_v45 = vadd.f32 %v9739_v50, %v12982_v18  ;;  %8947 = vadd.xlane.f32.xlu0 %v8946_v47  ;;  %v8925_v57 = vadd.f32 %v13063_v55, %v13060_v63  ;;  %v8940_v7 = vmul.f32 %v13063_v55, %v13063_v55  ;;  %p10481_p2 = pnand %p10480_p1, %p10474_p12 }
 0x9b8   :  { %v8941_v56 = vmul.f32 %v13066_v22, %v13066_v22 }
 0x9b9   :  { %8926 = vadd.xlane.f32.xlu1 %v8925_v57  ;;  %v8928_v62 = vadd.f32 %v13069_v45, %v13066_v22  ;;  %v8942_v18 = vmul.f32 %v13069_v45, %v13069_v45  ;;  %v8949_v14 = vadd.f32 %v8940_v7, %v8939_v1 }
 0x9bb   :  { %8929 = vadd.xlane.f32.xlu0 %v8928_v62  ;;  %v8952_v28 = vadd.f32 %v8942_v18, %v8941_v56 }
 0x9bd   :  { %8950 = vadd.xlane.f32.xlu1 %v8949_v14 }
 0x9bf   :  { %8953 = vadd.xlane.f32.xlu0 %v8952_v28 }
 0xa3e   :  { %v8921_v49 = vpop.xlane.xlu1 %8920 }
 0xa3f   :  { %v8931_v12 = vmul.f32 0.00390625, %v8921_v49 }
 0xa40   :  { %v8924_v32 = vpop.xlane.xlu0 %8923 }
 0xa41   :  { %v8932_v2 = vmul.f32 0.00390625, %v8924_v32  ;;  %v8959_v24 = vmul.f32 %v8931_v12, %v8931_v12  ;;  %v8979_v41 = vsub.f32 %v13036_v25, %v8931_v12  ;;  %v8980_v9 = vsub.f32 %v13039_v33, %v8931_v12 }
 0xa42   :  { %v8945_v37 = vpop.xlane.xlu1 %8944 }
 0xa43   :  { %v8955_v0 = vmul.f32 0.00390625, %v8945_v37  ;;  %v8960_v4 = vmul.f32 %v8932_v2, %v8932_v2  ;;  %v8981_v29 = vsub.f32 %v13042_v26, %v8932_v2  ;;  %v8982_v15 = vsub.f32 %v13045_v58, %v8932_v2 }
 0xa44   :  { %v8948_v39 = vpop.xlane.xlu0 %8947 }
 0xa45   :  { %v8963_v59 = vsub.f32 %v8955_v0, %v8959_v24  ;;  %v8956_v27 = vmul.f32 0.00390625, %v8948_v39 }
 0xa46   :  { %v8927_v60 = vpop.xlane.xlu1 %8926 }
 0xa47   :  { %v8967_v13 = vmax.f32 %v8963_v59, 0.0  ;;  %v8964_v31 = vsub.f32 %v8956_v27, %v8960_v4  ;;  %v8933_v6 = vmul.f32 0.00390625, %v8927_v60 }
 0xa48   :  { %v8930_v43 = vpop.xlane.xlu0 %8929 }
 0xa49   :  { %v8971_v20 = vadd.f32 1e-05, %v8967_v13  ;;  %v8968_v35 = vmax.f32 %v8964_v31, 0.0  ;;  %v8934_v16 = vmul.f32 0.00390625, %v8930_v43  ;;  %v8961_v46 = vmul.f32 %v8933_v6, %v8933_v6 }
 0xa4a   :  { %v8951_v51 = vpop.xlane.xlu1 %8950  ;;  %v8983_v14 = vsub.f32 %v13060_v63, %v8933_v6  ;;  %v8984_v26 = vsub.f32 %v13063_v55, %v8933_v6 }
 0xa4b   :  { %10347 = vrsqrt.f32 %v8971_v20  ;;  %v8972_v40 = vadd.f32 1e-05, %v8968_v35  ;;  %v8957_v36 = vmul.f32 0.00390625, %v8951_v51  ;;  %v8962_v52 = vmul.f32 %v8934_v16, %v8934_v16 }
 0xa4c   :  { %v8954_v61 = vpop.xlane.xlu0 %8953  ;;  %v8985_v28 = vsub.f32 %v13066_v22, %v8934_v16  ;;  %v8986_v49 = vsub.f32 %v13069_v45, %v8934_v16 }
 0xa4d   :  { %10349 = vrsqrt.f32 %v8972_v40  ;;  %v8965_v10 = vsub.f32 %v8957_v36, %v8961_v46  ;;  %v8958_v34 = vmul.f32 0.00390625, %v8954_v61 }
 0xa4f   :  { %v8969_v30 = vmax.f32 %v8965_v10, 0.0  ;;  %v8966_v23 = vsub.f32 %v8958_v34, %v8962_v52 }
 0xa51   :  { %v8973_v48 = vadd.f32 1e-05, %v8969_v30  ;;  %v8970_v53 = vmax.f32 %v8966_v23, 0.0 }
 0xa53   :  { %10351 = vrsqrt.f32 %v8973_v48  ;;  %v8974_v11 = vadd.f32 1e-05, %v8970_v53 }
 0xa55   :  { %v10348_v44 = vpop.eup %10347  ;;  %10353 = vrsqrt.f32 %v8974_v11 }
 0xa56   :  { %v8987_v42 = vmul.f32 %v10348_v44, %v8979_v41  ;;  %v8988_v50 = vmul.f32 %v10348_v44, %v8980_v9 }
 0xa57   :  { %v10350_v47 = vpop.eup %10349 }
 0xa58   :  { %v9006_v25 = vmul.f32 %v8999_v54, %v8987_v42  ;;  %v9007_v57 = vmul.f32 %v9003_v5, %v8988_v50  ;;  %v8989_v33 = vmul.f32 %v10350_v47, %v8981_v29  ;;  %v8990_v1 = vmul.f32 %v10350_v47, %v8982_v15 }
 0xa5a   :  { %v9025_v7 = vadd.f32 %v9018_v17, %v9006_v25  ;;  %v9026_v62 = vadd.f32 %v9022_v38, %v9007_v57  ;;  %v9008_v56 = vmul.f32 %v8999_v54, %v8989_v33  ;;  %v9009_v18 = vmul.f32 %v9003_v5, %v8990_v1 }
 0xa5c   :  { %9033 = vst [vmem:[#allocation11] sm:$0xff] %v9025_v7  ;;  %9034 = vst [vmem:[#allocation11 + $0x8] sm:$0xff] %v9026_v62  ;;  %v9027_v8 = vadd.f32 %v9018_v17, %v9008_v56  ;;  %v9028_v19 = vadd.f32 %v9022_v38, %v9009_v18 }
 0xa5d   :  { %v10352_v58 = vpop.eup %10351 }
 0xa5e   :  { %9035 = vst [vmem:[#allocation11 + $0x10] sm:$0xff] %v9027_v8  ;;  %9036 = vst [vmem:[#allocation11 + $0x18] sm:$0xff] %v9028_v19  ;;  %v8991_v12 = vmul.f32 %v10352_v58, %v8983_v14  ;;  %v8992_v32 = vmul.f32 %v10352_v58, %v8984_v26 }
 0xa5f   :  { %v10354_v2 = vpop.eup %10353 }
 0xa60   :  { %v9010_v37 = vmul.f32 %v8999_v54, %v8991_v12  ;;  %v9011_v24 = vmul.f32 %v9003_v5, %v8992_v32  ;;  %v8993_v0 = vmul.f32 %v10354_v2, %v8985_v28  ;;  %v8994_v39 = vmul.f32 %v10354_v2, %v8986_v49 }
 0xa62   :  { %v9029_v59 = vadd.f32 %v9018_v17, %v9010_v37  ;;  %v9030_v63 = vadd.f32 %v9022_v38, %v9011_v24  ;;  %v9012_v4 = vmul.f32 %v8999_v54, %v8993_v0  ;;  %v9013_v55 = vmul.f32 %v9003_v5, %v8994_v39 }
 0xa64   :  { %9037 = vst [vmem:[#allocation11 + $0x20] sm:$0xff] %v9029_v59  ;;  %9038 = vst [vmem:[#allocation11 + $0x28] sm:$0xff] %v9030_v63  ;;  %v9031_v27 = vadd.f32 %v9018_v17, %v9012_v4  ;;  %v9032_v60 = vadd.f32 %v9022_v38, %v9013_v55 }
 0xa66   :  { %9039 = vst [vmem:[#allocation11 + $0x30] sm:$0xff] %v9031_v27  ;;  %9040 = vst [vmem:[#allocation11 + $0x38] sm:$0xff] %v9032_v60 }
 0xa67   :  { %10484 = shalt.err (!%p10481_p2)
}
 0xa68   :  { %s10485_s19 = scalar_lea.hbm %s13129_s13, 1024 }
 0xa69   :  { %p10486_p3 = scmp.ne.s32.totalorder %s13129_s13, %s10485_s19  ;;  %p10489_p4 = scmp.lt.u32.totalorder %s10485_s19, %s13129_s13 }
 0xa6b   :  { %p10491_p5 = pnand %p10489_p4, %p10486_p3 }
 0xa6d   :  { %10494 = shalt.err (!%p10491_p5)
}
 0xa6e   :  { %9052 = dma.vmem_to_hbm [thread:$0]  %s9047_s12, 1024, %s13129_s13, [#allocation4], %s10508_s26, %s10508_s26, %s10509_s17  }
 0xa6f   :  { %10501 = dma.done.wait [#allocation4], 1024  }
 0xa70   :  { %10502 = vsyncadd [#allocation4], 4294966272 }
 0xa71   :  { %9056 = vsyncpa [#allocation3], 1 }
 0xa72   :  { %9057 = vsyncpa [#allocation6], 1 }
 0xa73   :  { %9058 = vsyncpa [#allocation9], 1 }
 0xa74   :  { %9059 = vsyncpa [#allocation4], 1 }

</bundles_post_ra>
